<compile_context>
chip_gen: v6e
topology: v6e:2x2x1
jax: 0.10.0
libtpu: 0.0.40
codegen_flags: <defaults>
</compile_context>

<pallas_src>
import jax
import jax.numpy as jnp
from jax.experimental import pallas as pl
from jax.experimental.pallas import tpu as pltpu

BN_EPS = 1e-5

# f32 keeps the forward numerically equivalent to the PyTorch module (and to
# the 1e-4 check below).  Flip to jnp.bfloat16 on v6e/v7x when that tolerance
# is acceptable: the matmuls then use the fast bf16 MXU path while BN stats
# and normalization stay in f32.
MXU_DTYPE = jnp.float32


def _round_up(x, m):
    return (x + m - 1) // m * m


def _pick_row_tile(h, w, max_rows=2048):
    """Largest divisor th of h with th*w <= max_rows and (th*w) % 8 == 0."""
    for th in range(h, 0, -1):
        if h % th == 0 and th * w <= max_rows and (th * w) % 8 == 0:
            return th
    for th in range(1, h + 1):
        if h % th == 0 and (th * w) % 8 == 0:
            return th
    return h


def _pick_m_tile(m, max_rows=4096):
    for tm in range(min(m, max_rows), 0, -1):
        if m % tm == 0 and tm % 8 == 0:
            return tm
    return m


def _conv_bn_relu(x_nhwc, w_hwio, gamma, beta):
    """Conv3x3(stride 1, pad 1, no bias) + BatchNorm(batch stats) + ReLU.

    x_nhwc: (N, H, W, Cin_p) with Cin_p a multiple of 128.
    w_hwio: (3, 3, Cin_p, Cout_p); gamma/beta: (Cout_p,).
    Returns (N, H, W, Cout_p) float32.
    """
    n, h, w, c_in = x_nhwc.shape
    c_out = w_hwio.shape[-1]
    th = _pick_row_tile(h, w)
    nt = h // th
    m = n * h * w
    rows = th * w

    xpad = jnp.pad(x_nhwc, ((0, 0), (1, 1), (1, 1), (0, 0))).astype(MXU_DTYPE)
    wmat = w_hwio.astype(MXU_DTYPE)
    g2d = gamma.reshape(1, c_out).astype(jnp.float32)
    b2d = beta.reshape(1, c_out).astype(jnp.float32)

    # ---------------- Pass 1: conv (9 shifted matmuls) + BN statistics -------
    def conv_stats_kernel(x_hbm, w_ref, g_ref, b_ref, y_ref, ss_ref,
                          xbuf, sem, sum_ref, sq_ref):
        bi = pl.program_id(0)
        ti = pl.program_id(1)

        # Halo DMA: padded rows [ti*th, ti*th + th + 2) of image bi.
        r0 = pl.multiple_of(ti * th, th)
        dma = pltpu.make_async_copy(x_hbm.at[bi, pl.ds(r0, th + 2)], xbuf, sem)
        dma.start()

        @pl.when((bi == 0) & (ti == 0))
        def _():
            sum_ref[...] = jnp.zeros_like(sum_ref)
            sq_ref[...] = jnp.zeros_like(sq_ref)

        dma.wait()
        # TODO(synk): double-buffer xbuf (prefetch the next tile's slab) so the
        # halo DMA overlaps the 9 matmuls instead of being exposed.

        acc = jnp.zeros((rows, c_out), jnp.float32)
        for kh in range(3):
            xrows = xbuf[kh:kh + th, :, :]                  # (th, w+2, c_in)
            for kw in range(3):
                xs = xrows[:, kw:kw + w, :].reshape(rows, c_in)
                acc = acc + jnp.dot(xs, w_ref[kh, kw],
                                    preferred_element_type=jnp.float32)

        y_ref[...] = acc
        sum_ref[...] += jnp.sum(acc, axis=0, keepdims=True)
        sq_ref[...] += jnp.sum(acc * acc, axis=0, keepdims=True)

        @pl.when((bi == pl.num_programs(0) - 1) & (ti == pl.num_programs(1) - 1))
        def _():
            inv_m = jnp.float32(1.0 / m)
            mean = sum_ref[...] * inv_m
            # Biased variance via E[y^2] - E[y]^2 (f32 accumulation; fine at
            # these magnitudes / M; switch to two-level centered sums if M huge).
            var = jnp.maximum(sq_ref[...] * inv_m - mean * mean, 0.0)
            inv = jax.lax.rsqrt(var + BN_EPS)
            scale = g_ref[...] * inv
            ss_ref[0:1, :] = scale
            ss_ref[1:2, :] = b_ref[...] - mean * scale

    y_flat, ss = pl.pallas_call(
        conv_stats_kernel,
        out_shape=(jax.ShapeDtypeStruct((m, c_out), jnp.float32),
                   jax.ShapeDtypeStruct((2, c_out), jnp.float32)),
        grid_spec=pltpu.PrefetchScalarGridSpec(
            num_scalar_prefetch=0,
            grid=(n, nt),
            in_specs=[
                pl.BlockSpec(memory_space=pl.ANY),                    # x (HBM)
                pl.BlockSpec((3, 3, c_in, c_out), lambda b, t: (0, 0, 0, 0)),
                pl.BlockSpec((1, c_out), lambda b, t: (0, 0)),
                pl.BlockSpec((1, c_out), lambda b, t: (0, 0)),
            ],
            out_specs=(
                pl.BlockSpec((rows, c_out), lambda b, t: (b * nt + t, 0)),
                pl.BlockSpec((2, c_out), lambda b, t: (0, 0)),
            ),
            scratch_shapes=[
                pltpu.VMEM((th + 2, w + 2, c_in), MXU_DTYPE),   # halo slab
                pltpu.SemaphoreType.DMA(()),
                pltpu.VMEM((1, c_out), jnp.float32),            # sum
                pltpu.VMEM((1, c_out), jnp.float32),            # sum of squares
            ]),
        compiler_params=pltpu.CompilerParams(
            dimension_semantics=("arbitrary", "arbitrary")),
    )(xpad, wmat, g2d, b2d)

    # ---------------- Pass 2: apply BN scale/shift + ReLU --------------------
    tm = _pick_m_tile(m)

    def bn_relu_kernel(y_ref, ss_ref, o_ref):
        scale = ss_ref[0:1, :]
        shift = ss_ref[1:2, :]
        o_ref[...] = jnp.maximum(y_ref[...] * scale + shift, 0.0)

    out = pl.pallas_call(
        bn_relu_kernel,
        out_shape=jax.ShapeDtypeStruct((m, c_out), jnp.float32),
        grid_spec=pltpu.PrefetchScalarGridSpec(
            num_scalar_prefetch=0,
            grid=(m // tm,),
            in_specs=[pl.BlockSpec((tm, c_out), lambda i: (i, 0)),
                      pl.BlockSpec((2, c_out), lambda i: (0, 0))],
            out_specs=pl.BlockSpec((tm, c_out), lambda i: (i, 0))),
        compiler_params=pltpu.CompilerParams(
            dimension_semantics=("parallel",)),
    )(y_flat, ss)

    return out.reshape(n, h, w, c_out)


@jax.jit
def double_conv(x_nchw, w1, g1, b1, w2, g2, b2):
    n, c_in, h, w = x_nchw.shape
    c_out = w1.shape[-1]
    cin_p = _round_up(c_in, 128)
    cout_p = _round_up(c_out, 128)

    x = jnp.transpose(x_nchw, (0, 2, 3, 1))                     # NCHW -> NHWC
    x = jnp.pad(x, ((0, 0), (0, 0), (0, 0), (0, cin_p - c_in)))

    w1p = jnp.pad(w1, ((0, 0), (0, 0), (0, cin_p - c_in), (0, cout_p - c_out)))
    w2p = jnp.pad(w2, ((0, 0), (0, 0), (0, cout_p - c_out), (0, cout_p - c_out)))
    g1p = jnp.pad(g1, (0, cout_p - c_out))
    b1p = jnp.pad(b1, (0, cout_p - c_out))
    g2p = jnp.pad(g2, (0, cout_p - c_out))
    b2p = jnp.pad(b2, (0, cout_p - c_out))

    y = _conv_bn_relu(x, w1p, g1p, b1p)
    # TODO(synk): fuse block 1's BN+ReLU apply into block 2's conv pass to save
    # one HBM round trip of the intermediate activation.
    y = _conv_bn_relu(y, w2p, g2p, b2p)

    y = y[..., :c_out]
    return jnp.transpose(y, (0, 3, 1, 2))                       # NHWC -> NCHW


def _reference(x_nchw, w1, g1, b1, w2, g2, b2):
    """Pure-JAX reference matching PyTorch training-mode forward."""
    def block(x, w_hwio, g, b):
        y = jax.lax.conv_general_dilated(
            x, w_hwio, window_strides=(1, 1), padding="SAME",
            dimension_numbers=("NCHW", "HWIO", "NCHW"))
        mean = jnp.mean(y, axis=(0, 2, 3), keepdims=True)
        var = jnp.mean((y - mean) ** 2, axis=(0, 2, 3), keepdims=True)
        yn = (y - mean) * jax.lax.rsqrt(var + BN_EPS)
        yn = yn * g.reshape(1, -1, 1, 1) + b.reshape(1, -1, 1, 1)
        return jnp.maximum(yn, 0.0)
    return block(block(x_nchw, w1, g1, b1), w2, g2, b2)


if __name__ == "__main__":
    key = jax.random.PRNGKey(0)
    kx, kw1, kw2, kg1, kb1, kg2, kb2 = jax.random.split(key, 7)

    N, Cin, Cout, H, W = 2, 4, 8, 16, 16
    x = jax.random.normal(kx, (N, Cin, H, W), jnp.float32)

    # Conv weights in HWIO layout: (3, 3, Cin, Cout) / (3, 3, Cout, Cout)
    w1 = 0.1 * jax.random.normal(kw1, (3, 3, Cin, Cout), jnp.float32)
    w2 = 0.1 * jax.random.normal(kw2, (3, 3, Cout, Cout), jnp.float32)
    # BatchNorm affine params (gamma, beta)
    g1 = 1.0 + 0.1 * jax.random.normal(kg1, (Cout,), jnp.float32)
    b1 = 0.1 * jax.random.normal(kb1, (Cout,), jnp.float32)
    g2 = 1.0 + 0.1 * jax.random.normal(kg2, (Cout,), jnp.float32)
    b2 = 0.1 * jax.random.normal(kb2, (Cout,), jnp.float32)

    out = double_conv(x, w1, g1, b1, w2, g2, b2)
    out = jax.block_until_ready(out)

    ref = _reference(x, w1, g1, b1, w2, g2, b2)
    assert out.shape == (N, Cout, H, W), out.shape
    assert jnp.allclose(out, ref, atol=1e-4, rtol=1e-4), float(jnp.max(jnp.abs(out - ref)))

    print("KERNEL_OK")
</pallas_src>

<mosaic_0001>
module attributes {stable_mosaic.version = 11 : i64} {
  func.func @bn_relu_kernel(%arg0: i32, %arg1: memref<512x128xf32, #tpu.memory_space<vmem>>, %arg2: memref<2x128xf32, #tpu.memory_space<vmem>>, %arg3: memref<512x128xf32, #tpu.memory_space<vmem>>) attributes {dimension_semantics = [#tpu.dimension_semantics<parallel>], iteration_bounds = array<i64: 1>, scalar_prefetch = 0 : i64, scratch_operands = 0 : i64, tpu.core_type = #tpu.core_type<tc>, window_params = [{transform_indices = @transform_0, window_bounds = array<i64: 512, 128>}, {pipeline_mode = #tpu.pipeline_mode<synchronous>, transform_indices = @transform_1, window_bounds = array<i64: 2, 128>}, {transform_indices = @transform_2, window_bounds = array<i64: 512, 128>}]} {
    %c0 = arith.constant 0 : index
    %c0_0 = arith.constant 0 : index
    %0 = vector.load %arg2[%c0, %c0_0] : memref<2x128xf32, #tpu.memory_space<vmem>>, vector<1x128xf32>
    %c1 = arith.constant 1 : index
    %c0_1 = arith.constant 0 : index
    %1 = vector.load %arg2[%c1, %c0_1] : memref<2x128xf32, #tpu.memory_space<vmem>>, vector<1x128xf32>
    %c0_2 = arith.constant 0 : index
    %c0_3 = arith.constant 0 : index
    %2 = vector.load %arg1[%c0_2, %c0_3] : memref<512x128xf32, #tpu.memory_space<vmem>>, vector<512x128xf32>
    %3 = vector.broadcast %0 : vector<1x128xf32> to vector<512x128xf32>
    %4 = arith.mulf %2, %3 : vector<512x128xf32>
    %5 = vector.broadcast %1 : vector<1x128xf32> to vector<512x128xf32>
    %6 = arith.addf %4, %5 : vector<512x128xf32>
    %cst = arith.constant 0.000000e+00 : f32
    %7 = vector.broadcast %cst : f32 to vector<512x128xf32>
    %8 = arith.maximumf %6, %7 : vector<512x128xf32>
    %c0_4 = arith.constant 0 : index
    %c0_5 = arith.constant 0 : index
    %9 = vector.load %arg3[%c0_4, %c0_5] : memref<512x128xf32, #tpu.memory_space<vmem>>, vector<512x128xf32>
    tpu.vector_store %arg3[%c0_4, %c0_5], %8 {strides = array<i32>} : memref<512x128xf32, #tpu.memory_space<vmem>>, vector<512x128xf32>,
    return
  }
  func.func @transform_0(%arg0: i32) -> (i32, i32) {
    %c0_i32 = arith.constant 0 : i32
    %c0_i32_0 = arith.constant 0 : i32
    return %arg0, %c0_i32 : i32, i32
  }
  func.func @transform_1(%arg0: i32) -> (i32, i32) {
    %c0_i32 = arith.constant 0 : i32
    %c0_i32_0 = arith.constant 0 : i32
    %c0_i32_1 = arith.constant 0 : i32
    return %c0_i32, %c0_i32_0 : i32, i32
  }
  func.func @transform_2(%arg0: i32) -> (i32, i32) {
    %c0_i32 = arith.constant 0 : i32
    %c0_i32_0 = arith.constant 0 : i32
    return %arg0, %c0_i32 : i32, i32
  }
}

module attributes {stable_mosaic.version = 11 : i64} {
  func.func @conv_stats_kernel(%arg0: i32, %arg1: i32, %arg2: memref<2x18x18x128xf32, #tpu.memory_space<any>>, %arg3: memref<3x3x128x128xf32, #tpu.memory_space<vmem>>, %arg4: memref<1x128xf32, #tpu.memory_space<vmem>>, %arg5: memref<1x128xf32, #tpu.memory_space<vmem>>, %arg6: memref<256x128xf32, #tpu.memory_space<vmem>>, %arg7: memref<2x128xf32, #tpu.memory_space<vmem>>, %arg8: memref<18x18x128xf32, #tpu.memory_space<vmem>>, %arg9: memref<!tpu.dma_semaphore, #tpu.memory_space<semaphore_mem>>, %arg10: memref<1x128xf32, #tpu.memory_space<vmem>>, %arg11: memref<1x128xf32, #tpu.memory_space<vmem>>) attributes {dimension_semantics = [#tpu.dimension_semantics<arbitrary>, #tpu.dimension_semantics<arbitrary>], iteration_bounds = array<i64: 2, 1>, scalar_prefetch = 0 : i64, scratch_operands = 4 : i64, tpu.core_type = #tpu.core_type<tc>, window_params = [{}, {pipeline_mode = #tpu.pipeline_mode<synchronous>, transform_indices = @transform_1, window_bounds = array<i64: 3, 3, 128, 128>}, {pipeline_mode = #tpu.pipeline_mode<synchronous>, transform_indices = @transform_2, window_bounds = array<i64: 1, 128>}, {pipeline_mode = #tpu.pipeline_mode<synchronous>, transform_indices = @transform_3, window_bounds = array<i64: 1, 128>}, {transform_indices = @transform_4, window_bounds = array<i64: 256, 128>}, {pipeline_mode = #tpu.pipeline_mode<synchronous>, transform_indices = @transform_5, window_bounds = array<i64: 2, 128>}]} {
    %c16_i32 = arith.constant 16 : i32
    %0 = arith.muli %arg1, %c16_i32 : i32
    %1 = tpu.assume_multiple %0, 16 : i32
    %c0_i32 = arith.constant 0 : i32
    %c0_i32_0 = arith.constant 0 : i32
    %2 = tpu.memref_slice %arg2[%arg0, %1, %c0_i32, %c0_i32_0] : memref<2x18x18x128xf32, #tpu.memory_space<any>> -> memref<1x18x18x128xf32, #tpu.memory_space<any>>
    %3 = tpu.memref_squeeze %2 : memref<1x18x18x128xf32, #tpu.memory_space<any>> -> memref<18x18x128xf32, #tpu.memory_space<any>>
    tpu.enqueue_dma source(%3 : memref<18x18x128xf32, #tpu.memory_space<any>>) target(%arg8 : memref<18x18x128xf32, #tpu.memory_space<vmem>>) target_semaphore(%arg9 : memref<!tpu.dma_semaphore, #tpu.memory_space<semaphore_mem>>)
    %c0_i32_1 = arith.constant 0 : i32
    %4 = arith.cmpi eq, %arg0, %c0_i32_1 : i32
    %c0_i32_2 = arith.constant 0 : i32
    %5 = arith.cmpi eq, %arg1, %c0_i32_2 : i32
    %6 = arith.andi %4, %5 : i1
    %7 = arith.extui %6 : i1 to i32
    %c0_i32_3 = arith.constant 0 : i32
    %8 = arith.cmpi ne, %7, %c0_i32_3 : i32
    scf.if %8 {
      %cst_71 = arith.constant 0.000000e+00 : f32
      %86 = vector.broadcast %cst_71 : f32 to vector<1x128xf32>
      %c0_72 = arith.constant 0 : index
      %c0_73 = arith.constant 0 : index
      %87 = vector.load %arg10[%c0_72, %c0_73] : memref<1x128xf32, #tpu.memory_space<vmem>>, vector<1x128xf32>
      tpu.vector_store %arg10[%c0_72, %c0_73], %86 {strides = array<i32>} : memref<1x128xf32, #tpu.memory_space<vmem>>, vector<1x128xf32>,
      %cst_74 = arith.constant 0.000000e+00 : f32
      %88 = vector.broadcast %cst_74 : f32 to vector<1x128xf32>
      %c0_75 = arith.constant 0 : index
      %c0_76 = arith.constant 0 : index
      %89 = vector.load %arg11[%c0_75, %c0_76] : memref<1x128xf32, #tpu.memory_space<vmem>>, vector<1x128xf32>
      tpu.vector_store %arg11[%c0_75, %c0_76], %88 {strides = array<i32>} : memref<1x128xf32, #tpu.memory_space<vmem>>, vector<1x128xf32>,
    } else {
    }
    %c0_i32_4 = arith.constant 0 : i32
    %c0_i32_5 = arith.constant 0 : i32
    %9 = tpu.memref_slice %arg2[%arg0, %1, %c0_i32_4, %c0_i32_5] : memref<2x18x18x128xf32, #tpu.memory_space<any>> -> memref<1x18x18x128xf32, #tpu.memory_space<any>>
    %10 = tpu.memref_squeeze %9 : memref<1x18x18x128xf32, #tpu.memory_space<any>> -> memref<18x18x128xf32, #tpu.memory_space<any>>
    tpu.wait_dma2 semaphore(%arg9 : memref<!tpu.dma_semaphore, #tpu.memory_space<semaphore_mem>>) src(%10 : memref<18x18x128xf32, #tpu.memory_space<any>>) dst(%arg8 : memref<18x18x128xf32, #tpu.memory_space<vmem>>)
    %cst = arith.constant 0.000000e+00 : f32
    %11 = vector.broadcast %cst : f32 to vector<256x128xf32>
    %c0 = arith.constant 0 : index
    %c0_6 = arith.constant 0 : index
    %c0_7 = arith.constant 0 : index
    %12 = vector.load %arg8[%c0, %c0_6, %c0_7] : memref<18x18x128xf32, #tpu.memory_space<vmem>>, vector<16x18x128xf32>
    %13 = vector.extract_strided_slice %12 {offsets = [0, 0, 0], sizes = [16, 16, 128], strides = [1, 1, 1]} : vector<16x18x128xf32> to vector<16x16x128xf32>
    %14 = vector.shape_cast %13 : vector<16x16x128xf32> to vector<256x128xf32>
    %c0_8 = arith.constant 0 : index
    %c0_9 = arith.constant 0 : index
    %c0_10 = arith.constant 0 : index
    %c0_11 = arith.constant 0 : index
    %15 = vector.load %arg3[%c0_8, %c0_9, %c0_10, %c0_11] : memref<3x3x128x128xf32, #tpu.memory_space<vmem>>, vector<1x1x128x128xf32>
    %16 = vector.shape_cast %15 : vector<1x1x128x128xf32> to vector<128x128xf32>
    %cst_12 = arith.constant dense<0.000000e+00> : vector<256x128xf32>
    %17 = tpu.matmul %14, %16, %cst_12 {dimension_numbers = #tpu.dot_dimension_numbers<[1], [0], [0], [1], [0, 0, 1, 1], [], []>} : vector<256x128xf32>, vector<128x128xf32>, vector<256x128xf32> -> vector<256x128xf32>
    %18 = arith.addf %11, %17 : vector<256x128xf32>
    %19 = vector.extract_strided_slice %12 {offsets = [0, 1, 0], sizes = [16, 16, 128], strides = [1, 1, 1]} : vector<16x18x128xf32> to vector<16x16x128xf32>
    %20 = vector.shape_cast %19 : vector<16x16x128xf32> to vector<256x128xf32>
    %c0_13 = arith.constant 0 : index
    %c1 = arith.constant 1 : index
    %c0_14 = arith.constant 0 : index
    %c0_15 = arith.constant 0 : index
    %21 = vector.load %arg3[%c0_13, %c1, %c0_14, %c0_15] : memref<3x3x128x128xf32, #tpu.memory_space<vmem>>, vector<1x1x128x128xf32>
    %22 = vector.shape_cast %21 : vector<1x1x128x128xf32> to vector<128x128xf32>
    %cst_16 = arith.constant dense<0.000000e+00> : vector<256x128xf32>
    %23 = tpu.matmul %20, %22, %cst_16 {dimension_numbers = #tpu.dot_dimension_numbers<[1], [0], [0], [1], [0, 0, 1, 1], [], []>} : vector<256x128xf32>, vector<128x128xf32>, vector<256x128xf32> -> vector<256x128xf32>
    %24 = arith.addf %18, %23 : vector<256x128xf32>
    %25 = vector.extract_strided_slice %12 {offsets = [0, 2, 0], sizes = [16, 16, 128], strides = [1, 1, 1]} : vector<16x18x128xf32> to vector<16x16x128xf32>
    %26 = vector.shape_cast %25 : vector<16x16x128xf32> to vector<256x128xf32>
    %c0_17 = arith.constant 0 : index
    %c2 = arith.constant 2 : index
    %c0_18 = arith.constant 0 : index
    %c0_19 = arith.constant 0 : index
    %27 = vector.load %arg3[%c0_17, %c2, %c0_18, %c0_19] : memref<3x3x128x128xf32, #tpu.memory_space<vmem>>, vector<1x1x128x128xf32>
    %28 = vector.shape_cast %27 : vector<1x1x128x128xf32> to vector<128x128xf32>
    %cst_20 = arith.constant dense<0.000000e+00> : vector<256x128xf32>
    %29 = tpu.matmul %26, %28, %cst_20 {dimension_numbers = #tpu.dot_dimension_numbers<[1], [0], [0], [1], [0, 0, 1, 1], [], []>} : vector<256x128xf32>, vector<128x128xf32>, vector<256x128xf32> -> vector<256x128xf32>
    %30 = arith.addf %24, %29 : vector<256x128xf32>
    %c1_21 = arith.constant 1 : index
    %c0_22 = arith.constant 0 : index
    %c0_23 = arith.constant 0 : index
    %31 = vector.load %arg8[%c1_21, %c0_22, %c0_23] : memref<18x18x128xf32, #tpu.memory_space<vmem>>, vector<16x18x128xf32>
    %32 = vector.extract_strided_slice %31 {offsets = [0, 0, 0], sizes = [16, 16, 128], strides = [1, 1, 1]} : vector<16x18x128xf32> to vector<16x16x128xf32>
    %33 = vector.shape_cast %32 : vector<16x16x128xf32> to vector<256x128xf32>
    %c1_24 = arith.constant 1 : index
    %c0_25 = arith.constant 0 : index
    %c0_26 = arith.constant 0 : index
    %c0_27 = arith.constant 0 : index
    %34 = vector.load %arg3[%c1_24, %c0_25, %c0_26, %c0_27] : memref<3x3x128x128xf32, #tpu.memory_space<vmem>>, vector<1x1x128x128xf32>
    %35 = vector.shape_cast %34 : vector<1x1x128x128xf32> to vector<128x128xf32>
    %cst_28 = arith.constant dense<0.000000e+00> : vector<256x128xf32>
    %36 = tpu.matmul %33, %35, %cst_28 {dimension_numbers = #tpu.dot_dimension_numbers<[1], [0], [0], [1], [0, 0, 1, 1], [], []>} : vector<256x128xf32>, vector<128x128xf32>, vector<256x128xf32> -> vector<256x128xf32>
    %37 = arith.addf %30, %36 : vector<256x128xf32>
    %38 = vector.extract_strided_slice %31 {offsets = [0, 1, 0], sizes = [16, 16, 128], strides = [1, 1, 1]} : vector<16x18x128xf32> to vector<16x16x128xf32>
    %39 = vector.shape_cast %38 : vector<16x16x128xf32> to vector<256x128xf32>
    %c1_29 = arith.constant 1 : index
    %c1_30 = arith.constant 1 : index
    %c0_31 = arith.constant 0 : index
    %c0_32 = arith.constant 0 : index
    %40 = vector.load %arg3[%c1_29, %c1_30, %c0_31, %c0_32] : memref<3x3x128x128xf32, #tpu.memory_space<vmem>>, vector<1x1x128x128xf32>
    %41 = vector.shape_cast %40 : vector<1x1x128x128xf32> to vector<128x128xf32>
    %cst_33 = arith.constant dense<0.000000e+00> : vector<256x128xf32>
    %42 = tpu.matmul %39, %41, %cst_33 {dimension_numbers = #tpu.dot_dimension_numbers<[1], [0], [0], [1], [0, 0, 1, 1], [], []>} : vector<256x128xf32>, vector<128x128xf32>, vector<256x128xf32> -> vector<256x128xf32>
    %43 = arith.addf %37, %42 : vector<256x128xf32>
    %44 = vector.extract_strided_slice %31 {offsets = [0, 2, 0], sizes = [16, 16, 128], strides = [1, 1, 1]} : vector<16x18x128xf32> to vector<16x16x128xf32>
    %45 = vector.shape_cast %44 : vector<16x16x128xf32> to vector<256x128xf32>
    %c1_34 = arith.constant 1 : index
    %c2_35 = arith.constant 2 : index
    %c0_36 = arith.constant 0 : index
    %c0_37 = arith.constant 0 : index
    %46 = vector.load %arg3[%c1_34, %c2_35, %c0_36, %c0_37] : memref<3x3x128x128xf32, #tpu.memory_space<vmem>>, vector<1x1x128x128xf32>
    %47 = vector.shape_cast %46 : vector<1x1x128x128xf32> to vector<128x128xf32>
    %cst_38 = arith.constant dense<0.000000e+00> : vector<256x128xf32>
    %48 = tpu.matmul %45, %47, %cst_38 {dimension_numbers = #tpu.dot_dimension_numbers<[1], [0], [0], [1], [0, 0, 1, 1], [], []>} : vector<256x128xf32>, vector<128x128xf32>, vector<256x128xf32> -> vector<256x128xf32>
    %49 = arith.addf %43, %48 : vector<256x128xf32>
    %c2_39 = arith.constant 2 : index
    %c0_40 = arith.constant 0 : index
    %c0_41 = arith.constant 0 : index
    %50 = vector.load %arg8[%c2_39, %c0_40, %c0_41] : memref<18x18x128xf32, #tpu.memory_space<vmem>>, vector<16x18x128xf32>
    %51 = vector.extract_strided_slice %50 {offsets = [0, 0, 0], sizes = [16, 16, 128], strides = [1, 1, 1]} : vector<16x18x128xf32> to vector<16x16x128xf32>
    %52 = vector.shape_cast %51 : vector<16x16x128xf32> to vector<256x128xf32>
    %c2_42 = arith.constant 2 : index
    %c0_43 = arith.constant 0 : index
    %c0_44 = arith.constant 0 : index
    %c0_45 = arith.constant 0 : index
    %53 = vector.load %arg3[%c2_42, %c0_43, %c0_44, %c0_45] : memref<3x3x128x128xf32, #tpu.memory_space<vmem>>, vector<1x1x128x128xf32>
    %54 = vector.shape_cast %53 : vector<1x1x128x128xf32> to vector<128x128xf32>
    %cst_46 = arith.constant dense<0.000000e+00> : vector<256x128xf32>
    %55 = tpu.matmul %52, %54, %cst_46 {dimension_numbers = #tpu.dot_dimension_numbers<[1], [0], [0], [1], [0, 0, 1, 1], [], []>} : vector<256x128xf32>, vector<128x128xf32>, vector<256x128xf32> -> vector<256x128xf32>
    %56 = arith.addf %49, %55 : vector<256x128xf32>
    %57 = vector.extract_strided_slice %50 {offsets = [0, 1, 0], sizes = [16, 16, 128], strides = [1, 1, 1]} : vector<16x18x128xf32> to vector<16x16x128xf32>
    %58 = vector.shape_cast %57 : vector<16x16x128xf32> to vector<256x128xf32>
    %c2_47 = arith.constant 2 : index
    %c1_48 = arith.constant 1 : index
    %c0_49 = arith.constant 0 : index
    %c0_50 = arith.constant 0 : index
    %59 = vector.load %arg3[%c2_47, %c1_48, %c0_49, %c0_50] : memref<3x3x128x128xf32, #tpu.memory_space<vmem>>, vector<1x1x128x128xf32>
    %60 = vector.shape_cast %59 : vector<1x1x128x128xf32> to vector<128x128xf32>
    %cst_51 = arith.constant dense<0.000000e+00> : vector<256x128xf32>
    %61 = tpu.matmul %58, %60, %cst_51 {dimension_numbers = #tpu.dot_dimension_numbers<[1], [0], [0], [1], [0, 0, 1, 1], [], []>} : vector<256x128xf32>, vector<128x128xf32>, vector<256x128xf32> -> vector<256x128xf32>
    %62 = arith.addf %56, %61 : vector<256x128xf32>
    %63 = vector.extract_strided_slice %50 {offsets = [0, 2, 0], sizes = [16, 16, 128], strides = [1, 1, 1]} : vector<16x18x128xf32> to vector<16x16x128xf32>
    %64 = vector.shape_cast %63 : vector<16x16x128xf32> to vector<256x128xf32>
    %c2_52 = arith.constant 2 : index
    %c2_53 = arith.constant 2 : index
    %c0_54 = arith.constant 0 : index
    %c0_55 = arith.constant 0 : index
    %65 = vector.load %arg3[%c2_52, %c2_53, %c0_54, %c0_55] : memref<3x3x128x128xf32, #tpu.memory_space<vmem>>, vector<1x1x128x128xf32>
    %66 = vector.shape_cast %65 : vector<1x1x128x128xf32> to vector<128x128xf32>
    %cst_56 = arith.constant dense<0.000000e+00> : vector<256x128xf32>
    %67 = tpu.matmul %64, %66, %cst_56 {dimension_numbers = #tpu.dot_dimension_numbers<[1], [0], [0], [1], [0, 0, 1, 1], [], []>} : vector<256x128xf32>, vector<128x128xf32>, vector<256x128xf32> -> vector<256x128xf32>
    %68 = arith.addf %62, %67 : vector<256x128xf32>
    %c0_57 = arith.constant 0 : index
    %c0_58 = arith.constant 0 : index
    %69 = vector.load %arg6[%c0_57, %c0_58] : memref<256x128xf32, #tpu.memory_space<vmem>>, vector<256x128xf32>
    tpu.vector_store %arg6[%c0_57, %c0_58], %68 {strides = array<i32>} : memref<256x128xf32, #tpu.memory_space<vmem>>, vector<256x128xf32>,
    %c0_59 = arith.constant 0 : index
    %c0_60 = arith.constant 0 : index
    %70 = vector.load %arg10[%c0_59, %c0_60] : memref<1x128xf32, #tpu.memory_space<vmem>>, vector<1x128xf32>
    %cst_61 = arith.constant dense<0.000000e+00> : vector<128xf32>
    %71 = vector.multi_reduction <add>, %68, %cst_61 [0] : vector<256x128xf32> to vector<128xf32>
    %72 = vector.shape_cast %71 : vector<128xf32> to vector<1x128xf32>
    %73 = arith.addf %70, %72 : vector<1x128xf32>
    %c0_62 = arith.constant 0 : index
    %c0_63 = arith.constant 0 : index
    %74 = vector.load %arg10[%c0_62, %c0_63] : memref<1x128xf32, #tpu.memory_space<vmem>>, vector<1x128xf32>
    tpu.vector_store %arg10[%c0_62, %c0_63], %73 {strides = array<i32>} : memref<1x128xf32, #tpu.memory_space<vmem>>, vector<1x128xf32>,
    %c0_64 = arith.constant 0 : index
    %c0_65 = arith.constant 0 : index
    %75 = vector.load %arg11[%c0_64, %c0_65] : memref<1x128xf32, #tpu.memory_space<vmem>>, vector<1x128xf32>
    %76 = arith.mulf %68, %68 : vector<256x128xf32>
    %cst_66 = arith.constant dense<0.000000e+00> : vector<128xf32>
    %77 = vector.multi_reduction <add>, %76, %cst_66 [0] : vector<256x128xf32> to vector<128xf32>
    %78 = vector.shape_cast %77 : vector<128xf32> to vector<1x128xf32>
    %79 = arith.addf %75, %78 : vector<1x128xf32>
    %c0_67 = arith.constant 0 : index
    %c0_68 = arith.constant 0 : index
    %80 = vector.load %arg11[%c0_67, %c0_68] : memref<1x128xf32, #tpu.memory_space<vmem>>, vector<1x128xf32>
    tpu.vector_store %arg11[%c0_67, %c0_68], %79 {strides = array<i32>} : memref<1x128xf32, #tpu.memory_space<vmem>>, vector<1x128xf32>,
    %c1_i32 = arith.constant 1 : i32
    %81 = arith.cmpi eq, %arg0, %c1_i32 : i32
    %c0_i32_69 = arith.constant 0 : i32
    %82 = arith.cmpi eq, %arg1, %c0_i32_69 : i32
    %83 = arith.andi %81, %82 : i1
    %84 = arith.extui %83 : i1 to i32
    %c0_i32_70 = arith.constant 0 : i32
    %85 = arith.cmpi ne, %84, %c0_i32_70 : i32
    scf.if %85 {
      %c0_71 = arith.constant 0 : index
      %c0_72 = arith.constant 0 : index
      %86 = vector.load %arg10[%c0_71, %c0_72] : memref<1x128xf32, #tpu.memory_space<vmem>>, vector<1x128xf32>
      %cst_73 = arith.constant 0.001953125 : f32
      %87 = vector.broadcast %cst_73 : f32 to vector<1x128xf32>
      %88 = arith.mulf %86, %87 : vector<1x128xf32>
      %c0_74 = arith.constant 0 : index
      %c0_75 = arith.constant 0 : index
      %89 = vector.load %arg11[%c0_74, %c0_75] : memref<1x128xf32, #tpu.memory_space<vmem>>, vector<1x128xf32>
      %cst_76 = arith.constant 0.001953125 : f32
      %90 = vector.broadcast %cst_76 : f32 to vector<1x128xf32>
      %91 = arith.mulf %89, %90 : vector<1x128xf32>
      %92 = arith.mulf %88, %88 : vector<1x128xf32>
      %93 = arith.subf %91, %92 : vector<1x128xf32>
      %cst_77 = arith.constant 0.000000e+00 : f32
      %94 = vector.broadcast %cst_77 : f32 to vector<1x128xf32>
      %95 = arith.maximumf %93, %94 : vector<1x128xf32>
      %cst_78 = arith.constant 9.99999974E-6 : f32
      %96 = vector.broadcast %cst_78 : f32 to vector<1x128xf32>
      %97 = arith.addf %95, %96 : vector<1x128xf32>
      %98 = math.rsqrt %97 : vector<1x128xf32>
      %c0_79 = arith.constant 0 : index
      %c0_80 = arith.constant 0 : index
      %99 = vector.load %arg4[%c0_79, %c0_80] : memref<1x128xf32, #tpu.memory_space<vmem>>, vector<1x128xf32>
      %100 = arith.mulf %99, %98 : vector<1x128xf32>
      %c0_81 = arith.constant 0 : index
      %c0_82 = arith.constant 0 : index
      %101 = vector.load %arg7[%c0_81, %c0_82] : memref<2x128xf32, #tpu.memory_space<vmem>>, vector<1x128xf32>
      tpu.vector_store %arg7[%c0_81, %c0_82], %100 {strides = array<i32>} : memref<2x128xf32, #tpu.memory_space<vmem>>, vector<1x128xf32>,
      %c0_83 = arith.constant 0 : index
      %c0_84 = arith.constant 0 : index
      %102 = vector.load %arg5[%c0_83, %c0_84] : memref<1x128xf32, #tpu.memory_space<vmem>>, vector<1x128xf32>
      %103 = arith.mulf %88, %100 : vector<1x128xf32>
      %104 = arith.subf %102, %103 : vector<1x128xf32>
      %c1_85 = arith.constant 1 : index
      %c0_86 = arith.constant 0 : index
      %105 = vector.load %arg7[%c1_85, %c0_86] : memref<2x128xf32, #tpu.memory_space<vmem>>, vector<1x128xf32>
      tpu.vector_store %arg7[%c1_85, %c0_86], %104 {strides = array<i32>} : memref<2x128xf32, #tpu.memory_space<vmem>>, vector<1x128xf32>,
    } else {
    }
    return
  }
  func.func @transform_1(%arg0: i32, %arg1: i32) -> (i32, i32, i32, i32) {
    %c0_i32 = arith.constant 0 : i32
    %c0_i32_0 = arith.constant 0 : i32
    %c0_i32_1 = arith.constant 0 : i32
    %c0_i32_2 = arith.constant 0 : i32
    %c0_i32_3 = arith.constant 0 : i32
    return %c0_i32, %c0_i32_0, %c0_i32_1, %c0_i32_2 : i32, i32, i32, i32
  }
  func.func @transform_2(%arg0: i32, %arg1: i32) -> (i32, i32) {
    %c0_i32 = arith.constant 0 : i32
    %c0_i32_0 = arith.constant 0 : i32
    %c0_i32_1 = arith.constant 0 : i32
    return %c0_i32, %c0_i32_0 : i32, i32
  }
  func.func @transform_3(%arg0: i32, %arg1: i32) -> (i32, i32) {
    %c0_i32 = arith.constant 0 : i32
    %c0_i32_0 = arith.constant 0 : i32
    %c0_i32_1 = arith.constant 0 : i32
    return %c0_i32, %c0_i32_0 : i32, i32
  }
  func.func @transform_4(%arg0: i32, %arg1: i32) -> (i32, i32) {
    %c1_i32 = arith.constant 1 : i32
    %0 = arith.muli %arg0, %c1_i32 : i32
    %1 = arith.addi %0, %arg1 : i32
    %c0_i32 = arith.constant 0 : i32
    %c0_i32_0 = arith.constant 0 : i32
    return %1, %c0_i32 : i32, i32
  }
  func.func @transform_5(%arg0: i32, %arg1: i32) -> (i32, i32) {
    %c0_i32 = arith.constant 0 : i32
    %c0_i32_0 = arith.constant 0 : i32
    %c0_i32_1 = arith.constant 0 : i32
    return %c0_i32, %c0_i32_0 : i32, i32
  }
}

</mosaic_0001>

<bundles_post_ra>
// kernel: double_conv.5
= control target key start
LH: loop header
LB: loop body
LE: loop exit
PB: predicated region body
PF: predicated region fallthrough
CT: control target
= control target key end

     0   :  { %s884_s0 = inlined_call_operand.vmem [shape: f32[512,128], index: 0, kind: input, shape index: {}]   ;;  %s885_s1 = inlined_call_operand.vmem [shape: f32[2,128], index: 1, kind: input, shape index: {}]   ;;  %s886_s2 = inlined_call_operand.vmem [shape: f32[512,128], index: 2, kind: output, shape index: {}]  }
   0x1   :  { %v365_v0 = vld [vmem:[%s885_s1] ss:$0 sm:$0xff]  ;;  %v370_v1 = vld [vmem:[%s885_s1 + $0x1] ss:$0 sm:$0xff]  ;;  %v14_v4 = vld [vmem:[%s884_s0 + $0x8] sm:$0xff] }
   0x2   :  { %v13_v2 = vld [vmem:[%s884_s0] sm:$0xff]  ;;  %v15_v5 = vld [vmem:[%s884_s0 + $0x10] sm:$0xff]  ;;  %v16_v6 = vld [vmem:[%s884_s0 + $0x18] sm:$0xff]  ;;  %v82_v7 = vmul.f32 %v365_v0, %v14_v4 }
   0x3   :  { %v81_v3 = vmul.f32 %v365_v0, %v13_v2  ;;  %v83_v8 = vmul.f32 %v365_v0, %v15_v5  ;;  %v84_v9 = vmul.f32 %v365_v0, %v16_v6  ;;  %v17_v10 = vld [vmem:[%s884_s0 + $0x20] sm:$0xff]  ;;  %v18_v11 = vld [vmem:[%s884_s0 + $0x28] sm:$0xff]  ;;  %v19_v12 = vld [vmem:[%s884_s0 + $0x30] sm:$0xff] }
   0x4   :  { %v85_v14 = vmul.f32 %v365_v0, %v17_v10  ;;  %v86_v15 = vmul.f32 %v365_v0, %v18_v11  ;;  %v87_v16 = vmul.f32 %v365_v0, %v19_v12  ;;  %v20_v17 = vld [vmem:[%s884_s0 + $0x38] sm:$0xff]  ;;  %v150_v18 = vadd.f32 %v370_v1, %v82_v7  ;;  %v21_v22 = vld [vmem:[%s884_s0 + $0x40] sm:$0xff]  ;;  %v22_v27 = vld [vmem:[%s884_s0 + $0x48] sm:$0xff] }
   0x5   :  { %v149_v13 = vadd.f32 %v370_v1, %v81_v3  ;;  %v151_v19 = vadd.f32 %v370_v1, %v83_v8  ;;  %v152_v20 = vadd.f32 %v370_v1, %v84_v9  ;;  %v88_v21 = vmul.f32 %v365_v0, %v20_v17  ;;  %v23_v28 = vld [vmem:[%s884_s0 + $0x50] sm:$0xff]  ;;  %v24_v29 = vld [vmem:[%s884_s0 + $0x58] sm:$0xff]  ;;  %v25_v34 = vld [vmem:[%s884_s0 + $0x60] sm:$0xff] }
   0x6   :  { %v153_v24 = vadd.f32 %v370_v1, %v85_v14  ;;  %v154_v25 = vadd.f32 %v370_v1, %v86_v15  ;;  %v155_v26 = vadd.f32 %v370_v1, %v87_v16  ;;  %v214_v30 = vmax.f32 %v150_v18, 0.0  ;;  %v26_v35 = vld [vmem:[%s884_s0 + $0x68] sm:$0xff]  ;;  %v27_v36 = vld [vmem:[%s884_s0 + $0x70] sm:$0xff]  ;;  %v28_v41 = vld [vmem:[%s884_s0 + $0x78] sm:$0xff] }
   0x7   :  { %v213_v23 = vmax.f32 %v149_v13, 0.0  ;;  %v215_v31 = vmax.f32 %v151_v19, 0.0  ;;  %v216_v32 = vmax.f32 %v152_v20, 0.0  ;;  %v156_v33 = vadd.f32 %v370_v1, %v88_v21  ;;  %v29_v54 = vld [vmem:[%s884_s0 + $0x80] sm:$0xff]  ;;  %v30_v59 = vld [vmem:[%s884_s0 + $0x88] sm:$0xff]  ;;  %v31_v60 = vld [vmem:[%s884_s0 + $0x90] sm:$0xff] }
   0x8   :  { %v217_v37 = vmax.f32 %v153_v24, 0.0  ;;  %v218_v38 = vmax.f32 %v154_v25, 0.0  ;;  %v219_v39 = vmax.f32 %v155_v26, 0.0  ;;  %v89_v40 = vmul.f32 %v365_v0, %v21_v22  ;;  %278 = vst [vmem:[%s886_s2 + $0x8] sm:$0xff] %v214_v30  ;;  %v32_v61 = vld [vmem:[%s884_s0 + $0x98] sm:$0xff]  ;;  %v33_v4 = vld [vmem:[%s884_s0 + $0xa0] sm:$0xff] }
   0x9   :  { %277 = vst [vmem:[%s886_s2] sm:$0xff] %v213_v23  ;;  %279 = vst [vmem:[%s886_s2 + $0x10] sm:$0xff] %v215_v31  ;;  %v220_v42 = vmax.f32 %v156_v33, 0.0  ;;  %v90_v43 = vmul.f32 %v365_v0, %v22_v27  ;;  %v91_v44 = vmul.f32 %v365_v0, %v23_v28  ;;  %v92_v45 = vmul.f32 %v365_v0, %v24_v29  ;;  %v34_v5 = vld [vmem:[%s884_s0 + $0xa8] sm:$0xff]  ;;  %v35_v6 = vld [vmem:[%s884_s0 + $0xb0] sm:$0xff] }
   0xa   :  { %280 = vst [vmem:[%s886_s2 + $0x18] sm:$0xff] %v216_v32  ;;  %281 = vst [vmem:[%s886_s2 + $0x20] sm:$0xff] %v217_v37  ;;  %v157_v46 = vadd.f32 %v370_v1, %v89_v40  ;;  %v93_v47 = vmul.f32 %v365_v0, %v25_v34  ;;  %v94_v48 = vmul.f32 %v365_v0, %v26_v35  ;;  %v36_v11 = vld [vmem:[%s884_s0 + $0xb8] sm:$0xff]  ;;  %v37_v24 = vld [vmem:[%s884_s0 + $0xc0] sm:$0xff] }
   0xb   :  { %282 = vst [vmem:[%s886_s2 + $0x28] sm:$0xff] %v218_v38  ;;  %283 = vst [vmem:[%s886_s2 + $0x30] sm:$0xff] %v219_v39  ;;  %v95_v49 = vmul.f32 %v365_v0, %v27_v36  ;;  %v158_v50 = vadd.f32 %v370_v1, %v90_v43  ;;  %v159_v51 = vadd.f32 %v370_v1, %v91_v44  ;;  %v38_v29 = vld [vmem:[%s884_s0 + $0xc8] sm:$0xff]  ;;  %v39_v30 = vld [vmem:[%s884_s0 + $0xd0] sm:$0xff] }
   0xc   :  { %284 = vst [vmem:[%s886_s2 + $0x38] sm:$0xff] %v220_v42  ;;  %v160_v52 = vadd.f32 %v370_v1, %v92_v45  ;;  %v96_v53 = vmul.f32 %v365_v0, %v28_v41  ;;  %v221_v55 = vmax.f32 %v157_v46, 0.0  ;;  %v161_v56 = vadd.f32 %v370_v1, %v93_v47  ;;  %v40_v31 = vld [vmem:[%s884_s0 + $0xd8] sm:$0xff]  ;;  %v41_v36 = vld [vmem:[%s884_s0 + $0xe0] sm:$0xff]  ;;  %v42_v37 = vld [vmem:[%s884_s0 + $0xe8] sm:$0xff] }
   0xd   :  { %v162_v57 = vadd.f32 %v370_v1, %v94_v48  ;;  %v163_v58 = vadd.f32 %v370_v1, %v95_v49  ;;  %v222_v62 = vmax.f32 %v158_v50, 0.0  ;;  %v223_v63 = vmax.f32 %v159_v51, 0.0  ;;  %v43_v38 = vld [vmem:[%s884_s0 + $0xf0] sm:$0xff]  ;;  %v44_v43 = vld [vmem:[%s884_s0 + $0xf8] sm:$0xff] }
   0xe   :  { %v224_v2 = vmax.f32 %v160_v52, 0.0  ;;  %v164_v3 = vadd.f32 %v370_v1, %v96_v53  ;;  %285 = vst [vmem:[%s886_s2 + $0x40] sm:$0xff] %v221_v55  ;;  %v225_v7 = vmax.f32 %v161_v56, 0.0  ;;  %v97_v10 = vmul.f32 %v365_v0, %v29_v54  ;;  %v45_v56 = vld [vmem:[%s884_s0 + $0x100] sm:$0xff] }
   0xf   :  { %v226_v8 = vmax.f32 %v162_v57, 0.0  ;;  %v227_v9 = vmax.f32 %v163_v58, 0.0  ;;  %286 = vst [vmem:[%s886_s2 + $0x48] sm:$0xff] %v222_v62  ;;  %287 = vst [vmem:[%s886_s2 + $0x50] sm:$0xff] %v223_v63  ;;  %v98_v13 = vmul.f32 %v365_v0, %v30_v59  ;;  %v99_v14 = vmul.f32 %v365_v0, %v31_v60  ;;  %v47_v62 = vld [vmem:[%s884_s0 + $0x110] sm:$0xff]  ;;  %v48_v63 = vld [vmem:[%s884_s0 + $0x118] sm:$0xff] }
  0x10   :  { %288 = vst [vmem:[%s886_s2 + $0x58] sm:$0xff] %v224_v2  ;;  %v228_v12 = vmax.f32 %v164_v3, 0.0  ;;  %v100_v15 = vmul.f32 %v365_v0, %v32_v61  ;;  %289 = vst [vmem:[%s886_s2 + $0x60] sm:$0xff] %v225_v7  ;;  %v165_v16 = vadd.f32 %v370_v1, %v97_v10  ;;  %v101_v17 = vmul.f32 %v365_v0, %v33_v4  ;;  %v46_v61 = vld [vmem:[%s884_s0 + $0x108] sm:$0xff] }
  0x11   :  { %290 = vst [vmem:[%s886_s2 + $0x68] sm:$0xff] %v226_v8  ;;  %291 = vst [vmem:[%s886_s2 + $0x70] sm:$0xff] %v227_v9  ;;  %v102_v18 = vmul.f32 %v365_v0, %v34_v5  ;;  %v103_v19 = vmul.f32 %v365_v0, %v35_v6  ;;  %v166_v20 = vadd.f32 %v370_v1, %v98_v13  ;;  %v49_v6 = vld [vmem:[%s884_s0 + $0x120] sm:$0xff]  ;;  %v50_v7 = vld [vmem:[%s884_s0 + $0x128] sm:$0xff] }
  0x12   :  { %292 = vst [vmem:[%s886_s2 + $0x78] sm:$0xff] %v228_v12  ;;  %v167_v21 = vadd.f32 %v370_v1, %v99_v14  ;;  %v168_v22 = vadd.f32 %v370_v1, %v100_v15  ;;  %v104_v23 = vmul.f32 %v365_v0, %v36_v11  ;;  %v229_v25 = vmax.f32 %v165_v16, 0.0  ;;  %v51_v8 = vld [vmem:[%s884_s0 + $0x130] sm:$0xff]  ;;  %v52_v13 = vld [vmem:[%s884_s0 + $0x138] sm:$0xff] }
  0x13   :  { %v169_v26 = vadd.f32 %v370_v1, %v101_v17  ;;  %v170_v27 = vadd.f32 %v370_v1, %v102_v18  ;;  %v171_v28 = vadd.f32 %v370_v1, %v103_v19  ;;  %v230_v32 = vmax.f32 %v166_v20, 0.0 }
  0x14   :  { %v231_v33 = vmax.f32 %v167_v21, 0.0  ;;  %v232_v34 = vmax.f32 %v168_v22, 0.0  ;;  %v172_v35 = vadd.f32 %v370_v1, %v104_v23  ;;  %293 = vst [vmem:[%s886_s2 + $0x80] sm:$0xff] %v229_v25  ;;  %v105_v42 = vmul.f32 %v365_v0, %v37_v24 }
  0x15   :  { %v233_v39 = vmax.f32 %v169_v26, 0.0  ;;  %v234_v40 = vmax.f32 %v170_v27, 0.0  ;;  %v235_v41 = vmax.f32 %v171_v28, 0.0  ;;  %294 = vst [vmem:[%s886_s2 + $0x88] sm:$0xff] %v230_v32  ;;  %v106_v45 = vmul.f32 %v365_v0, %v38_v29  ;;  %v53_v26 = vld [vmem:[%s884_s0 + $0x140] sm:$0xff]  ;;  %v55_v32 = vld [vmem:[%s884_s0 + $0x150] sm:$0xff] }
  0x16   :  { %295 = vst [vmem:[%s886_s2 + $0x90] sm:$0xff] %v231_v33  ;;  %296 = vst [vmem:[%s886_s2 + $0x98] sm:$0xff] %v232_v34  ;;  %v236_v44 = vmax.f32 %v172_v35, 0.0  ;;  %v107_v46 = vmul.f32 %v365_v0, %v39_v30  ;;  %v108_v47 = vmul.f32 %v365_v0, %v40_v31  ;;  %v173_v48 = vadd.f32 %v370_v1, %v105_v42  ;;  %v54_v31 = vld [vmem:[%s884_s0 + $0x148] sm:$0xff]  ;;  %v56_v33 = vld [vmem:[%s884_s0 + $0x158] sm:$0xff] }
  0x17   :  { %297 = vst [vmem:[%s886_s2 + $0xa0] sm:$0xff] %v233_v39  ;;  %298 = vst [vmem:[%s886_s2 + $0xa8] sm:$0xff] %v234_v40  ;;  %v109_v49 = vmul.f32 %v365_v0, %v41_v36  ;;  %v110_v50 = vmul.f32 %v365_v0, %v42_v37  ;;  %v111_v51 = vmul.f32 %v365_v0, %v43_v38  ;;  %v57_v38 = vld [vmem:[%s884_s0 + $0x160] sm:$0xff]  ;;  %v58_v39 = vld [vmem:[%s884_s0 + $0x168] sm:$0xff] }
  0x18   :  { %299 = vst [vmem:[%s886_s2 + $0xb0] sm:$0xff] %v235_v41  ;;  %300 = vst [vmem:[%s886_s2 + $0xb8] sm:$0xff] %v236_v44  ;;  %v174_v52 = vadd.f32 %v370_v1, %v106_v45  ;;  %v175_v53 = vadd.f32 %v370_v1, %v107_v46  ;;  %v176_v54 = vadd.f32 %v370_v1, %v108_v47  ;;  %v237_v57 = vmax.f32 %v173_v48, 0.0  ;;  %v59_v40 = vld [vmem:[%s884_s0 + $0x170] sm:$0xff]  ;;  %v60_v45 = vld [vmem:[%s884_s0 + $0x178] sm:$0xff] }
  0x19   :  { %v112_v55 = vmul.f32 %v365_v0, %v44_v43  ;;  %v177_v58 = vadd.f32 %v370_v1, %v109_v49  ;;  %v178_v59 = vadd.f32 %v370_v1, %v110_v50  ;;  %v179_v60 = vadd.f32 %v370_v1, %v111_v51 }
  0x1a   :  { %v238_v2 = vmax.f32 %v174_v52, 0.0  ;;  %v239_v3 = vmax.f32 %v175_v53, 0.0  ;;  %v240_v4 = vmax.f32 %v176_v54, 0.0  ;;  %301 = vst [vmem:[%s886_s2 + $0xc0] sm:$0xff] %v237_v57  ;;  %v113_v12 = vmul.f32 %v365_v0, %v45_v56 }
  0x1b   :  { %v180_v5 = vadd.f32 %v370_v1, %v112_v55  ;;  %v241_v9 = vmax.f32 %v177_v58, 0.0  ;;  %v242_v10 = vmax.f32 %v178_v59, 0.0  ;;  %v243_v11 = vmax.f32 %v179_v60, 0.0  ;;  %v61_v58 = vld [vmem:[%s884_s0 + $0x180] sm:$0xff] }
  0x1c   :  { %302 = vst [vmem:[%s886_s2 + $0xc8] sm:$0xff] %v238_v2  ;;  %303 = vst [vmem:[%s886_s2 + $0xd0] sm:$0xff] %v239_v3  ;;  %v114_v15 = vmul.f32 %v365_v0, %v46_v61  ;;  %v115_v16 = vmul.f32 %v365_v0, %v47_v62  ;;  %v116_v17 = vmul.f32 %v365_v0, %v48_v63  ;;  %v62_v63 = vld [vmem:[%s884_s0 + $0x188] sm:$0xff]  ;;  %v63_v2 = vld [vmem:[%s884_s0 + $0x190] sm:$0xff] }
  0x1d   :  { %304 = vst [vmem:[%s886_s2 + $0xd8] sm:$0xff] %v240_v4  ;;  %v244_v14 = vmax.f32 %v180_v5, 0.0  ;;  %305 = vst [vmem:[%s886_s2 + $0xe0] sm:$0xff] %v241_v9  ;;  %v181_v18 = vadd.f32 %v370_v1, %v113_v12  ;;  %v117_v19 = vmul.f32 %v365_v0, %v49_v6  ;;  %v118_v20 = vmul.f32 %v365_v0, %v50_v7  ;;  %v64_v3 = vld [vmem:[%s884_s0 + $0x198] sm:$0xff]  ;;  %v66_v9 = vld [vmem:[%s884_s0 + $0x1a8] sm:$0xff] }
  0x1e   :  { %306 = vst [vmem:[%s886_s2 + $0xe8] sm:$0xff] %v242_v10  ;;  %307 = vst [vmem:[%s886_s2 + $0xf0] sm:$0xff] %v243_v11  ;;  %v119_v21 = vmul.f32 %v365_v0, %v51_v8  ;;  %v182_v22 = vadd.f32 %v370_v1, %v114_v15  ;;  %v183_v23 = vadd.f32 %v370_v1, %v115_v16  ;;  %v65_v8 = vld [vmem:[%s884_s0 + $0x1a0] sm:$0xff]  ;;  %v67_v10 = vld [vmem:[%s884_s0 + $0x1b0] sm:$0xff] }
  0x1f   :  { %308 = vst [vmem:[%s886_s2 + $0xf8] sm:$0xff] %v244_v14  ;;  %v184_v24 = vadd.f32 %v370_v1, %v116_v17  ;;  %v120_v25 = vmul.f32 %v365_v0, %v52_v13  ;;  %v245_v27 = vmax.f32 %v181_v18, 0.0  ;;  %v185_v28 = vadd.f32 %v370_v1, %v117_v19  ;;  %v68_v15 = vld [vmem:[%s884_s0 + $0x1b8] sm:$0xff] }
  0x20   :  { %v186_v29 = vadd.f32 %v370_v1, %v118_v20  ;;  %v187_v30 = vadd.f32 %v370_v1, %v119_v21  ;;  %v246_v34 = vmax.f32 %v182_v22, 0.0  ;;  %v247_v35 = vmax.f32 %v183_v23, 0.0 }
  0x21   :  { %v248_v36 = vmax.f32 %v184_v24, 0.0  ;;  %v188_v37 = vadd.f32 %v370_v1, %v120_v25  ;;  %309 = vst [vmem:[%s886_s2 + $0x100] sm:$0xff] %v245_v27  ;;  %v249_v41 = vmax.f32 %v185_v28, 0.0  ;;  %v121_v44 = vmul.f32 %v365_v0, %v53_v26  ;;  %v69_v28 = vld [vmem:[%s884_s0 + $0x1c0] sm:$0xff] }
  0x22   :  { %v250_v42 = vmax.f32 %v186_v29, 0.0  ;;  %v251_v43 = vmax.f32 %v187_v30, 0.0  ;;  %310 = vst [vmem:[%s886_s2 + $0x108] sm:$0xff] %v246_v34  ;;  %311 = vst [vmem:[%s886_s2 + $0x110] sm:$0xff] %v247_v35  ;;  %v122_v47 = vmul.f32 %v365_v0, %v54_v31  ;;  %v123_v48 = vmul.f32 %v365_v0, %v55_v32  ;;  %v71_v34 = vld [vmem:[%s884_s0 + $0x1d0] sm:$0xff]  ;;  %v72_v35 = vld [vmem:[%s884_s0 + $0x1d8] sm:$0xff] }
  0x23   :  { %312 = vst [vmem:[%s886_s2 + $0x118] sm:$0xff] %v248_v36  ;;  %v252_v46 = vmax.f32 %v188_v37, 0.0  ;;  %v124_v49 = vmul.f32 %v365_v0, %v56_v33  ;;  %313 = vst [vmem:[%s886_s2 + $0x120] sm:$0xff] %v249_v41  ;;  %v189_v50 = vadd.f32 %v370_v1, %v121_v44  ;;  %v125_v51 = vmul.f32 %v365_v0, %v57_v38  ;;  %v70_v33 = vld [vmem:[%s884_s0 + $0x1c8] sm:$0xff] }
  0x24   :  { %314 = vst [vmem:[%s886_s2 + $0x128] sm:$0xff] %v250_v42  ;;  %315 = vst [vmem:[%s886_s2 + $0x130] sm:$0xff] %v251_v43  ;;  %v126_v52 = vmul.f32 %v365_v0, %v58_v39  ;;  %v127_v53 = vmul.f32 %v365_v0, %v59_v40  ;;  %v190_v54 = vadd.f32 %v370_v1, %v122_v47  ;;  %v73_v40 = vld [vmem:[%s884_s0 + $0x1e0] sm:$0xff]  ;;  %v74_v41 = vld [vmem:[%s884_s0 + $0x1e8] sm:$0xff] }
  0x25   :  { %316 = vst [vmem:[%s886_s2 + $0x138] sm:$0xff] %v252_v46  ;;  %v191_v55 = vadd.f32 %v370_v1, %v123_v48  ;;  %v192_v56 = vadd.f32 %v370_v1, %v124_v49  ;;  %v128_v57 = vmul.f32 %v365_v0, %v60_v45  ;;  %v253_v59 = vmax.f32 %v189_v50, 0.0  ;;  %v75_v42 = vld [vmem:[%s884_s0 + $0x1f0] sm:$0xff]  ;;  %v76_v47 = vld [vmem:[%s884_s0 + $0x1f8] sm:$0xff] }
  0x26   :  { %v193_v60 = vadd.f32 %v370_v1, %v125_v51  ;;  %v194_v61 = vadd.f32 %v370_v1, %v126_v52  ;;  %v195_v62 = vadd.f32 %v370_v1, %v127_v53  ;;  %v254_v4 = vmax.f32 %v190_v54, 0.0 }
  0x27   :  { %v255_v5 = vmax.f32 %v191_v55, 0.0  ;;  %v256_v6 = vmax.f32 %v192_v56, 0.0  ;;  %v196_v7 = vadd.f32 %v370_v1, %v128_v57  ;;  %317 = vst [vmem:[%s886_s2 + $0x140] sm:$0xff] %v253_v59  ;;  %v129_v14 = vmul.f32 %v365_v0, %v61_v58 }
  0x28   :  { %v257_v11 = vmax.f32 %v193_v60, 0.0  ;;  %v258_v12 = vmax.f32 %v194_v61, 0.0  ;;  %v259_v13 = vmax.f32 %v195_v62, 0.0  ;;  %318 = vst [vmem:[%s886_s2 + $0x148] sm:$0xff] %v254_v4  ;;  %v130_v17 = vmul.f32 %v365_v0, %v62_v63 }
  0x29   :  { %319 = vst [vmem:[%s886_s2 + $0x150] sm:$0xff] %v255_v5  ;;  %320 = vst [vmem:[%s886_s2 + $0x158] sm:$0xff] %v256_v6  ;;  %v260_v16 = vmax.f32 %v196_v7, 0.0  ;;  %v131_v18 = vmul.f32 %v365_v0, %v63_v2  ;;  %v132_v19 = vmul.f32 %v365_v0, %v64_v3  ;;  %v197_v20 = vadd.f32 %v370_v1, %v129_v14 }
  0x2a   :  { %321 = vst [vmem:[%s886_s2 + $0x160] sm:$0xff] %v257_v11  ;;  %322 = vst [vmem:[%s886_s2 + $0x168] sm:$0xff] %v258_v12  ;;  %v133_v21 = vmul.f32 %v365_v0, %v65_v8  ;;  %v134_v22 = vmul.f32 %v365_v0, %v66_v9  ;;  %v135_v23 = vmul.f32 %v365_v0, %v67_v10 }
  0x2b   :  { %323 = vst [vmem:[%s886_s2 + $0x170] sm:$0xff] %v259_v13  ;;  %324 = vst [vmem:[%s886_s2 + $0x178] sm:$0xff] %v260_v16  ;;  %v198_v24 = vadd.f32 %v370_v1, %v130_v17  ;;  %v199_v25 = vadd.f32 %v370_v1, %v131_v18  ;;  %v200_v26 = vadd.f32 %v370_v1, %v132_v19  ;;  %v261_v29 = vmax.f32 %v197_v20, 0.0 }
  0x2c   :  { %v136_v27 = vmul.f32 %v365_v0, %v68_v15  ;;  %v201_v30 = vadd.f32 %v370_v1, %v133_v21  ;;  %v202_v31 = vadd.f32 %v370_v1, %v134_v22  ;;  %v203_v32 = vadd.f32 %v370_v1, %v135_v23 }
  0x2d   :  { %v262_v36 = vmax.f32 %v198_v24, 0.0  ;;  %v263_v37 = vmax.f32 %v199_v25, 0.0  ;;  %v264_v38 = vmax.f32 %v200_v26, 0.0  ;;  %325 = vst [vmem:[%s886_s2 + $0x180] sm:$0xff] %v261_v29  ;;  %v137_v46 = vmul.f32 %v365_v0, %v69_v28 }
  0x2e   :  { %v204_v39 = vadd.f32 %v370_v1, %v136_v27  ;;  %v265_v43 = vmax.f32 %v201_v30, 0.0  ;;  %v266_v44 = vmax.f32 %v202_v31, 0.0  ;;  %v267_v45 = vmax.f32 %v203_v32, 0.0 }
  0x2f   :  { %326 = vst [vmem:[%s886_s2 + $0x188] sm:$0xff] %v262_v36  ;;  %327 = vst [vmem:[%s886_s2 + $0x190] sm:$0xff] %v263_v37  ;;  %v138_v49 = vmul.f32 %v365_v0, %v70_v33  ;;  %v139_v50 = vmul.f32 %v365_v0, %v71_v34  ;;  %v140_v51 = vmul.f32 %v365_v0, %v72_v35 }
  0x30   :  { %328 = vst [vmem:[%s886_s2 + $0x198] sm:$0xff] %v264_v38  ;;  %v268_v48 = vmax.f32 %v204_v39, 0.0  ;;  %329 = vst [vmem:[%s886_s2 + $0x1a0] sm:$0xff] %v265_v43  ;;  %v205_v52 = vadd.f32 %v370_v1, %v137_v46  ;;  %v141_v53 = vmul.f32 %v365_v0, %v73_v40  ;;  %v142_v54 = vmul.f32 %v365_v0, %v74_v41 }
  0x31   :  { %330 = vst [vmem:[%s886_s2 + $0x1a8] sm:$0xff] %v266_v44  ;;  %331 = vst [vmem:[%s886_s2 + $0x1b0] sm:$0xff] %v267_v45  ;;  %v143_v55 = vmul.f32 %v365_v0, %v75_v42  ;;  %v206_v56 = vadd.f32 %v370_v1, %v138_v49  ;;  %v207_v57 = vadd.f32 %v370_v1, %v139_v50 }
  0x32   :  { %332 = vst [vmem:[%s886_s2 + $0x1b8] sm:$0xff] %v268_v48  ;;  %v208_v58 = vadd.f32 %v370_v1, %v140_v51  ;;  %v144_v59 = vmul.f32 %v365_v0, %v76_v47  ;;  %v269_v60 = vmax.f32 %v205_v52, 0.0  ;;  %v209_v61 = vadd.f32 %v370_v1, %v141_v53 }
  0x33   :  { %v210_v62 = vadd.f32 %v370_v1, %v142_v54  ;;  %v211_v63 = vadd.f32 %v370_v1, %v143_v55  ;;  %v270_v2 = vmax.f32 %v206_v56, 0.0  ;;  %v271_v3 = vmax.f32 %v207_v57, 0.0 }
  0x34   :  { %v272_v4 = vmax.f32 %v208_v58, 0.0  ;;  %v212_v5 = vadd.f32 %v370_v1, %v144_v59  ;;  %333 = vst [vmem:[%s886_s2 + $0x1c0] sm:$0xff] %v269_v60  ;;  %v273_v6 = vmax.f32 %v209_v61, 0.0 }
  0x35   :  { %v274_v7 = vmax.f32 %v210_v62, 0.0  ;;  %v275_v8 = vmax.f32 %v211_v63, 0.0  ;;  %334 = vst [vmem:[%s886_s2 + $0x1c8] sm:$0xff] %v270_v2  ;;  %335 = vst [vmem:[%s886_s2 + $0x1d0] sm:$0xff] %v271_v3 }
  0x36   :  { %336 = vst [vmem:[%s886_s2 + $0x1d8] sm:$0xff] %v272_v4  ;;  %v276_v0 = vmax.f32 %v212_v5, 0.0  ;;  %337 = vst [vmem:[%s886_s2 + $0x1e0] sm:$0xff] %v273_v6 }
  0x37   :  { %338 = vst [vmem:[%s886_s2 + $0x1e8] sm:$0xff] %v274_v7  ;;  %339 = vst [vmem:[%s886_s2 + $0x1f0] sm:$0xff] %v275_v8 }
  0x38   :  { %340 = vst [vmem:[%s886_s2 + $0x1f8] sm:$0xff] %v276_v0 }

// kernel: double_conv.4
= control target key start
LH: loop header
LB: loop body
LE: loop exit
PB: predicated region body
PF: predicated region fallthrough
CT: control target
= control target key end

     0   :  { %s5450_s18 = smov 0   ;;  %s5452_s19 = smov 0   ;;  %s7423_s0 = inlined_call_operand.vmem [shape: f32[2,18,18,128], index: 0, kind: input, shape index: {}]   ;;  %s7424_s1 = inlined_call_operand.vmem [shape: f32[3,3,128,128], index: 1, kind: input, shape index: {}]   ;;  %s7425_s2 = inlined_call_operand.vmem [shape: f32[1,128], index: 2, kind: input, shape index: {}]   ;;  %s7426_s3 = inlined_call_operand.vmem [shape: f32[1,128], index: 3, kind: input, shape index: {}]   ;;  %s7427_s4 = inlined_call_operand.vmem [shape: f32[512,128], index: 4, kind: output, shape index: {0}]   ;;  %s7428_s5 = inlined_call_operand.vmem [shape: f32[2,128], index: 5, kind: output, shape index: {1}]  }
   0x1   :  { %s5454_s20 = smov 0  }
   0x2 LB: > { %s28_s21 = sadd.s32 1, %s5413_s19  ;;  %p4025_p0 = scmp.ge.s32.totalorder %s5417_s20, 1  ;;  %s5417_s20 = sphi %s5454_s20, %s16_s20   ;;  %s5413_s19 = sphi %s5452_s19, %s7651_s19   ;;  %s5409_s18 = sphi %s5450_s18, %s7650_s18  }
   0x3   : > { %p30_p1 = scmp.ge.s32.totalorder %s28_s21, 2  ;;  %p165_p2 = scmp.lt.s32.totalorder %s5417_s20, 3 }
   0x5   : > { %s7653_s21 = smov (%p30_p1, %s28_s21), 0  ;;  %p166_p3 = pnand %p4025_p0, %p165_p2 }
   0x7   : > { %169 = sbr.rel (%p166_p3) target bundleno = 644 (0x284), region = 32 }
   0xc   : > { %s4026_s22 = sshll.u32 %s5409_s18, 5  ;;  %s197_s23 = smul.u32 432, %s5409_s18 }
   0xd   : > { %p189_p4 = scmp.lt.s32.totalorder %s4026_s22, 63 }
   0xe   : > { %s5475_s26 = scalar_lea.vmem %s7423_s0, %s197_s23 }
   0xf   : > { %s7655_s22 = smov (!%p189_p4, %s4026_s22), 63  ;;  %v272_v0 = vld [vmem:[%s5475_s26] sm:$0xff]  ;;  %v274_v1 = vld [vmem:[%s5475_s26 + $0x8] sm:$0xff]  ;;  %v276_v2 = vld [vmem:[%s5475_s26 + $0x18] sm:$0xff] }
  0x10   : > { %273 = vst [vmem:[#allocation2 + $0x108] sm:$0xff] %v272_v0  ;;  %275 = vst [vmem:[#allocation2 + $0x138] sm:$0xff] %v274_v1  ;;  %v278_v3 = vld [vmem:[%s5475_s26 + $0x20] sm:$0xff]  ;;  %v280_v4 = vld [vmem:[%s5475_s26 + $0x30] sm:$0xff]  ;;  %s4027_s27 = sshll.u32 %s7655_s22, 3 }
  0x11   : > { %277 = vst [vmem:[#allocation2 + $0x18] sm:$0xff] %v276_v2  ;;  %v282_v5 = vld [vmem:[%s5475_s26 + $0x38] sm:$0xff]  ;;  %279 = vst [vmem:[#allocation2 + $0x68] sm:$0xff] %v278_v3  ;;  %v284_v6 = vld [vmem:[%s5475_s26 + $0x48] sm:$0xff]  ;;  %s5489_s30 = scalar_lea.vmem %s7427_s4, %s4027_s27 }
  0x12   : > { %281 = vst [vmem:[#allocation2 + $0xd0] sm:$0xff] %v280_v4  ;;  %283 = vst [vmem:[#allocation2 + $0x28] sm:$0xff] %v282_v5  ;;  %v286_v7 = vld [vmem:[%s5475_s26 + $0x50] sm:$0xff]  ;;  %v288_v8 = vld [vmem:[%s5475_s26 + $0x60] sm:$0xff] }
  0x13   : > { %285 = vst [vmem:[#allocation2 + $0x60] sm:$0xff] %v284_v6  ;;  %287 = vst [vmem:[#allocation2 + $0x118] sm:$0xff] %v286_v7  ;;  %v290_v9 = vld [vmem:[%s5475_s26 + $0x68] sm:$0xff]  ;;  %v292_v10 = vld [vmem:[%s5475_s26 + $0x78] sm:$0xff] }
  0x14   : > { %289 = vst [vmem:[#allocation2 + $0x188] sm:$0xff] %v288_v8  ;;  %v294_v11 = vld [vmem:[%s5475_s26 + $0x80] sm:$0xff]  ;;  %291 = vst [vmem:[#allocation2 + $0x198] sm:$0xff] %v290_v9  ;;  %v296_v12 = vld [vmem:[%s5475_s26 + $0x90] sm:$0xff] }
  0x15   : > { %293 = vst [vmem:[#allocation2 + $0xd8] sm:$0xff] %v292_v10  ;;  %295 = vst [vmem:[#allocation2 + $0x1a0] sm:$0xff] %v294_v11  ;;  %v298_v13 = vld [vmem:[%s5475_s26 + $0x98] sm:$0xff]  ;;  %v300_v14 = vld [vmem:[%s5475_s26 + $0xa8] sm:$0xff] }
  0x16   : > { %297 = vst [vmem:[#allocation2 + $0x88] sm:$0xff] %v296_v12  ;;  %299 = vst [vmem:[#allocation2 + $0x180] sm:$0xff] %v298_v13  ;;  %v302_v15 = vld [vmem:[%s5475_s26 + $0xb0] sm:$0xff]  ;;  %v304_v16 = vld [vmem:[%s5475_s26 + $0xc0] sm:$0xff] }
  0x17   : > { %301 = vst [vmem:[#allocation2 + $0x80] sm:$0xff] %v300_v14  ;;  %v306_v17 = vld [vmem:[%s5475_s26 + $0xc8] sm:$0xff]  ;;  %303 = vst [vmem:[#allocation2 + $0x140] sm:$0xff] %v302_v15  ;;  %v308_v18 = vld [vmem:[%s5475_s26 + $0xd8] sm:$0xff] }
  0x18   : > { %305 = vst [vmem:[#allocation2 + $0x130] sm:$0xff] %v304_v16  ;;  %307 = vst [vmem:[#allocation2 + $0x40] sm:$0xff] %v306_v17  ;;  %v310_v19 = vld [vmem:[%s5475_s26 + $0xe0] sm:$0xff]  ;;  %v312_v20 = vld [vmem:[%s5475_s26 + $0xf0] sm:$0xff] }
  0x19   : > { %309 = vst [vmem:[#allocation2 + $0x58] sm:$0xff] %v308_v18  ;;  %311 = vst [vmem:[#allocation2 + $0xb0] sm:$0xff] %v310_v19  ;;  %v314_v21 = vld [vmem:[%s5475_s26 + $0xf8] sm:$0xff]  ;;  %v316_v22 = vld [vmem:[%s5475_s26 + $0x108] sm:$0xff] }
  0x1a   : > { %313 = vst [vmem:[#allocation2 + $0x190] sm:$0xff] %v312_v20  ;;  %v318_v23 = vld [vmem:[%s5475_s26 + $0x110] sm:$0xff]  ;;  %315 = vst [vmem:[#allocation2 + $0xb8] sm:$0xff] %v314_v21  ;;  %v320_v24 = vld [vmem:[%s5475_s26 + $0x120] sm:$0xff] }
  0x1b   : > { %317 = vst [vmem:[#allocation2 + $0xe0] sm:$0xff] %v316_v22  ;;  %319 = vst [vmem:[#allocation2 + $0x158] sm:$0xff] %v318_v23  ;;  %v322_v25 = vld [vmem:[%s5475_s26 + $0x128] sm:$0xff]  ;;  %v324_v26 = vld [vmem:[%s5475_s26 + $0x138] sm:$0xff] }
  0x1c   : > { %321 = vst [vmem:[#allocation2 + $0xc0] sm:$0xff] %v320_v24  ;;  %323 = vst [vmem:[#allocation2 + $0xf8] sm:$0xff] %v322_v25  ;;  %v326_v27 = vld [vmem:[%s5475_s26 + $0x140] sm:$0xff]  ;;  %v328_v28 = vld [vmem:[%s5475_s26 + $0x150] sm:$0xff] }
  0x1d   : > { %325 = vst [vmem:[#allocation2 + $0x38] sm:$0xff] %v324_v26  ;;  %v330_v29 = vld [vmem:[%s5475_s26 + $0x158] sm:$0xff]  ;;  %327 = vst [vmem:[#allocation2] sm:$0xff] %v326_v27  ;;  %v332_v30 = vld [vmem:[%s5475_s26 + $0x168] sm:$0xff] }
  0x1e   : > { %329 = vst [vmem:[#allocation2 + $0xe8] sm:$0xff] %v328_v28  ;;  %331 = vst [vmem:[#allocation2 + $0x110] sm:$0xff] %v330_v29  ;;  %v334_v31 = vld [vmem:[%s5475_s26 + $0x170] sm:$0xff]  ;;  %v336_v32 = vld [vmem:[%s5475_s26 + $0x180] sm:$0xff] }
  0x1f   : > { %333 = vst [vmem:[#allocation2 + $0x1a8] sm:$0xff] %v332_v30  ;;  %335 = vst [vmem:[#allocation2 + $0x70] sm:$0xff] %v334_v31  ;;  %v338_v33 = vld [vmem:[%s5475_s26 + $0x188] sm:$0xff]  ;;  %v340_v34 = vld [vmem:[%s5475_s26 + $0x198] sm:$0xff] }
  0x20   : > { %337 = vst [vmem:[#allocation2 + $0x78] sm:$0xff] %v336_v32  ;;  %v342_v35 = vld [vmem:[%s5475_s26 + $0x1a0] sm:$0xff]  ;;  %339 = vst [vmem:[#allocation2 + $0xf0] sm:$0xff] %v338_v33  ;;  %v4028_v36 = vld [vmem:[%s5475_s26 + $0x10] sm:$0x3] }
  0x21   : > { %341 = vst [vmem:[#allocation2 + $0x100] sm:$0xff] %v340_v34  ;;  %343 = vst [vmem:[#allocation2 + $0x178] sm:$0xff] %v342_v35  ;;  %v4029_v37 = vld [vmem:[%s5475_s26 + $0x28] sm:$0x3]  ;;  %v4030_v38 = vld [vmem:[%s5475_s26 + $0x40] sm:$0x3] }
  0x22   : > { %355 = vst [vmem:[#allocation2 + $0x120] sm:$0x3] %v4028_v36  ;;  %357 = vst [vmem:[#allocation2 + $0x160] sm:$0x3] %v4029_v37  ;;  %v4031_v39 = vld [vmem:[%s5475_s26 + $0x58] sm:$0x3] }
  0x23   : > { %359 = vst [vmem:[#allocation2 + $0x128] sm:$0x3] %v4030_v38  ;;  %v4032_v40 = vld [vmem:[%s5475_s26 + $0x70] sm:$0x3]  ;;  %v4033_v41 = vld [vmem:[%s5475_s26 + $0x88] sm:$0x3] }
  0x24   : > { %361 = vst [vmem:[#allocation2 + $0x168] sm:$0x3] %v4031_v39  ;;  %363 = vst [vmem:[#allocation2 + $0xa0] sm:$0x3] %v4032_v40  ;;  %v4034_v42 = vld [vmem:[%s5475_s26 + $0xa0] sm:$0x3] }
  0x25   : > { %365 = vst [vmem:[#allocation2 + $0x48] sm:$0x3] %v4033_v41  ;;  %v4035_v43 = vld [vmem:[%s5475_s26 + $0xb8] sm:$0x3]  ;;  %v4036_v44 = vld [vmem:[%s5475_s26 + $0xd0] sm:$0x3] }
  0x26   : > { %367 = vst [vmem:[#allocation2 + $0x170] sm:$0x3] %v4034_v42  ;;  %369 = vst [vmem:[#allocation2 + $0x20] sm:$0x3] %v4035_v43  ;;  %v4037_v45 = vld [vmem:[%s5475_s26 + $0xe8] sm:$0x3] }
  0x27   : > { %371 = vst [vmem:[#allocation2 + $0x8] sm:$0x3] %v4036_v44  ;;  %v4038_v46 = vld [vmem:[%s5475_s26 + $0x100] sm:$0x3]  ;;  %v4039_v47 = vld [vmem:[%s5475_s26 + $0x118] sm:$0x3] }
  0x28   : > { %373 = vst [vmem:[#allocation2 + $0x90] sm:$0x3] %v4037_v45  ;;  %375 = vst [vmem:[#allocation2 + $0xa8] sm:$0x3] %v4038_v46  ;;  %v4040_v48 = vld [vmem:[%s5475_s26 + $0x130] sm:$0x3] }
  0x29   : > { %377 = vst [vmem:[#allocation2 + $0x98] sm:$0x3] %v4039_v47  ;;  %v4041_v49 = vld [vmem:[%s5475_s26 + $0x148] sm:$0x3]  ;;  %v4042_v50 = vld [vmem:[%s5475_s26 + $0x160] sm:$0x3] }
  0x2a   : > { %379 = vst [vmem:[#allocation2 + $0x50] sm:$0x3] %v4040_v48  ;;  %381 = vst [vmem:[#allocation2 + $0x30] sm:$0x3] %v4041_v49  ;;  %v4043_v51 = vld [vmem:[%s5475_s26 + $0x178] sm:$0x3] }
  0x2b   : > { %383 = vst [vmem:[#allocation2 + $0xc8] sm:$0x3] %v4042_v50  ;;  %v4044_v52 = vld [vmem:[%s5475_s26 + $0x190] sm:$0x3]  ;;  %v4045_v53 = vld [vmem:[%s5475_s26 + $0x1a8] sm:$0x3] }
  0x2c   : > { %385 = vst [vmem:[#allocation2 + $0x150] sm:$0x3] %v4043_v51  ;;  %387 = vst [vmem:[#allocation2 + $0x10] sm:$0x3] %v4044_v52 }
  0x2d   : > { %389 = vst [vmem:[#allocation2 + $0x148] sm:$0x3] %v4045_v53 }
  0x2e   : > { %393 = vsyncadd [#allocation3], 5184  ;;  %p394_p5 = scmp.eq.s32.totalorder %s5409_s18, 0 }
  0x2f   : > { %v5419_v54 = vmov (%p394_p5), 0.0  }
  0x30   : > { %399 = sbr.rel (!%p394_p5) target bundleno = 53 (0x35), region = 73  ;;  %400 = vst [vmem:[#allocation4] sm:$0x1] (%p394_p5), %v5419_v54  ;;  %401 = vst [vmem:[#allocation5] sm:$0x1] (%p394_p5), %v5419_v54 }
  0x35 PF: > { %5405 = dma.done.wait [#allocation3], 5184 }
  0x36   : > { %5406 = vsyncadd [#allocation3], 4294962112  ;;  %v4062_v55 = vld [vmem:[%s7424_s1 + $0xf8] sm:$0xff]  ;;  %v4061_v56 = vld [vmem:[%s7424_s1 + $0xf0] sm:$0xff]  ;;  %vm518_vm0 = vcmask 1046528   ;;  %vm1098_vm1 = vcmask 1045504  }
  0x37   : > { %5333 = vmatprep.subr.mxu1 %v4062_v55  ;;  %4613 = vmatprep.subr.mxu0 %v4062_v55  ;;  %v4060_v57 = vld [vmem:[%s7424_s1 + $0xe8] sm:$0xff]  ;;  %v4059_v58 = vld [vmem:[%s7424_s1 + $0xe0] sm:$0xff]  ;;  %v4058_v59 = vld [vmem:[%s7424_s1 + $0xd8] sm:$0xff]  ;;  %p3915_p6 = scmp.eq.s32.totalorder %s5409_s18, 1 }
  0x38   : > { %5349 = vmatpush3.msra.mxu1 %v4062_v55  ;;  %4614 = vmatpush3.msra.mxu0 %v4062_v55  ;;  %v4057_v60 = vld [vmem:[%s7424_s1 + $0xd0] sm:$0xff]  ;;  %v4056_v61 = vld [vmem:[%s7424_s1 + $0xc8] sm:$0xff]  ;;  %v4055_v62 = vld [vmem:[%s7424_s1 + $0xc0] sm:$0xff] }
  0x39   : > { %5334 = vmatprep.subr.mxu1 %v4061_v56  ;;  %4615 = vmatprep.subr.mxu0 %v4061_v56  ;;  %v4054_v63 = vld [vmem:[%s7424_s1 + $0xb8] sm:$0xff]  ;;  %v4053_v0 = vld [vmem:[%s7424_s1 + $0xb0] sm:$0xff]  ;;  %v4052_v1 = vld [vmem:[%s7424_s1 + $0xa8] sm:$0xff] }
  0x3a   : > { %5350 = vmatpush3.msra.mxu1 %v4061_v56  ;;  %4616 = vmatpush3.msra.mxu0 %v4061_v56  ;;  %v4051_v2 = vld [vmem:[%s7424_s1 + $0xa0] sm:$0xff]  ;;  %v4050_v3 = vld [vmem:[%s7424_s1 + $0x98] sm:$0xff]  ;;  %v5576_v4 = vld [vmem:[#allocation2 + $0x130] sm:$0xff] }
  0x3b   : > { %5335 = vmatprep.subr.mxu1 %v4060_v57  ;;  %4617 = vmatprep.subr.mxu0 %v4060_v57  ;;  %v5578_v5 = vld [vmem:[#allocation2 + $0x40] sm:$0xff]  ;;  %v5580_v6 = vld [vmem:[#allocation2 + $0x108] sm:$0xff]  ;;  %v5582_v7 = vld [vmem:[#allocation2 + $0x138] sm:$0xff]  ;;  %v559_v10 = vrot.slane %v5576_v4, 1 }
  0x3c   : > { %5351 = vmatpush3.msra.mxu1 %v4060_v57  ;;  %4618 = vmatpush3.msra.mxu0 %v4060_v57  ;;  %v4049_v8 = vld [vmem:[%s7424_s1 + $0x90] sm:$0xff]  ;;  %v5587_v9 = vld [vmem:[#allocation2 + $0x8] sm:$0x3]  ;;  %v560_v11 = vrot.slane %v5578_v5, 1  ;;  %v5591_v12 = vld [vmem:[#allocation2 + $0x120] sm:$0x3] }
  0x3d   : > { %5336 = vmatprep.subr.mxu1 %v4059_v58  ;;  %4619 = vmatprep.subr.mxu0 %v4059_v58  ;;  %v4048_v13 = vld [vmem:[%s7424_s1 + $0x88] sm:$0xff]  ;;  %v519_v14 = vrot.slane %v5580_v6, 1  ;;  %v520_v15 = vrot.slane %v5582_v7, 1  ;;  %v562_v16 = vrot.slane %v5587_v9, 1  ;;  %v5599_v17 = vld [vmem:[#allocation2 + $0x58] sm:$0xff]  ;;  %v5601_v18 = vld [vmem:[#allocation2 + $0xb0] sm:$0xff] }
  0x3e   : > { %5352 = vmatpush3.msra.mxu1 %v4059_v58  ;;  %4620 = vmatpush3.msra.mxu0 %v4059_v58  ;;  %v4047_v19 = vld [vmem:[%s7424_s1 + $0x80] sm:$0xff]  ;;  %v522_v20 = vrot.slane %v5591_v12, 1  ;;  %v561_v21 = vsel %vm518_vm0, %v559_v10, %v560_v11  ;;  %v5608_v22 = vld [vmem:[#allocation2 + $0x18] sm:$0xff]  ;;  %v5610_v23 = vld [vmem:[#allocation2 + $0x68] sm:$0xff]  ;;  %v564_v26 = vrot.slane %v5599_v17, 1  ;;  %v565_v27 = vrot.slane %v5601_v18, 1 }
  0x3f   : > { %5337 = vmatprep.subr.mxu1 %v4058_v59  ;;  %4621 = vmatprep.subr.mxu0 %v4058_v59  ;;  %v5612_v24 = vld [vmem:[#allocation2 + $0x90] sm:$0x3]  ;;  %v521_v25 = vsel %vm518_vm0, %v519_v14, %v520_v15  ;;  %v563_v28 = vsel %vm518_vm0, %v560_v11, %v562_v16  ;;  %v469_v29 = vld [vmem:[%s7424_s1 + $0x78] sm:$0xff]  ;;  %v5621_v30 = vld [vmem:[#allocation2 + $0x160] sm:$0x3]  ;;  %v524_v33 = vrot.slane %v5608_v22, 1 }
  0x40   : > { %5353 = vmatpush3.msra.mxu1 %v4058_v59  ;;  %4622 = vmatpush3.msra.mxu0 %v4058_v59  ;;  %v523_v31 = vsel %vm518_vm0, %v520_v15, %v522_v20  ;;  %v4078_v32 = vld [vmem:[%s7424_s1 + $0x178] sm:$0xff]  ;;  %v5629_v34 = vrot.slane %v5610_v23, 1  ;;  %v567_v35 = vrot.slane %v5612_v24, 1  ;;  %v468_v36 = vld [vmem:[%s7424_s1 + $0x70] sm:$0xff]  ;;  %v566_v39 = vsel %vm518_vm0, %v564_v26, %v565_v27  ;;  %v5646_v43 = vld [vmem:[#allocation2 + $0x28] sm:$0xff] }
  0x41   : > { %5338 = vmatprep.subr.mxu1 %v4057_v60  ;;  %4623 = vmatprep.subr.mxu0 %v4057_v60  ;;  %v5635_v37 = vld [vmem:[#allocation2 + $0x190] sm:$0xff]  ;;  %v5637_v38 = vld [vmem:[#allocation2 + $0xb8] sm:$0xff]  ;;  %v527_v41 = vrot.slane %v5621_v30, 1  ;;  %v5648_v44 = vld [vmem:[#allocation2 + $0xa8] sm:$0x3]  ;;  %v5669_v54 = vrot.slane %v5646_v43, 1 }
  0x42   : > { %5354 = vmatpush3.msra.mxu1 %v4057_v60  ;;  %4624 = vmatpush3.msra.mxu0 %v4057_v60  ;;  %v4077_v40 = vld [vmem:[%s7424_s1 + $0x170] sm:$0xff]  ;;  %v5652_v45 = vsel %vm518_vm0, %v524_v33, %v5629_v34  ;;  %v568_v46 = vsel %vm518_vm0, %v565_v27, %v567_v35  ;;  %v569_v47 = vrot.slane %v5635_v37, 1  ;;  %v570_v48 = vrot.slane %v5637_v38, 1  ;;  %v467_v49 = vld [vmem:[%s7424_s1 + $0x68] sm:$0xff]  ;;  %v466_v56 = vld [vmem:[%s7424_s1 + $0x60] sm:$0xff] }
  0x43   : > { %5339 = vmatprep.subr.mxu1 %v4056_v61  ;;  %4625 = vmatprep.subr.mxu0 %v4056_v61  ;;  %v5644_v42 = vld [vmem:[#allocation2 + $0xd0] sm:$0xff]  ;;  %7469 = vst [vmem:[#allocation8_spill] sm:$0xff] %v5652_v45  ;;  %v5660_v50 = vld [vmem:[#allocation2 + $0x128] sm:$0x3]  ;;  %v528_v51 = vsel %vm518_vm0, %v5629_v34, %v527_v41  ;;  %7470 = vst [vmem:[#allocation9_spill] sm:$0xff] %v5669_v54  ;;  %v572_v55 = vrot.slane %v5648_v44, 1 }
  0x44   : > { %5355 = vmatpush3.msra.mxu1 %v4056_v61  ;;  %4626 = vmatpush3.msra.mxu0 %v4056_v61  ;;  %v4076_v52 = vld [vmem:[%s7424_s1 + $0x168] sm:$0xff]  ;;  %v529_v53 = vrot.slane %v5644_v42, 1  ;;  %v5676_v57 = vld [vmem:[#allocation2 + $0xe0] sm:$0xff]  ;;  %v5678_v58 = vld [vmem:[#allocation2 + $0x158] sm:$0xff]  ;;  %v571_v59 = vsel %vm518_vm0, %v569_v47, %v570_v48  ;;  %v532_v61 = vrot.slane %v5660_v50, 1 }
  0x45   : > { %5340 = vmatprep.subr.mxu1 %v4055_v62  ;;  %4627 = vmatprep.subr.mxu0 %v4055_v62  ;;  %v4075_v60 = vld [vmem:[%s7424_s1 + $0x160] sm:$0xff]  ;;  %v465_v10 = vld [vmem:[%s7424_s1 + $0x58] sm:$0xff]  ;;  %v5701_v11 = vld [vmem:[#allocation2 + $0x168] sm:$0x3] }
  0x46   : > { %5356 = vmatpush3.msra.mxu1 %v4055_v62  ;;  %4628 = vmatpush3.msra.mxu0 %v4055_v62  ;;  %v5685_v62 = vld [vmem:[#allocation2 + $0x60] sm:$0xff]  ;;  %v4074_v14 = vld [vmem:[%s7424_s1 + $0x158] sm:$0xff]  ;;  %v464_v20 = vld [vmem:[%s7424_s1 + $0x50] sm:$0xff] }
  0x47   : > { %5341 = vmatprep.subr.mxu1 %v4054_v63  ;;  %4629 = vmatprep.subr.mxu0 %v4054_v63  ;;  %v534_v15 = vrot.slane %v5685_v62, 1  ;;  %v4073_v27 = vld [vmem:[%s7424_s1 + $0x150] sm:$0xff]  ;;  %v5742_v41 = vld [vmem:[#allocation2 + $0xa0] sm:$0x3]  ;;  %v4072_v47 = vld [vmem:[%s7424_s1 + $0x148] sm:$0xff] }
  0x48   : > { %5357 = vmatpush3.msra.mxu1 %v4054_v63  ;;  %4630 = vmatpush3.msra.mxu0 %v4054_v63  ;;  %v5687_v63 = vld [vmem:[#allocation2 + $0x118] sm:$0xff] }
  0x49   : > { %5342 = vmatprep.subr.mxu1 %v4053_v0  ;;  %4631 = vmatprep.subr.mxu0 %v4053_v0  ;;  %v5710_v16 = vrot.slane %v5687_v63, 1 }
  0x4a   : > { %5358 = vmatpush3.msra.mxu1 %v4053_v0  ;;  %4632 = vmatpush3.msra.mxu0 %v4053_v0  ;;  %v5689_v0 = vld [vmem:[#allocation2 + $0x98] sm:$0x3] }
  0x4b   : > { %5343 = vmatprep.subr.mxu1 %v4052_v1  ;;  %4633 = vmatprep.subr.mxu0 %v4052_v1  ;;  %7472 = vst [vmem:[#allocation11_spill] sm:$0xff] %v5710_v16  ;;  %v5734_v33 = vsel %vm518_vm0, %v534_v15, %v5710_v16  ;;  %v461_v15 = vld [vmem:[%s7424_s1 + $0x38] sm:$0xff] }
  0x4c   : > { %5359 = vmatpush3.msra.mxu1 %v4052_v1  ;;  %4634 = vmatpush3.msra.mxu0 %v4052_v1  ;;  %v5693_v1 = vsel %vm518_vm0, %v529_v53, %v5669_v54  ;;  %7473 = vst [vmem:[#allocation12_spill] sm:$0xff] %v5734_v33  ;;  %v5758_v53 = vld [vmem:[#allocation2 + $0x38] sm:$0xff] }
  0x4d   : > { %5344 = vmatprep.subr.mxu1 %v4051_v2  ;;  %4635 = vmatprep.subr.mxu0 %v4051_v2  ;;  %7471 = vst [vmem:[#allocation10_spill] sm:$0xff] %v5693_v1 }
  0x4e   : > { %5360 = vmatpush3.msra.mxu1 %v4051_v2  ;;  %4636 = vmatpush3.msra.mxu0 %v4051_v2  ;;  %v573_v2 = vsel %vm518_vm0, %v570_v48, %v572_v55  ;;  %v5760_v55 = vld [vmem:[#allocation2] sm:$0xff] }
  0x4f   : > { %5345 = vmatprep.subr.mxu1 %v4050_v3  ;;  %4637 = vmatprep.subr.mxu0 %v4050_v3 }
  0x50   : > { %5361 = vmatpush3.msra.mxu1 %v4050_v3  ;;  %4638 = vmatpush3.msra.mxu0 %v4050_v3  ;;  %v574_v3 = vrot.slane %v5676_v57, 1 }
  0x51   : > { %5346 = vmatprep.subr.mxu1 %v4049_v8  ;;  %4639 = vmatprep.subr.mxu0 %v4049_v8 }
  0x52   : > { %5362 = vmatpush3.msra.mxu1 %v4049_v8  ;;  %4640 = vmatpush3.msra.mxu0 %v4049_v8  ;;  %v575_v8 = vrot.slane %v5678_v58, 1 }
  0x53   : > { %5347 = vmatprep.subr.mxu1 %v4048_v13  ;;  %4641 = vmatprep.subr.mxu0 %v4048_v13 }
  0x54   : > { %5363 = vmatpush3.msra.mxu1 %v4048_v13  ;;  %4642 = vmatpush3.msra.mxu0 %v4048_v13  ;;  %v533_v13 = vsel %vm518_vm0, %v5669_v54, %v532_v61  ;;  %v576_v26 = vsel %vm518_vm0, %v574_v3, %v575_v8  ;;  %v5767_v61 = vld [vmem:[#allocation2 + $0xd8] sm:$0xff]  ;;  %v5771_v3 = vld [vmem:[#allocation2 + $0x30] sm:$0x3] }
  0x55   : > { %5348 = vmatprep.subr.mxu1 %v4047_v19  ;;  %4643 = vmatprep.subr.mxu0 %v4047_v19 }
  0x56   : > { %5364 = vmatpush3.msra.mxu1 %v4047_v19  ;;  %4669 = vmatprep.mubr.f32.mxu1 %v561_v21  ;;  %v5717_v21 = vld [vmem:[#allocation2 + $0xc0] sm:$0xff] }
  0x57   : > { %4644 = vmatpush3.msra.mxu0 %v4047_v19  ;;  %4645 = vmatprep.mubr.f32.mxu0 %v521_v25  ;;  %v577_v19 = vrot.slane %v5689_v0, 1  ;;  %v5719_v25 = vld [vmem:[#allocation2 + $0xf8] sm:$0xff] }
  0x58   : > { %4670 = vmatmul.mubr.f32.vlgmr.msra.gmra.mxu1 %v563_v28  ;;  %4693 = vmatprep.subr.mxu1 %v469_v29  ;;  %v537_v28 = vrot.slane %v5701_v11, 1 }
  0x59   : > { %4646 = vmatmul.mubr.f32.vlgmr.msra.gmra.mxu0 %v523_v31  ;;  %4694 = vmatpush3.msra.mxu1 %v469_v29  ;;  %v5726_v29 = vld [vmem:[#allocation2 + $0x188] sm:$0xff]  ;;  %v5728_v31 = vld [vmem:[#allocation2 + $0x198] sm:$0xff]  ;;  %v578_v35 = vsel %vm518_vm0, %v575_v8, %v577_v19 }
  0x5a   : > { %4773 = vmatprep.subr.mxu0 %v4078_v32  ;;  %4695 = vmatprep.subr.mxu1 %v468_v36  ;;  %v539_v48 = vrot.slane %v5726_v29, 1  ;;  %v5783_v19 = vld [vmem:[#allocation2 + $0x48] sm:$0x3] }
  0x5b   : > { %4774 = vmatpush3.msra.mxu0 %v4078_v32  ;;  %4672 = vmatprep.mubr.f32.mxu1 %v566_v39  ;;  %v5730_v32 = vld [vmem:[#allocation2 + $0x50] sm:$0x3]  ;;  %v580_v39 = vrot.slane %v5719_v25, 1 }
  0x5c   : > { %4696 = vmatpush3.msra.mxu1 %v468_v36  ;;  %4775 = vmatprep.subr.mxu0 %v4077_v40  ;;  %v579_v36 = vrot.slane %v5717_v21, 1 }
  0x5d   : > { %4648 = vmatprep.mubr.f32.mxu0 %v5652_v45  ;;  %4673 = vmatmul.mubr.f32.gmra.mxu1 %v568_v46  ;;  %v538_v46 = vsel %vm518_vm0, %v5710_v16, %v537_v28  ;;  %v5853_v16 = vld [vmem:[#allocation2 + $0x150] sm:$0x3] }
  0x5e   : > { %4697 = vmatprep.subr.mxu1 %v467_v49  ;;  %4776 = vmatpush3.msra.mxu0 %v4077_v40  ;;  %v463_v40 = vld [vmem:[%s7424_s1 + $0x48] sm:$0xff] }
  0x5f   : > { %4649 = vmatmul.mubr.f32.gmra.mxu0 %v528_v51  ;;  %4698 = vmatpush3.msra.mxu1 %v467_v49  ;;  %v5751_v49 = vrot.slane %v5728_v31, 1  ;;  %v582_v51 = vrot.slane %v5730_v32, 1 }
  0x60   : > { %4777 = vmatprep.subr.mxu0 %v4076_v52  ;;  %4699 = vmatprep.subr.mxu1 %v466_v56 }
  0x61   : > { %4778 = vmatpush3.msra.mxu0 %v4076_v52  ;;  %4675 = vmatprep.mubr.f32.mxu1 %v571_v59  ;;  %7474 = vst [vmem:[#allocation13_spill] sm:$0xff] %v5751_v49  ;;  %v462_v52 = vld [vmem:[%s7424_s1 + $0x40] sm:$0xff]  ;;  %v5775_v8 = vsel %vm518_vm0, %v539_v48, %v5751_v49  ;;  %v547_v48 = vrot.slane %v5783_v19, 1 }
  0x62   : > { %4700 = vmatpush3.msra.mxu1 %v466_v56  ;;  %4779 = vmatprep.subr.mxu0 %v4075_v60  ;;  %v581_v56 = vsel %vm518_vm0, %v579_v36, %v580_v39  ;;  %v4071_v59 = vld [vmem:[%s7424_s1 + $0x140] sm:$0xff]  ;;  %7475 = vst [vmem:[#allocation14_spill] sm:$0xff] %v5775_v8  ;;  %v460_v36 = vld [vmem:[%s7424_s1 + $0x30] sm:$0xff] }
  0x63   : > { %4651 = vmatprep.mubr.f32.mxu0 %v5693_v1  ;;  %4676 = vmatmul.mubr.f32.gmra.mxu1 %v573_v2  ;;  %v5769_v2 = vld [vmem:[#allocation2 + $0x1a0] sm:$0xff] }
  0x64   : > { %4701 = vmatprep.subr.mxu1 %v465_v10  ;;  %4780 = vmatpush3.msra.mxu0 %v4075_v60  ;;  %v542_v60 = vrot.slane %v5742_v41, 1  ;;  %v5792_v28 = vrot.slane %v5769_v2, 1 }
  0x65   : > { %4652 = vmatmul.mubr.f32.gmra.mxu0 %v533_v13  ;;  %4702 = vmatpush3.msra.mxu1 %v465_v10  ;;  %v583_v10 = vsel %vm518_vm0, %v580_v39, %v582_v51  ;;  %v584_v13 = vrot.slane %v5758_v53, 1  ;;  %v5799_v39 = vld [vmem:[#allocation2 + $0xe8] sm:$0xff] }
  0x66   : > { %4781 = vmatprep.subr.mxu0 %v4074_v14  ;;  %4703 = vmatprep.subr.mxu1 %v464_v20  ;;  %7476 = vst [vmem:[#allocation15_spill] sm:$0xff] %v5792_v28  ;;  %v5808_v51 = vld [vmem:[#allocation2 + $0x88] sm:$0xff] }
  0x67   : > { %4782 = vmatpush3.msra.mxu0 %v4074_v14  ;;  %4678 = vmatprep.mubr.f32.mxu1 %v576_v26  ;;  %v585_v14 = vrot.slane %v5760_v55, 1  ;;  %v4070_v26 = vld [vmem:[%s7424_s1 + $0x138] sm:$0xff] }
  0x68   : > { %4704 = vmatpush3.msra.mxu1 %v464_v20  ;;  %4783 = vmatprep.subr.mxu0 %v4073_v27  ;;  %v543_v20 = vsel %vm518_vm0, %v5751_v49, %v542_v60  ;;  %v4067_v49 = vld [vmem:[%s7424_s1 + $0x120] sm:$0xff] }
  0x69   : > { %4654 = vmatprep.mubr.f32.mxu0 %v5734_v33  ;;  %4679 = vmatmul.mubr.f32.gmra.mxu1 %v578_v35  ;;  %v587_v35 = vrot.slane %v5771_v3, 1 }
  0x6a   : > { %4705 = vmatprep.subr.mxu1 %v463_v40  ;;  %4784 = vmatpush3.msra.mxu0 %v4073_v27  ;;  %v544_v27 = vrot.slane %v5767_v61, 1 }
  0x6b   : > { %4655 = vmatmul.mubr.f32.gmra.mxu0 %v538_v46  ;;  %4706 = vmatpush3.msra.mxu1 %v463_v40  ;;  %v5801_v40 = vld [vmem:[#allocation2 + $0x110] sm:$0xff]  ;;  %v586_v46 = vsel %vm518_vm0, %v584_v13, %v585_v14  ;;  %v588_v60 = vsel %vm518_vm0, %v585_v14, %v587_v35  ;;  %v4068_v14 = vld [vmem:[%s7424_s1 + $0x128] sm:$0xff]  ;;  %v549_v35 = vrot.slane %v5808_v51, 1 }
  0x6c   : > { %4785 = vmatprep.subr.mxu0 %v4072_v47  ;;  %4707 = vmatprep.subr.mxu1 %v462_v52  ;;  %v590_v13 = vrot.slane %v5801_v40, 1 }
  0x6d   : > { %4786 = vmatpush3.msra.mxu0 %v4072_v47  ;;  %4681 = vmatprep.mubr.f32.mxu1 %v581_v56  ;;  %v4069_v47 = vld [vmem:[%s7424_s1 + $0x130] sm:$0xff]  ;;  %v5812_v56 = vld [vmem:[#allocation2 + $0xc8] sm:$0x3] }
  0x6e   : > { %4708 = vmatpush3.msra.mxu1 %v462_v52  ;;  %4787 = vmatprep.subr.mxu0 %v4071_v59  ;;  %v5810_v52 = vld [vmem:[#allocation2 + $0x180] sm:$0xff] }
  0x6f   : > { %4657 = vmatprep.mubr.f32.mxu0 %v5775_v8  ;;  %4682 = vmatmul.mubr.f32.gmra.mxu1 %v583_v10  ;;  %v589_v10 = vrot.slane %v5799_v39, 1  ;;  %v5840_v8 = vld [vmem:[#allocation2 + $0x1a8] sm:$0xff] }
  0x70   : > { %4709 = vmatprep.subr.mxu1 %v461_v15  ;;  %4788 = vmatpush3.msra.mxu0 %v4071_v59  ;;  %v5816_v59 = vsel %vm518_vm0, %v544_v27, %v5792_v28  ;;  %v548_v27 = vsel %vm518_vm0, %v5792_v28, %v547_v48  ;;  %v5842_v48 = vld [vmem:[#allocation2 + $0x70] sm:$0xff]  ;;  %v594_v1 = vrot.slane %v5840_v8, 1 }
  0x71   : > { %4658 = vmatmul.mubr.f32.gmra.mxu0 %v543_v20  ;;  %4710 = vmatpush3.msra.mxu1 %v461_v15  ;;  %7477 = vst [vmem:[#allocation16_spill] sm:$0xff] %v5816_v59  ;;  %v459_v15 = vld [vmem:[%s7424_s1 + $0x28] sm:$0xff]  ;;  %v5824_v20 = vld [vmem:[#allocation2 + $0x170] sm:$0x3]  ;;  %v591_v28 = vsel %vm518_vm0, %v589_v10, %v590_v13  ;;  %v595_v54 = vrot.slane %v5842_v48, 1 }
  0x72   : > { %4789 = vmatprep.subr.mxu0 %v4070_v26  ;;  %4711 = vmatprep.subr.mxu1 %v460_v36  ;;  %v552_v33 = vrot.slane %v5824_v20, 1 }
  0x73   : > { %4790 = vmatpush3.msra.mxu0 %v4070_v26  ;;  %4684 = vmatprep.mubr.f32.mxu1 %v586_v46  ;;  %v5833_v26 = vrot.slane %v5810_v52, 1  ;;  %v592_v46 = vrot.slane %v5812_v56, 1 }
  0x74   : > { %4712 = vmatpush3.msra.mxu1 %v460_v36  ;;  %4791 = vmatprep.subr.mxu0 %v4069_v47  ;;  %v458_v36 = vld [vmem:[%s7424_s1 + $0x20] sm:$0xff] }
  0x75   : > { %7478 = vst [vmem:[#allocation17_spill] sm:$0xff] %v5833_v26  ;;  %4660 = vmatprep.mubr.f32.mxu0 %v5816_v59  ;;  %4685 = vmatmul.mubr.f32.gmra.mxu1 %v588_v60  ;;  %v5849_v60 = vld [vmem:[#allocation2 + $0x80] sm:$0xff]  ;;  %v593_v10 = vsel %vm518_vm0, %v590_v13, %v592_v46  ;;  %v597_v46 = vrot.slane %v5853_v16, 1 }
  0x76   : > { %4713 = vmatprep.subr.mxu1 %v459_v15  ;;  %4792 = vmatpush3.msra.mxu0 %v4069_v47  ;;  %v5851_v59 = vld [vmem:[#allocation2 + $0x140] sm:$0xff]  ;;  %v5857_v47 = vsel %vm518_vm0, %v549_v35, %v5833_v26  ;;  %v553_v35 = vsel %vm518_vm0, %v5833_v26, %v552_v33  ;;  %v554_v45 = vrot.slane %v5849_v60, 1  ;;  %v596_v33 = vsel %vm518_vm0, %v594_v1, %v595_v54  ;;  %v455_v1 = vld [vmem:[%s7424_s1 + $0x8] sm:$0xff] }
  0x77   : > { %4661 = vmatmul.mubr.f32.gmra.mxu0 %v548_v27  ;;  %4714 = vmatpush3.msra.mxu1 %v459_v15  ;;  %7479 = vst [vmem:[#allocation18_spill] sm:$0xff] %v5857_v47  ;;  %v457_v15 = vld [vmem:[%s7424_s1 + $0x18] sm:$0xff]  ;;  %v5865_v27 = vld [vmem:[#allocation2 + $0x20] sm:$0x3]  ;;  %v5871_v13 = vrot.slane %v5851_v59, 1  ;;  %v598_v26 = vsel %vm518_vm0, %v595_v54, %v597_v46  ;;  %v1102_v46 = vrot.slane %v5591_v12, 2 }
  0x78   : > { %4793 = vmatprep.subr.mxu0 %v4068_v14  ;;  %4715 = vmatprep.subr.mxu1 %v458_v36  ;;  %v454_v54 = vld [vmem:[%s7424_s1] sm:$0xff]  ;;  %v7440_v12 = vrot.slane %v5608_v22, 2 }
  0x79   : > { %4794 = vmatpush3.msra.mxu0 %v4068_v14  ;;  %4687 = vmatprep.mubr.f32.mxu1 %v591_v28  ;;  %v4066_v28 = vld [vmem:[%s7424_s1 + $0x118] sm:$0xff]  ;;  %v456_v14 = vld [vmem:[%s7424_s1 + $0x10] sm:$0xff] }
  0x7a   : > { %4716 = vmatpush3.msra.mxu1 %v458_v36  ;;  %4795 = vmatprep.subr.mxu0 %v4067_v49  ;;  %v557_v36 = vrot.slane %v5865_v27, 1 }
  0x7b   : > { %4663 = vmatprep.mubr.f32.mxu0 %v5857_v47  ;;  %4688 = vmatmul.mubr.f32.gmra.mxu1 %v593_v10  ;;  %v4065_v10 = vld [vmem:[%s7424_s1 + $0x110] sm:$0xff]  ;;  %v5888_v47 = vsel %vm518_vm0, %v554_v45, %v5871_v13  ;;  %v4064_v45 = vld [vmem:[%s7424_s1 + $0x108] sm:$0xff] }
  0x7c   : > { %4717 = vmatprep.subr.mxu1 %v457_v15  ;;  %4796 = vmatpush3.msra.mxu0 %v4067_v49  ;;  %v558_v49 = vsel %vm518_vm0, %v5871_v13, %v557_v36 }
  0x7d   : > { %4664 = vmatmul.mubr.f32.gmra.mxu0 %v553_v35  ;;  %4718 = vmatpush3.msra.mxu1 %v457_v15  ;;  %v1099_v15 = vrot.slane %v5580_v6, 2  ;;  %v1100_v35 = vrot.slane %v5582_v7, 2 }
  0x7e   : > { %4797 = vmatprep.subr.mxu0 %v4066_v28  ;;  %4719 = vmatprep.subr.mxu1 %v456_v14 }
  0x7f   : > { %4798 = vmatpush3.msra.mxu0 %v4066_v28  ;;  %4690 = vmatprep.mubr.f32.mxu1 %v596_v33  ;;  %v1101_v28 = vsel %vm1098_vm1, %v1099_v15, %v1100_v35  ;;  %v1105_v33 = vrot.slane %v5610_v23, 2  ;;  %v1103_v36 = vsel %vm1098_vm1, %v1100_v35, %v1102_v46  ;;  %v4109_v35 = vld [vmem:[%s7424_s1 + $0x270] sm:$0xff]  ;;  %v1114_v46 = vrot.slane %v5685_v62, 2 }
  0x80   : > { %4720 = vmatpush3.msra.mxu1 %v456_v14  ;;  %4799 = vmatprep.subr.mxu0 %v4065_v10  ;;  %v4094_v14 = vld [vmem:[%s7424_s1 + $0x1f8] sm:$0xff] }
  0x81   : > { %4666 = vmatprep.mubr.f32.mxu0 %v5888_v47  ;;  %4691 = vmatmul.mubr.f32.gmra.mxu1 %v598_v26  ;;  %v4063_v26 = vld [vmem:[%s7424_s1 + $0x100] sm:$0xff] }
  0x82   : > { %4721 = vmatprep.subr.mxu1 %v455_v1  ;;  %4800 = vmatpush3.msra.mxu0 %v4065_v10  ;;  %v1107_v10 = vrot.slane %v5621_v30, 2 }
  0x83   : > { %4667 = vmatmul.mubr.f32.gmra.mxu0 %v558_v49  ;;  %4722 = vmatpush3.msra.mxu1 %v455_v1  ;;  %v4110_v1 = vld [vmem:[%s7424_s1 + $0x278] sm:$0xff]  ;;  %v1109_v49 = vrot.slane %v5644_v42, 2 }
  0x84   : > { %4801 = vmatprep.subr.mxu0 %v4064_v45  ;;  %4723 = vmatprep.subr.mxu1 %v454_v54  ;;  %v1108_v30 = vsel %vm1098_vm1, %v1105_v33, %v1107_v10  ;;  %v1119_v10 = vrot.slane %v5726_v29, 2 }
  0x85   : > { %4802 = vmatpush3.msra.mxu0 %v4064_v45  ;;  %4724 = vmatpush3.msra.mxu1 %v454_v54  ;;  %v5924_v45 = vrot.slane %v5646_v43, 2  ;;  %v1112_v54 = vrot.slane %v5660_v50, 2  ;;  %v4092_v50 = vld [vmem:[%s7424_s1 + $0x1e8] sm:$0xff] }
  0x86   : > { %4725 = vmatprep.mubr.f32.mxu1 %v5580_v6  ;;  %4803 = vmatprep.subr.mxu0 %v4063_v26  ;;  %v1106_v6 = vsel %vm1098_vm1, %v7440_v12, %v1105_v33  ;;  %v1147_v12 = vrot.slane %v5612_v24, 2  ;;  %v1150_v24 = vrot.slane %v5637_v38, 2 }
  0x87   : > { %4726 = vmatmul.mubr.f32.vlgmr.msra.gmra.mxu1 %v5582_v7  ;;  %4804 = vmatpush3.msra.mxu0 %v4063_v26  ;;  %v4093_v7 = vld [vmem:[%s7424_s1 + $0x1f0] sm:$0xff]  ;;  %v5937_v15 = vsel %vm1098_vm1, %v1109_v49, %v5924_v45  ;;  %v5945_v26 = vrot.slane %v5687_v63, 2 }
  0x88   : > { %4805 = vmatprep.mubr.f32.mxu0 %v1101_v28  ;;  %4853 = vmatprep.subr.mxu1 %v4094_v14  ;;  %v1113_v28 = vsel %vm1098_vm1, %v5924_v45, %v1112_v54  ;;  %v1124_v54 = vrot.slane %v5767_v61, 2 }
  0x89   : > { %4806 = vmatmul.mubr.f32.vlgmr.msra.gmra.mxu0 %v1103_v36  ;;  %4854 = vmatpush3.msra.mxu1 %v4094_v14  ;;  %v1117_v14 = vrot.slane %v5701_v11, 2  ;;  %v5956_v33 = vsel %vm1098_vm1, %v1114_v46, %v5945_v26  ;;  %v4108_v36 = vld [vmem:[%s7424_s1 + $0x268] sm:$0xff]  ;;  %v4091_v11 = vld [vmem:[%s7424_s1 + $0x1e0] sm:$0xff] }
  0x8a   : > { %4933 = vmatprep.subr.mxu0 %v4110_v1  ;;  %4728 = vmatprep.mubr.f32.mxu1 %v5608_v22 }
  0x8b   : > { %4934 = vmatpush3.msra.mxu0 %v4110_v1  ;;  %4729 = vmatmul.mubr.f32.gmra.mxu1 %v5610_v23  ;;  %v5965_v1 = vrot.slane %v5728_v31, 2  ;;  %v1118_v49 = vsel %vm1098_vm1, %v5945_v26, %v1117_v14  ;;  %v4106_v14 = vld [vmem:[%s7424_s1 + $0x258] sm:$0xff] }
  0x8c   : > { %4808 = vmatprep.mubr.f32.mxu0 %v1106_v6  ;;  %4855 = vmatprep.subr.mxu1 %v4093_v7  ;;  %v1122_v6 = vrot.slane %v5742_v41, 2  ;;  %v4090_v41 = vld [vmem:[%s7424_s1 + $0x1d8] sm:$0xff] }
  0x8d   : > { %4809 = vmatmul.mubr.f32.gmra.mxu0 %v1108_v30  ;;  %4856 = vmatpush3.msra.mxu1 %v4093_v7  ;;  %v5976_v7 = vsel %vm1098_vm1, %v1119_v10, %v5965_v1  ;;  %v4107_v30 = vld [vmem:[%s7424_s1 + $0x260] sm:$0xff]  ;;  %v6005_v10 = vrot.slane %v5810_v52, 2 }
  0x8e   : > { %4935 = vmatprep.subr.mxu0 %v4109_v35  ;;  %4731 = vmatprep.mubr.f32.mxu1 %v5644_v42  ;;  %v1123_v46 = vsel %vm1098_vm1, %v5965_v1, %v1122_v6 }
  0x8f   : > { %4936 = vmatpush3.msra.mxu0 %v4109_v35  ;;  %4732 = vmatmul.mubr.f32.gmra.mxu1 %v5646_v43  ;;  %v5985_v35 = vrot.slane %v5769_v2, 2 }
  0x90   : > { %4811 = vmatprep.mubr.f32.mxu0 %v5937_v15  ;;  %4857 = vmatprep.subr.mxu1 %v4092_v50 }
  0x91   : > { %4812 = vmatmul.mubr.f32.gmra.mxu0 %v1113_v28  ;;  %4858 = vmatpush3.msra.mxu1 %v4092_v50  ;;  %v1127_v50 = vrot.slane %v5783_v19, 2  ;;  %v5996_v28 = vsel %vm1098_vm1, %v1124_v54, %v5985_v35  ;;  %v4089_v19 = vld [vmem:[%s7424_s1 + $0x1d0] sm:$0xff]  ;;  %v1134_v54 = vrot.slane %v5849_v60, 2 }
  0x92   : > { %4937 = vmatprep.subr.mxu0 %v4108_v36  ;;  %4734 = vmatprep.mubr.f32.mxu1 %v5685_v62 }
  0x93   : > { %4938 = vmatpush3.msra.mxu0 %v4108_v36  ;;  %4735 = vmatmul.mubr.f32.gmra.mxu1 %v5687_v63  ;;  %v1129_v36 = vrot.slane %v5808_v51, 2 }
  0x94   : > { %4814 = vmatprep.mubr.f32.mxu0 %v5956_v33  ;;  %4859 = vmatprep.subr.mxu1 %v4091_v11 }
  0x95   : > { %4815 = vmatmul.mubr.f32.gmra.mxu0 %v1118_v49  ;;  %4860 = vmatpush3.msra.mxu1 %v4091_v11  ;;  %v1128_v11 = vsel %vm1098_vm1, %v5985_v35, %v1127_v50  ;;  %v1132_v49 = vrot.slane %v5824_v20, 2  ;;  %v6016_v6 = vsel %vm1098_vm1, %v1129_v36, %v6005_v10  ;;  %v4088_v20 = vld [vmem:[%s7424_s1 + $0x1c8] sm:$0xff]  ;;  %v1137_v50 = vrot.slane %v5865_v27, 2  ;;  %v4087_v27 = vld [vmem:[%s7424_s1 + $0x1c0] sm:$0xff] }
  0x96   : > { %4939 = vmatprep.subr.mxu0 %v4107_v30  ;;  %4737 = vmatprep.mubr.f32.mxu1 %v5726_v29 }
  0x97   : > { %4940 = vmatpush3.msra.mxu0 %v4107_v30  ;;  %4738 = vmatmul.mubr.f32.gmra.mxu1 %v5728_v31  ;;  %v4105_v30 = vld [vmem:[%s7424_s1 + $0x250] sm:$0xff] }
  0x98   : > { %4817 = vmatprep.mubr.f32.mxu0 %v5976_v7  ;;  %4861 = vmatprep.subr.mxu1 %v4090_v41 }
  0x99   : > { %4818 = vmatmul.mubr.f32.gmra.mxu0 %v1123_v46  ;;  %4862 = vmatpush3.msra.mxu1 %v4090_v41  ;;  %v6028_v41 = vrot.slane %v5851_v59, 2  ;;  %v1133_v46 = vsel %vm1098_vm1, %v6005_v10, %v1132_v49 }
  0x9a   : > { %4941 = vmatprep.subr.mxu0 %v4106_v14  ;;  %4740 = vmatprep.mubr.f32.mxu1 %v5767_v61 }
  0x9b   : > { %4942 = vmatpush3.msra.mxu0 %v4106_v14  ;;  %4741 = vmatmul.mubr.f32.gmra.mxu1 %v5769_v2  ;;  %v4104_v14 = vld [vmem:[%s7424_s1 + $0x248] sm:$0xff]  ;;  %v6041_v36 = vsel %vm1098_vm1, %v1134_v54, %v6028_v41  ;;  %v1138_v49 = vsel %vm1098_vm1, %v6028_v41, %v1137_v50  ;;  %v1145_v50 = vrot.slane %v5601_v18, 2 }
  0x9c   : > { %4820 = vmatprep.mubr.f32.mxu0 %v5996_v28  ;;  %4863 = vmatprep.subr.mxu1 %v4089_v19 }
  0x9d   : > { %4821 = vmatmul.mubr.f32.gmra.mxu0 %v1128_v11  ;;  %4864 = vmatpush3.msra.mxu1 %v4089_v19  ;;  %v1139_v19 = vrot.slane %v5576_v4, 2  ;;  %v1140_v11 = vrot.slane %v5578_v5, 2 }
  0x9e   : > { %4943 = vmatprep.subr.mxu0 %v4105_v30  ;;  %4743 = vmatprep.mubr.f32.mxu1 %v5808_v51 }
  0x9f   : > { %4944 = vmatpush3.msra.mxu0 %v4105_v30  ;;  %4744 = vmatmul.mubr.f32.gmra.mxu1 %v5810_v52  ;;  %v1142_v30 = vrot.slane %v5587_v9, 2  ;;  %v1141_v54 = vsel %vm1098_vm1, %v1139_v19, %v1140_v11  ;;  %v1144_v9 = vrot.slane %v5599_v17, 2 }
  0xa0   : > { %4823 = vmatprep.mubr.f32.mxu0 %v6016_v6  ;;  %4865 = vmatprep.subr.mxu1 %v4088_v20 }
  0xa1   : > { %4824 = vmatmul.mubr.f32.gmra.mxu0 %v1133_v46  ;;  %4866 = vmatpush3.msra.mxu1 %v4088_v20  ;;  %v4103_v20 = vld [vmem:[%s7424_s1 + $0x240] sm:$0xff]  ;;  %v4086_v46 = vld [vmem:[%s7424_s1 + $0x1b8] sm:$0xff]  ;;  %v1146_v19 = vsel %vm1098_vm1, %v1144_v9, %v1145_v50 }
  0xa2   : > { %4945 = vmatprep.subr.mxu0 %v4104_v14  ;;  %4746 = vmatprep.mubr.f32.mxu1 %v5849_v60 }
  0xa3   : > { %4946 = vmatpush3.msra.mxu0 %v4104_v14  ;;  %4747 = vmatmul.mubr.f32.gmra.mxu1 %v5851_v59  ;;  %v1143_v14 = vsel %vm1098_vm1, %v1140_v11, %v1142_v30  ;;  %v1149_v11 = vrot.slane %v5635_v37, 2  ;;  %v4101_v30 = vld [vmem:[%s7424_s1 + $0x230] sm:$0xff] }
  0xa4   : > { %4826 = vmatprep.mubr.f32.mxu0 %v6041_v36  ;;  %4867 = vmatprep.subr.mxu1 %v4087_v27 }
  0xa5   : > { %4827 = vmatmul.mubr.f32.gmra.mxu0 %v1138_v49  ;;  %4868 = vmatpush3.msra.mxu1 %v4087_v27  ;;  %v4102_v27 = vld [vmem:[%s7424_s1 + $0x238] sm:$0xff]  ;;  %v1152_v49 = vrot.slane %v5648_v44, 2  ;;  %v1155_v44 = vrot.slane %v5678_v58, 2 }
  0xa6   : > { %4947 = vmatprep.subr.mxu0 %v4103_v20  ;;  %4749 = vmatprep.mubr.f32.mxu1 %v5576_v4  ;;  %v4085_v4 = vld [vmem:[%s7424_s1 + $0x1b0] sm:$0xff] }
  0xa7   : > { %4948 = vmatpush3.msra.mxu0 %v4103_v20  ;;  %4750 = vmatmul.mubr.f32.gmra.mxu1 %v5578_v5  ;;  %v1148_v5 = vsel %vm1098_vm1, %v1145_v50, %v1147_v12  ;;  %v1151_v20 = vsel %vm1098_vm1, %v1149_v11, %v1150_v24  ;;  %v1154_v12 = vrot.slane %v5676_v57, 2  ;;  %v1159_v50 = vrot.slane %v5717_v21, 2 }
  0xa8   : > { %4829 = vmatprep.mubr.f32.mxu0 %v1141_v54  ;;  %4869 = vmatprep.subr.mxu1 %v4086_v46  ;;  %v1157_v54 = vrot.slane %v5689_v0, 2  ;;  %v1160_v0 = vrot.slane %v5719_v25, 2  ;;  %v1167_v11 = vrot.slane %v5771_v3, 2  ;;  %v1170_v3 = vrot.slane %v5801_v40, 2 }
  0xa9   : > { %4830 = vmatmul.mubr.f32.gmra.mxu0 %v1143_v14  ;;  %4870 = vmatpush3.msra.mxu1 %v4086_v46  ;;  %v4100_v46 = vld [vmem:[%s7424_s1 + $0x228] sm:$0xff]  ;;  %v1156_v9 = vsel %vm1098_vm1, %v1154_v12, %v1155_v44  ;;  %v1162_v14 = vrot.slane %v5730_v32, 2  ;;  %v1165_v32 = vrot.slane %v5760_v55, 2  ;;  %v1174_v12 = vrot.slane %v5840_v8, 2 }
  0xaa   : > { %4949 = vmatprep.subr.mxu0 %v4102_v27  ;;  %4752 = vmatprep.mubr.f32.mxu1 %v5599_v17  ;;  %v4084_v17 = vld [vmem:[%s7424_s1 + $0x1a8] sm:$0xff] }
  0xab   : > { %4950 = vmatpush3.msra.mxu0 %v4102_v27  ;;  %4753 = vmatmul.mubr.f32.gmra.mxu1 %v5601_v18  ;;  %v1153_v18 = vsel %vm1098_vm1, %v1150_v24, %v1152_v49  ;;  %v4099_v27 = vld [vmem:[%s7424_s1 + $0x220] sm:$0xff]  ;;  %v4098_v24 = vld [vmem:[%s7424_s1 + $0x218] sm:$0xff]  ;;  %v1169_v49 = vrot.slane %v5799_v39, 2 }
  0xac   : > { %4832 = vmatprep.mubr.f32.mxu0 %v1146_v19  ;;  %4871 = vmatprep.subr.mxu1 %v4085_v4  ;;  %v1161_v19 = vsel %vm1098_vm1, %v1159_v50, %v1160_v0 }
  0xad   : > { %4833 = vmatmul.mubr.f32.gmra.mxu0 %v1148_v5  ;;  %4872 = vmatpush3.msra.mxu1 %v4085_v4  ;;  %v1164_v4 = vrot.slane %v5758_v53, 2 }
  0xae   : > { %4951 = vmatprep.subr.mxu0 %v4101_v30  ;;  %4755 = vmatprep.mubr.f32.mxu1 %v5635_v37  ;;  %v4083_v37 = vld [vmem:[%s7424_s1 + $0x1a0] sm:$0xff] }
  0xaf   : > { %4952 = vmatpush3.msra.mxu0 %v4101_v30  ;;  %4756 = vmatmul.mubr.f32.gmra.mxu1 %v5637_v38  ;;  %v1158_v38 = vsel %vm1098_vm1, %v1155_v44, %v1157_v54  ;;  %v1166_v5 = vsel %vm1098_vm1, %v1164_v4, %v1165_v32  ;;  %v1172_v30 = vrot.slane %v5812_v56, 2  ;;  %v1175_v56 = vrot.slane %v5842_v48, 2  ;;  %v6148_v54 = vld [vmem:[#allocation2 + $0x160] sm:$0x3] }
  0xb0   : > { %4835 = vmatprep.mubr.f32.mxu0 %v1151_v20  ;;  %4873 = vmatprep.subr.mxu1 %v4084_v17  ;;  %v4097_v20 = vld [vmem:[%s7424_s1 + $0x210] sm:$0xff]  ;;  %v1177_v44 = vrot.slane %v5853_v16, 2  ;;  %v6188_v4 = vld [vmem:[#allocation2 + $0xa0] sm:$0x3] }
  0xb1   : > { %4836 = vmatmul.mubr.f32.gmra.mxu0 %v1153_v18  ;;  %4874 = vmatpush3.msra.mxu1 %v4084_v17  ;;  %v1171_v17 = vsel %vm1098_vm1, %v1169_v49, %v1170_v3  ;;  %v4096_v18 = vld [vmem:[%s7424_s1 + $0x208] sm:$0xff]  ;;  %v7485_v49 = vld [vmem:[#allocation13_spill] sm:$0xff] }
  0xb2   : > { %4953 = vmatprep.subr.mxu0 %v4100_v46  ;;  %4758 = vmatprep.mubr.f32.mxu1 %v5676_v57  ;;  %v4082_v57 = vld [vmem:[%s7424_s1 + $0x198] sm:$0xff]  ;;  %v1178_v16 = vsel %vm1098_vm1, %v1175_v56, %v1177_v44 }
  0xb3   : > { %4954 = vmatpush3.msra.mxu0 %v4100_v46  ;;  %4759 = vmatmul.mubr.f32.gmra.mxu1 %v5678_v58  ;;  %v1163_v58 = vsel %vm1098_vm1, %v1160_v0, %v1162_v14  ;;  %v1176_v46 = vsel %vm1098_vm1, %v1174_v12, %v1175_v56  ;;  %v4142_v0 = vld [vmem:[%s7424_s1 + $0x378] sm:$0xff]  ;;  %v6230_v56 = vld [vmem:[#allocation2 + $0x20] sm:$0x3] }
  0xb4   : > { %4838 = vmatprep.mubr.f32.mxu0 %v1156_v9  ;;  %4875 = vmatprep.subr.mxu1 %v4083_v37  ;;  %v4095_v9 = vld [vmem:[%s7424_s1 + $0x200] sm:$0xff]  ;;  %v7480_v14 = vld [vmem:[#allocation8_spill] sm:$0xff] }
  0xb5   : > { %4839 = vmatmul.mubr.f32.gmra.mxu0 %v1158_v38  ;;  %4876 = vmatpush3.msra.mxu1 %v4083_v37  ;;  %v6161_v37 = vld [vmem:[#allocation2 + $0x128] sm:$0x3]  ;;  %v4138_v12 = vld [vmem:[%s7424_s1 + $0x358] sm:$0xff] }
  0xb6   : > { %4955 = vmatprep.subr.mxu0 %v4099_v27  ;;  %4761 = vmatprep.mubr.f32.mxu1 %v5717_v21  ;;  %v4081_v21 = vld [vmem:[%s7424_s1 + $0x190] sm:$0xff]  ;;  %v1864_v50 = vrot.slane %v6161_v37, 1  ;;  %v6174_v38 = vld [vmem:[#allocation2 + $0x168] sm:$0x3]  ;;  %v7489_v44 = vld [vmem:[#allocation17_spill] sm:$0xff] }
  0xb7   : > { %4956 = vmatpush3.msra.mxu0 %v4099_v27  ;;  %4762 = vmatmul.mubr.f32.gmra.mxu1 %v5719_v25  ;;  %v1168_v25 = vsel %vm1098_vm1, %v1165_v32, %v1167_v11  ;;  %v7481_v27 = vld [vmem:[#allocation9_spill] sm:$0xff]  ;;  %v7482_v32 = vld [vmem:[#allocation10_spill] sm:$0xff]  ;;  %v1874_v11 = vrot.slane %v6188_v4, 1 }
  0xb8   : > { %4841 = vmatprep.mubr.f32.mxu0 %v1161_v19  ;;  %4877 = vmatprep.subr.mxu1 %v4082_v57  ;;  %v1869_v19 = vrot.slane %v6174_v38, 1 }
  0xb9   : > { %4842 = vmatmul.mubr.f32.gmra.mxu0 %v1163_v58  ;;  %4878 = vmatpush3.msra.mxu1 %v4082_v57  ;;  %v4141_v57 = vld [vmem:[%s7424_s1 + $0x370] sm:$0xff] }
  0xba   : > { %4957 = vmatprep.subr.mxu0 %v4098_v24  ;;  %4764 = vmatprep.mubr.f32.mxu1 %v5758_v53  ;;  %v4080_v53 = vld [vmem:[%s7424_s1 + $0x188] sm:$0xff] }
  0xbb   : > { %4958 = vmatpush3.msra.mxu0 %v4098_v24  ;;  %4765 = vmatmul.mubr.f32.gmra.mxu1 %v5760_v55  ;;  %v1173_v55 = vsel %vm1098_vm1, %v1170_v3, %v1172_v30  ;;  %v7483_v58 = vld [vmem:[#allocation11_spill] sm:$0xff] }
  0xbc   : > { %4844 = vmatprep.mubr.f32.mxu0 %v1166_v5  ;;  %4879 = vmatprep.subr.mxu1 %v4081_v21  ;;  %v4140_v24 = vld [vmem:[%s7424_s1 + $0x368] sm:$0xff]  ;;  %v6216_v30 = vld [vmem:[#allocation2 + $0x170] sm:$0x3] }
  0xbd   : > { %4845 = vmatmul.mubr.f32.gmra.mxu0 %v1168_v25  ;;  %4880 = vmatpush3.msra.mxu1 %v4081_v21  ;;  %v6202_v5 = vld [vmem:[#allocation2 + $0x48] sm:$0x3]  ;;  %v7484_v21 = vld [vmem:[#allocation12_spill] sm:$0xff]  ;;  %v4139_v25 = vld [vmem:[%s7424_s1 + $0x360] sm:$0xff] }
  0xbe   : > { %4959 = vmatprep.subr.mxu0 %v4097_v20  ;;  %4767 = vmatprep.mubr.f32.mxu1 %v5799_v39  ;;  %v4079_v39 = vld [vmem:[%s7424_s1 + $0x180] sm:$0xff]  ;;  %v1879_v3 = vrot.slane %v6202_v5, 1 }
  0xbf   : > { %4960 = vmatpush3.msra.mxu0 %v4097_v20  ;;  %4768 = vmatmul.mubr.f32.gmra.mxu1 %v5801_v40  ;;  %v1859_v40 = vrot.slane %v6148_v54, 1  ;;  %v7486_v20 = vld [vmem:[#allocation14_spill] sm:$0xff] }
  0xc0   : > { %4847 = vmatprep.mubr.f32.mxu0 %v1171_v17  ;;  %4881 = vmatprep.subr.mxu1 %v4080_v53  ;;  %v7487_v17 = vld [vmem:[#allocation15_spill] sm:$0xff] }
  0xc1   : > { %4848 = vmatmul.mubr.f32.gmra.mxu0 %v1173_v55  ;;  %4882 = vmatpush3.msra.mxu1 %v4080_v53  ;;  %v1884_v53 = vrot.slane %v6216_v30, 1  ;;  %v7488_v55 = vld [vmem:[#allocation16_spill] sm:$0xff] }
  0xc2   : > { %4961 = vmatprep.subr.mxu0 %v4096_v18  ;;  %4770 = vmatprep.mubr.f32.mxu1 %v5840_v8  ;;  %v4126_v8 = vld [vmem:[%s7424_s1 + $0x2f8] sm:$0xff] }
  0xc3   : > { %4962 = vmatpush3.msra.mxu0 %v4096_v18  ;;  %4771 = vmatmul.mubr.f32.gmra.mxu1 %v5842_v48  ;;  %v1860_v48 = vsel %vm518_vm0, %v5629_v34, %v1859_v40  ;;  %v4125_v34 = vld [vmem:[%s7424_s1 + $0x2f0] sm:$0xff]  ;;  %v1889_v18 = vrot.slane %v6230_v56, 1  ;;  %v6248_v40 = vld [vmem:[#allocation2 + $0x8] sm:$0x3] }
  0xc4   : > { %4850 = vmatprep.mubr.f32.mxu0 %v1176_v46  ;;  %4883 = vmatprep.subr.mxu1 %v4079_v39  ;;  %v6240_v46 = vld [vmem:[#allocation2 + $0x130] sm:$0xff] }
  0xc5   : > { %4851 = vmatmul.mubr.f32.gmra.mxu0 %v1178_v16  ;;  %4884 = vmatpush3.msra.mxu1 %v4079_v39  ;;  %v6242_v39 = vld [vmem:[#allocation2 + $0x40] sm:$0xff]  ;;  %v4137_v16 = vld [vmem:[%s7424_s1 + $0x350] sm:$0xff] }
  0xc6   : > { %4963 = vmatprep.subr.mxu0 %v4095_v9  ;;  %4885 = vmatprep.mubr.f32.mxu1 %v5608_v22 }
  0xc7   : > { %4964 = vmatpush3.msra.mxu0 %v4095_v9  ;;  %4886 = vmatmul.mubr.f32.vlgmr.msra.gmra.mxu1 %v5610_v23  ;;  %v1865_v23 = vsel %vm518_vm0, %v7481_v27, %v1864_v50  ;;  %v7490_v9 = vld [vmem:[#allocation18_spill] sm:$0xff]  ;;  %v1894_v50 = vrot.slane %v6248_v40, 1  ;;  %v6270_v27 = vld [vmem:[#allocation2 + $0x90] sm:$0x3] }
  0xc8   : > { %4965 = vmatprep.mubr.f32.mxu0 %v7480_v14  ;;  %5013 = vmatprep.subr.mxu1 %v4126_v8  ;;  %v6264_v14 = vld [vmem:[#allocation2 + $0xb0] sm:$0xff] }
  0xc9   : > { %4966 = vmatmul.mubr.f32.vlgmr.msra.gmra.mxu0 %v1860_v48  ;;  %5014 = vmatpush3.msra.mxu1 %v4126_v8  ;;  %v1891_v8 = vrot.slane %v6240_v46, 1  ;;  %v6256_v48 = vrot.slane %v6242_v39, 1 }
  0xca   : > { %5093 = vmatprep.subr.mxu0 %v4142_v0  ;;  %4888 = vmatprep.mubr.f32.mxu1 %v5644_v42  ;;  %v4124_v42 = vld [vmem:[%s7424_s1 + $0x2e8] sm:$0xff] }
  0xcb   : > { %5094 = vmatpush3.msra.mxu0 %v4142_v0  ;;  %4889 = vmatmul.mubr.f32.gmra.mxu1 %v5646_v43  ;;  %v1870_v43 = vsel %vm518_vm0, %v7483_v58, %v1869_v19  ;;  %v6262_v0 = vld [vmem:[#allocation2 + $0x58] sm:$0xff]  ;;  %v1899_v19 = vrot.slane %v6270_v27, 1  ;;  %v6296_v58 = vld [vmem:[#allocation2 + $0xa8] sm:$0x3] }
  0xcc   : > { %4968 = vmatprep.mubr.f32.mxu0 %v7482_v32  ;;  %5015 = vmatprep.subr.mxu1 %v4125_v34  ;;  %v6290_v32 = vld [vmem:[#allocation2 + $0xb8] sm:$0xff] }
  0xcd   : > { %4969 = vmatmul.mubr.f32.gmra.mxu0 %v1865_v23  ;;  %5016 = vmatpush3.msra.mxu1 %v4125_v34  ;;  %v4136_v34 = vld [vmem:[%s7424_s1 + $0x348] sm:$0xff]  ;;  %v6282_v23 = vrot.slane %v6264_v14, 1 }
  0xce   : > { %5095 = vmatprep.subr.mxu0 %v4141_v57  ;;  %4891 = vmatprep.mubr.f32.mxu1 %v5685_v62  ;;  %v4123_v62 = vld [vmem:[%s7424_s1 + $0x2e0] sm:$0xff] }
  0xcf   : > { %5096 = vmatpush3.msra.mxu0 %v4141_v57  ;;  %4892 = vmatmul.mubr.f32.gmra.mxu1 %v5687_v63  ;;  %v1875_v63 = vsel %vm518_vm0, %v7485_v49, %v1874_v11  ;;  %v6288_v57 = vld [vmem:[#allocation2 + $0x190] sm:$0xff]  ;;  %v4118_v11 = vld [vmem:[%s7424_s1 + $0x2b8] sm:$0xff]  ;;  %v1904_v49 = vrot.slane %v6296_v58, 1 }
  0xd0   : > { %4971 = vmatprep.mubr.f32.mxu0 %v7484_v21  ;;  %5017 = vmatprep.subr.mxu1 %v4124_v42  ;;  %v6308_v21 = vrot.slane %v6290_v32, 1 }
  0xd1   : > { %4972 = vmatmul.mubr.f32.gmra.mxu0 %v1870_v43  ;;  %5018 = vmatpush3.msra.mxu1 %v4124_v42  ;;  %v4135_v42 = vld [vmem:[%s7424_s1 + $0x340] sm:$0xff] }
  0xd2   : > { %5097 = vmatprep.subr.mxu0 %v4140_v24  ;;  %4894 = vmatprep.mubr.f32.mxu1 %v5726_v29  ;;  %v4122_v29 = vld [vmem:[%s7424_s1 + $0x2d8] sm:$0xff]  ;;  %7491 = vst [vmem:[#allocation8_spill] sm:$0xff] %v6308_v21 }
  0xd3   : > { %5098 = vmatpush3.msra.mxu0 %v4140_v24  ;;  %4895 = vmatmul.mubr.f32.gmra.mxu1 %v5728_v31  ;;  %v1880_v31 = vsel %vm518_vm0, %v7487_v17, %v1879_v3  ;;  %v1901_v24 = vrot.slane %v6288_v57, 1  ;;  %v6316_v3 = vld [vmem:[#allocation2 + $0x158] sm:$0xff]  ;;  %v4117_v17 = vld [vmem:[%s7424_s1 + $0x2b0] sm:$0xff] }
  0xd4   : > { %4974 = vmatprep.mubr.f32.mxu0 %v7486_v20  ;;  %5019 = vmatprep.subr.mxu1 %v4123_v62  ;;  %v6322_v20 = vld [vmem:[#allocation2 + $0x98] sm:$0x3] }
  0xd5   : > { %4975 = vmatmul.mubr.f32.gmra.mxu0 %v1875_v63  ;;  %5020 = vmatpush3.msra.mxu1 %v4123_v62  ;;  %v1900_v62 = vsel %vm518_vm0, %v6282_v23, %v1899_v19  ;;  %v6314_v63 = vld [vmem:[#allocation2 + $0xe0] sm:$0xff] }
  0xd6   : > { %5099 = vmatprep.subr.mxu0 %v4139_v25  ;;  %4897 = vmatprep.mubr.f32.mxu1 %v5767_v61  ;;  %v4121_v61 = vld [vmem:[%s7424_s1 + $0x2d0] sm:$0xff] }
  0xd7   : > { %5100 = vmatpush3.msra.mxu0 %v4139_v25  ;;  %4898 = vmatmul.mubr.f32.gmra.mxu1 %v5769_v2  ;;  %v1885_v2 = vsel %vm518_vm0, %v7489_v44, %v1884_v53  ;;  %v4134_v25 = vld [vmem:[%s7424_s1 + $0x338] sm:$0xff]  ;;  %v6334_v53 = vrot.slane %v6316_v3, 1 }
  0xd8   : > { %4977 = vmatprep.mubr.f32.mxu0 %v7488_v55  ;;  %5021 = vmatprep.subr.mxu1 %v4122_v29  ;;  %v1909_v55 = vrot.slane %v6322_v20, 1  ;;  %v6342_v44 = vld [vmem:[#allocation2 + $0xf8] sm:$0xff] }
  0xd9   : > { %4978 = vmatmul.mubr.f32.gmra.mxu0 %v1880_v31  ;;  %5022 = vmatpush3.msra.mxu1 %v4122_v29  ;;  %v6327_v29 = vsel %vm518_vm0, %v1901_v24, %v6308_v21  ;;  %v1906_v31 = vrot.slane %v6314_v63, 1  ;;  %7493 = vst [vmem:[#allocation10_spill] sm:$0xff] %v6334_v53 }
  0xda   : > { %5101 = vmatprep.subr.mxu0 %v4138_v12  ;;  %4900 = vmatprep.mubr.f32.mxu1 %v5808_v51  ;;  %v4120_v51 = vld [vmem:[%s7424_s1 + $0x2c8] sm:$0xff]  ;;  %7492 = vst [vmem:[#allocation9_spill] sm:$0xff] %v6327_v29 }
  0xdb   : > { %5102 = vmatpush3.msra.mxu0 %v4138_v12  ;;  %4901 = vmatmul.mubr.f32.gmra.mxu1 %v5810_v52  ;;  %v1890_v52 = vsel %vm518_vm0, %v5871_v13, %v1889_v18  ;;  %v4119_v13 = vld [vmem:[%s7424_s1 + $0x2c0] sm:$0xff]  ;;  %v1905_v12 = vsel %vm518_vm0, %v6308_v21, %v1904_v49  ;;  %v6348_v18 = vld [vmem:[#allocation2 + $0x50] sm:$0x3] }
  0xdc   : > { %4980 = vmatprep.mubr.f32.mxu0 %v7490_v9  ;;  %5023 = vmatprep.subr.mxu1 %v4121_v61  ;;  %v4116_v9 = vld [vmem:[%s7424_s1 + $0x2a8] sm:$0xff] }
  0xdd   : > { %4981 = vmatmul.mubr.f32.gmra.mxu0 %v1885_v2  ;;  %5024 = vmatpush3.msra.mxu1 %v4121_v61  ;;  %v6340_v61 = vld [vmem:[#allocation2 + $0xc0] sm:$0xff]  ;;  %v4133_v2 = vld [vmem:[%s7424_s1 + $0x330] sm:$0xff] }
  0xde   : > { %5103 = vmatprep.subr.mxu0 %v4137_v16  ;;  %4903 = vmatprep.mubr.f32.mxu1 %v5849_v60  ;;  %v6275_v60 = vsel %vm518_vm0, %v1891_v8, %v6256_v48  ;;  %v6360_v8 = vrot.slane %v6342_v44, 1 }
  0xdf   : > { %5104 = vmatpush3.msra.mxu0 %v4137_v16  ;;  %4904 = vmatmul.mubr.f32.gmra.mxu1 %v5851_v59  ;;  %v1896_v59 = vrot.slane %v6262_v0, 1  ;;  %v6353_v16 = vsel %vm518_vm0, %v1906_v31, %v6334_v53  ;;  %v4131_v31 = vld [vmem:[%s7424_s1 + $0x320] sm:$0xff] }
  0xe0   : > { %4983 = vmatprep.mubr.f32.mxu0 %v5888_v47  ;;  %5025 = vmatprep.subr.mxu1 %v4120_v51  ;;  %v1895_v47 = vsel %vm518_vm0, %v6256_v48, %v1894_v50  ;;  %7494 = vst [vmem:[#allocation11_spill] sm:$0xff] %v6353_v16  ;;  %7495 = vst [vmem:[#allocation12_spill] sm:$0xff] %v6360_v8  ;;  %v1914_v50 = vrot.slane %v6348_v18, 1 }
  0xe1   : > { %4984 = vmatmul.mubr.f32.gmra.mxu0 %v1890_v52  ;;  %5026 = vmatpush3.msra.mxu1 %v4120_v51  ;;  %v6301_v43 = vsel %vm518_vm0, %v1896_v59, %v6282_v23  ;;  %v1911_v51 = vrot.slane %v6340_v61, 1  ;;  %v1910_v52 = vsel %vm518_vm0, %v6334_v53, %v1909_v55  ;;  %v4132_v59 = vld [vmem:[%s7424_s1 + $0x328] sm:$0xff]  ;;  %v6452_v53 = vld [vmem:[#allocation2 + $0x10] sm:$0x3] }
  0xe2   : > { %5105 = vmatprep.subr.mxu0 %v4136_v34  ;;  %4906 = vmatprep.mubr.f32.mxu1 %v6240_v46 }
  0xe3   : > { %5106 = vmatpush3.msra.mxu0 %v4136_v34  ;;  %4907 = vmatmul.mubr.f32.gmra.mxu1 %v6242_v39  ;;  %v6366_v34 = vld [vmem:[#allocation2 + $0x38] sm:$0xff]  ;;  %v6379_v19 = vsel %vm518_vm0, %v1911_v51, %v6360_v8 }
  0xe4   : > { %4986 = vmatprep.mubr.f32.mxu0 %v6275_v60  ;;  %5027 = vmatprep.subr.mxu1 %v4119_v13  ;;  %7496 = vst [vmem:[#allocation13_spill] sm:$0xff] %v6379_v19 }
  0xe5   : > { %4987 = vmatmul.mubr.f32.gmra.mxu0 %v1895_v47  ;;  %5028 = vmatpush3.msra.mxu1 %v4119_v13  ;;  %v6368_v13 = vld [vmem:[#allocation2] sm:$0xff]  ;;  %v6374_v47 = vld [vmem:[#allocation2 + $0x30] sm:$0x3] }
  0xe6   : > { %5107 = vmatprep.subr.mxu0 %v4135_v42  ;;  %4909 = vmatprep.mubr.f32.mxu1 %v6262_v0  ;;  %v6386_v24 = vrot.slane %v6368_v13, 1  ;;  %v1919_v49 = vrot.slane %v6374_v47, 1 }
  0xe7   : > { %5108 = vmatpush3.msra.mxu0 %v4135_v42  ;;  %4910 = vmatmul.mubr.f32.gmra.mxu1 %v6264_v14  ;;  %v4115_v42 = vld [vmem:[%s7424_s1 + $0x2a0] sm:$0xff] }
  0xe8   : > { %4989 = vmatprep.mubr.f32.mxu0 %v6301_v43  ;;  %5029 = vmatprep.subr.mxu1 %v4118_v11  ;;  %7497 = vst [vmem:[#allocation14_spill] sm:$0xff] %v6386_v24 }
  0xe9   : > { %4990 = vmatmul.mubr.f32.gmra.mxu0 %v1900_v62  ;;  %5030 = vmatpush3.msra.mxu1 %v4118_v11  ;;  %v1916_v11 = vrot.slane %v6366_v34, 1  ;;  %v1915_v62 = vsel %vm518_vm0, %v6360_v8, %v1914_v50 }
  0xea   : > { %5109 = vmatprep.subr.mxu0 %v4134_v25  ;;  %4912 = vmatprep.mubr.f32.mxu1 %v6288_v57 }
  0xeb   : > { %5110 = vmatpush3.msra.mxu0 %v4134_v25  ;;  %4913 = vmatmul.mubr.f32.gmra.mxu1 %v6290_v32  ;;  %v6392_v25 = vld [vmem:[#allocation2 + $0xe8] sm:$0xff]  ;;  %v6405_v55 = vsel %vm518_vm0, %v1916_v11, %v6386_v24  ;;  %v4130_v11 = vld [vmem:[%s7424_s1 + $0x318] sm:$0xff] }
  0xec   : > { %4992 = vmatprep.mubr.f32.mxu0 %v6327_v29  ;;  %5031 = vmatprep.subr.mxu1 %v4117_v17  ;;  %7498 = vst [vmem:[#allocation15_spill] sm:$0xff] %v6405_v55  ;;  %v2245_v29 = vrot.slane %v6148_v54, 2  ;;  %v4127_v54 = vld [vmem:[%s7424_s1 + $0x300] sm:$0xff] }
  0xed   : > { %4993 = vmatmul.mubr.f32.gmra.mxu0 %v1905_v12  ;;  %5032 = vmatpush3.msra.mxu1 %v4117_v17  ;;  %v6394_v17 = vld [vmem:[#allocation2 + $0x110] sm:$0xff]  ;;  %v6400_v12 = vld [vmem:[#allocation2 + $0xc8] sm:$0x3] }
  0xee   : > { %5111 = vmatprep.subr.mxu0 %v4133_v2  ;;  %4915 = vmatprep.mubr.f32.mxu1 %v6314_v63  ;;  %v6412_v51 = vrot.slane %v6394_v17, 1  ;;  %v1924_v50 = vrot.slane %v6400_v12, 1 }
  0xef   : > { %5112 = vmatpush3.msra.mxu0 %v4133_v2  ;;  %4916 = vmatmul.mubr.f32.gmra.mxu1 %v6316_v3  ;;  %v4114_v2 = vld [vmem:[%s7424_s1 + $0x298] sm:$0xff] }
  0xf0   : > { %4995 = vmatprep.mubr.f32.mxu0 %v6353_v16  ;;  %5033 = vmatprep.subr.mxu1 %v4116_v9  ;;  %7499 = vst [vmem:[#allocation16_spill] sm:$0xff] %v6412_v51 }
  0xf1   : > { %4996 = vmatmul.mubr.f32.gmra.mxu0 %v1910_v52  ;;  %5034 = vmatpush3.msra.mxu1 %v4116_v9  ;;  %v1921_v9 = vrot.slane %v6392_v25, 1  ;;  %v1920_v52 = vsel %vm518_vm0, %v6386_v24, %v1919_v49 }
  0xf2   : > { %5113 = vmatprep.subr.mxu0 %v4132_v59  ;;  %4918 = vmatprep.mubr.f32.mxu1 %v6340_v61 }
  0xf3   : > { %5114 = vmatpush3.msra.mxu0 %v4132_v59  ;;  %4919 = vmatmul.mubr.f32.gmra.mxu1 %v6342_v44  ;;  %v6418_v59 = vld [vmem:[#allocation2 + $0x1a8] sm:$0xff]  ;;  %v6431_v49 = vsel %vm518_vm0, %v1921_v9, %v6412_v51  ;;  %v6446_v9 = vld [vmem:[#allocation2 + $0xf0] sm:$0xff] }
  0xf4   : > { %4998 = vmatprep.mubr.f32.mxu0 %v6379_v19  ;;  %5035 = vmatprep.subr.mxu1 %v4115_v42  ;;  %7500 = vst [vmem:[#allocation17_spill] sm:$0xff] %v6431_v49  ;;  %v1926_v24 = vrot.slane %v6418_v59, 1  ;;  %v4129_v19 = vld [vmem:[%s7424_s1 + $0x310] sm:$0xff]  ;;  %v6464_v16 = vrot.slane %v6446_v9, 1 }
  0xf5   : > { %4999 = vmatmul.mubr.f32.gmra.mxu0 %v1915_v62  ;;  %5036 = vmatpush3.msra.mxu1 %v4115_v42  ;;  %v6420_v42 = vld [vmem:[#allocation2 + $0x70] sm:$0xff] }
  0xf6   : > { %5115 = vmatprep.subr.mxu0 %v4131_v31  ;;  %4921 = vmatprep.mubr.f32.mxu1 %v6366_v34  ;;  %v6426_v62 = vld [vmem:[#allocation2 + $0x150] sm:$0x3]  ;;  %v6438_v8 = vrot.slane %v6420_v42, 1  ;;  %7503 = vst [vmem:[#allocation20_spill] sm:$0xff] %v6464_v16 }
  0xf7   : > { %5116 = vmatpush3.msra.mxu0 %v4131_v31  ;;  %4922 = vmatmul.mubr.f32.gmra.mxu1 %v6368_v13  ;;  %v4113_v31 = vld [vmem:[%s7424_s1 + $0x290] sm:$0xff] }
  0xf8   : > { %5001 = vmatprep.mubr.f32.mxu0 %v6405_v55  ;;  %5037 = vmatprep.subr.mxu1 %v4114_v2  ;;  %7501 = vst [vmem:[#allocation18_spill] sm:$0xff] %v6438_v8  ;;  %v6444_v55 = vld [vmem:[#allocation2 + $0x78] sm:$0xff] }
  0xf9   : > { %5002 = vmatmul.mubr.f32.gmra.mxu0 %v1920_v52  ;;  %5038 = vmatpush3.msra.mxu1 %v4114_v2  ;;  %v1925_v52 = vsel %vm518_vm0, %v6412_v51, %v1924_v50  ;;  %v1929_v2 = vrot.slane %v6426_v62, 1  ;;  %v6457_v50 = vsel %vm518_vm0, %v1926_v24, %v6438_v8  ;;  %v1931_v51 = vrot.slane %v6444_v55, 1  ;;  %v4128_v24 = vld [vmem:[%s7424_s1 + $0x308] sm:$0xff] }
  0xfa   : > { %5117 = vmatprep.subr.mxu0 %v4130_v11  ;;  %4924 = vmatprep.mubr.f32.mxu1 %v6392_v25  ;;  %7502 = vst [vmem:[#allocation19_spill] sm:$0xff] %v6457_v50 }
  0xfb   : > { %5118 = vmatpush3.msra.mxu0 %v4130_v11  ;;  %4925 = vmatmul.mubr.f32.gmra.mxu1 %v6394_v17  ;;  %v4112_v11 = vld [vmem:[%s7424_s1 + $0x288] sm:$0xff] }
  0xfc   : > { %5004 = vmatprep.mubr.f32.mxu0 %v6431_v49  ;;  %5039 = vmatprep.subr.mxu1 %v4113_v31  ;;  %v5390_v49 = vld [vmem:[#allocation2 + $0x68] sm:$0xff] }
  0xfd   : > { %5005 = vmatmul.mubr.f32.gmra.mxu0 %v1925_v52  ;;  %5040 = vmatpush3.msra.mxu1 %v4113_v31  ;;  %v1930_v52 = vsel %vm518_vm0, %v6438_v8, %v1929_v2  ;;  %v1934_v31 = vrot.slane %v6452_v53, 1  ;;  %v2243_v21 = vrot.slane %v5390_v49, 2  ;;  %v6478_v2 = vsel %vm518_vm0, %v1931_v51, %v6464_v16 }
  0xfe   : > { %5119 = vmatprep.subr.mxu0 %v4129_v19  ;;  %4927 = vmatprep.mubr.f32.mxu1 %v6418_v59  ;;  %7504 = vst [vmem:[#allocation21_spill] sm:$0xff] %v6478_v2  ;;  %v7505_v51 = vrot.slane %v5608_v22, 2  ;;  %v2250_v8 = vrot.slane %v6161_v37, 2  ;;  %v6501_v22 = vld [vmem:[#allocation2 + $0x28] sm:$0xff] }
  0xff   : > { %5120 = vmatpush3.msra.mxu0 %v4129_v19  ;;  %4928 = vmatmul.mubr.f32.gmra.mxu1 %v6420_v42  ;;  %v4111_v19 = vld [vmem:[%s7424_s1 + $0x280] sm:$0xff]  ;;  %v1935_v49 = vsel %vm518_vm0, %v6464_v16, %v1934_v31  ;;  %v6496_v31 = vld [vmem:[#allocation2 + $0xd0] sm:$0xff]  ;;  %v2290_v16 = vrot.slane %v6296_v58, 2 }
 0x100   : > { %5007 = vmatprep.mubr.f32.mxu0 %v6457_v50  ;;  %5041 = vmatprep.subr.mxu1 %v4112_v11  ;;  %v2251_v37 = vsel %vm1098_vm1, %v5924_v45, %v2250_v8  ;;  %v4173_v45 = vld [vmem:[%s7424_s1 + $0x470] sm:$0xff]  ;;  %v2260_v8 = vrot.slane %v6188_v4, 2  ;;  %v2295_v50 = vrot.slane %v6322_v20, 2 }
 0x101   : > { %5008 = vmatmul.mubr.f32.gmra.mxu0 %v1930_v52  ;;  %5042 = vmatpush3.msra.mxu1 %v4112_v11  ;;  %v2244_v11 = vsel %vm1098_vm1, %v7505_v51, %v2243_v21  ;;  %v2246_v52 = vsel %vm1098_vm1, %v2243_v21, %v2245_v29  ;;  %v4174_v21 = vld [vmem:[%s7424_s1 + $0x478] sm:$0xff]  ;;  %v2255_v29 = vrot.slane %v6174_v38, 2  ;;  %v4156_v51 = vld [vmem:[%s7424_s1 + $0x3e8] sm:$0xff] }
 0x102   : > { %5121 = vmatprep.subr.mxu0 %v4128_v24  ;;  %4930 = vmatprep.mubr.f32.mxu1 %v6444_v55  ;;  %v2261_v4 = vsel %vm1098_vm1, %v5965_v1, %v2260_v8  ;;  %v4171_v1 = vld [vmem:[%s7424_s1 + $0x460] sm:$0xff]  ;;  %v4153_v8 = vld [vmem:[%s7424_s1 + $0x3d0] sm:$0xff] }
 0x103   : > { %5122 = vmatpush3.msra.mxu0 %v4128_v24  ;;  %4931 = vmatmul.mubr.f32.gmra.mxu1 %v6446_v9  ;;  %v4158_v24 = vld [vmem:[%s7424_s1 + $0x3f8] sm:$0xff]  ;;  %v2256_v38 = vsel %vm1098_vm1, %v5945_v26, %v2255_v29  ;;  %v4172_v26 = vld [vmem:[%s7424_s1 + $0x468] sm:$0xff] }
 0x104   : > { %5010 = vmatprep.mubr.f32.mxu0 %v6478_v2  ;;  %5043 = vmatprep.subr.mxu1 %v4111_v19  ;;  %v4154_v29 = vld [vmem:[%s7424_s1 + $0x3d8] sm:$0xff] }
 0x105   : > { %5011 = vmatmul.mubr.f32.gmra.mxu0 %v1935_v49  ;;  %5044 = vmatpush3.msra.mxu1 %v4111_v19  ;;  %v6511_v19 = vld [vmem:[#allocation2 + $0x60] sm:$0xff]  ;;  %v4157_v49 = vld [vmem:[%s7424_s1 + $0x3f0] sm:$0xff] }
 0x106   : > { %5123 = vmatprep.subr.mxu0 %v4127_v54  ;;  %5045 = vmatprep.mubr.f32.mxu1 %v2244_v11  ;;  %v6533_v11 = vld [vmem:[#allocation2 + $0x198] sm:$0xff] }
 0x107   : > { %5124 = vmatpush3.msra.mxu0 %v4127_v54  ;;  %5046 = vmatmul.mubr.f32.vlgmr.msra.gmra.mxu1 %v2246_v52  ;;  %v6517_v54 = vld [vmem:[#allocation2 + $0x118] sm:$0xff]  ;;  %v2265_v52 = vrot.slane %v6202_v5, 2 }
 0x108   : > { %5125 = vmatprep.mubr.f32.mxu0 %v6496_v31  ;;  %5173 = vmatprep.subr.mxu1 %v4158_v24 }
 0x109   : > { %5126 = vmatmul.mubr.f32.vlgmr.msra.gmra.mxu0 %v6501_v22  ;;  %5174 = vmatpush3.msra.mxu1 %v4158_v24  ;;  %v4155_v24 = vld [vmem:[%s7424_s1 + $0x3e0] sm:$0xff]  ;;  %v2266_v5 = vsel %vm1098_vm1, %v5985_v35, %v2265_v52  ;;  %v4170_v35 = vld [vmem:[%s7424_s1 + $0x458] sm:$0xff]  ;;  %v4169_v52 = vld [vmem:[%s7424_s1 + $0x450] sm:$0xff] }
 0x10a   : > { %5253 = vmatprep.subr.mxu0 %v4174_v21  ;;  %5048 = vmatprep.mubr.f32.mxu1 %v5937_v15  ;;  %v6527_v15 = vld [vmem:[#allocation2 + $0x188] sm:$0xff] }
 0x10b   : > { %5254 = vmatpush3.msra.mxu0 %v4174_v21  ;;  %5049 = vmatmul.mubr.f32.gmra.mxu1 %v2251_v37  ;;  %v6549_v21 = vld [vmem:[#allocation2 + $0x1a0] sm:$0xff]  ;;  %v2270_v37 = vrot.slane %v6216_v30, 2 }
 0x10c   : > { %5128 = vmatprep.mubr.f32.mxu0 %v6511_v19  ;;  %5175 = vmatprep.subr.mxu1 %v4157_v49 }
 0x10d   : > { %5129 = vmatmul.mubr.f32.gmra.mxu0 %v6517_v54  ;;  %5176 = vmatpush3.msra.mxu1 %v4157_v49  ;;  %v6565_v49 = vld [vmem:[#allocation2 + $0x180] sm:$0xff]  ;;  %v2271_v30 = vsel %vm1098_vm1, %v6005_v10, %v2270_v37 }
 0x10e   : > { %5255 = vmatprep.subr.mxu0 %v4173_v45  ;;  %5051 = vmatprep.mubr.f32.mxu1 %v5956_v33  ;;  %v6543_v33 = vld [vmem:[#allocation2 + $0xd8] sm:$0xff] }
 0x10f   : > { %5256 = vmatpush3.msra.mxu0 %v4173_v45  ;;  %5052 = vmatmul.mubr.f32.gmra.mxu1 %v2256_v38  ;;  %v2275_v45 = vrot.slane %v6230_v56, 2  ;;  %v2277_v56 = vrot.slane %v6240_v46, 2 }
 0x110   : > { %5131 = vmatprep.mubr.f32.mxu0 %v6527_v15  ;;  %5177 = vmatprep.subr.mxu1 %v4156_v51 }
 0x111   : > { %5132 = vmatmul.mubr.f32.gmra.mxu0 %v6533_v11  ;;  %5178 = vmatpush3.msra.mxu1 %v4156_v51 }
 0x112   : > { %5257 = vmatprep.subr.mxu0 %v4172_v26  ;;  %5054 = vmatprep.mubr.f32.mxu1 %v5976_v7  ;;  %v6559_v7 = vld [vmem:[#allocation2 + $0x88] sm:$0xff] }
 0x113   : > { %5258 = vmatpush3.msra.mxu0 %v4172_v26  ;;  %5055 = vmatmul.mubr.f32.gmra.mxu1 %v2261_v4  ;;  %v6585_v26 = vld [vmem:[#allocation2 + $0x140] sm:$0xff]  ;;  %v6591_v4 = vrot.slane %v6242_v39, 2 }
 0x114   : > { %5134 = vmatprep.mubr.f32.mxu0 %v6543_v33  ;;  %5179 = vmatprep.subr.mxu1 %v4155_v24 }
 0x115   : > { %5135 = vmatmul.mubr.f32.gmra.mxu0 %v6549_v21  ;;  %5180 = vmatpush3.msra.mxu1 %v4155_v24 }
 0x116   : > { %5259 = vmatprep.subr.mxu0 %v4171_v1  ;;  %5057 = vmatprep.mubr.f32.mxu1 %v5996_v28  ;;  %v6577_v28 = vld [vmem:[#allocation2 + $0x80] sm:$0xff] }
 0x117   : > { %5260 = vmatpush3.msra.mxu0 %v4171_v1  ;;  %5058 = vmatmul.mubr.f32.gmra.mxu1 %v2266_v5  ;;  %v2280_v1 = vrot.slane %v6248_v40, 2  ;;  %v4152_v5 = vld [vmem:[%s7424_s1 + $0x3c8] sm:$0xff]  ;;  %v6618_v40 = vsel %vm1098_vm1, %v2277_v56, %v6591_v4  ;;  %v4151_v56 = vld [vmem:[%s7424_s1 + $0x3c0] sm:$0xff] }
 0x118   : > { %5137 = vmatprep.mubr.f32.mxu0 %v6559_v7  ;;  %5181 = vmatprep.subr.mxu1 %v4154_v29  ;;  %v6574_v38 = vpop.f32.mrf.mxu1 }
 0x119   : > { %5138 = vmatmul.mubr.f32.gmra.mxu0 %v6565_v49  ;;  %5182 = vmatpush3.msra.mxu1 %v4154_v29  ;;  %v6582_v51 = vpop.f32.mrf.mxu0  ;;  %v2282_v29 = vrot.slane %v6262_v0, 2 }
 0x11a   : > { %5261 = vmatprep.subr.mxu0 %v4170_v35  ;;  %5060 = vmatprep.mubr.f32.mxu1 %v6016_v6  ;;  %v6587_v10 = vpop.f32.mrf.mxu1  ;;  %v2276_v6 = vsel %vm1098_vm1, %v6028_v41, %v2275_v45  ;;  %v4168_v41 = vld [vmem:[%s7424_s1 + $0x448] sm:$0xff] }
 0x11b   : > { %5262 = vmatpush3.msra.mxu0 %v4170_v35  ;;  %5061 = vmatmul.mubr.f32.gmra.mxu1 %v2271_v30  ;;  %v6596_v24 = vpop.f32.mrf.mxu0  ;;  %v6611_v35 = vrot.slane %v6264_v14, 2 }
 0x11c   : > { %5140 = vmatprep.mubr.f32.mxu0 %v6577_v28  ;;  %5183 = vmatprep.subr.mxu1 %v4153_v8 }
 0x11d   : > { %5141 = vmatmul.mubr.f32.gmra.mxu0 %v6585_v26  ;;  %5184 = vmatpush3.msra.mxu1 %v4153_v8  ;;  %v6606_v37 = vpop.f32.mrf.mxu1  ;;  %v2285_v8 = vrot.slane %v6270_v27, 2  ;;  %v6644_v27 = vsel %vm1098_vm1, %v2282_v29, %v6611_v35 }
 0x11e   : > { %5263 = vmatprep.subr.mxu0 %v4169_v52  ;;  %5063 = vmatprep.mubr.f32.mxu1 %v6041_v36  ;;  %v2281_v36 = vsel %vm1098_vm1, %v6591_v4, %v2280_v1 }
 0x11f   : > { %5264 = vmatpush3.msra.mxu0 %v4169_v52  ;;  %5064 = vmatmul.mubr.f32.gmra.mxu1 %v2276_v6  ;;  %v6620_v30 = vpop.f32.mrf.mxu0  ;;  %v6622_v45 = vpop.f32.mrf.mxu1  ;;  %v6637_v6 = vrot.slane %v6290_v32, 2 }
 0x120   : > { %5143 = vmatprep.mubr.f32.mxu0 %v6240_v46  ;;  %5185 = vmatprep.subr.mxu1 %v4152_v5  ;;  %v2287_v46 = vrot.slane %v6288_v57, 2 }
 0x121   : > { %5144 = vmatmul.mubr.f32.gmra.mxu0 %v6242_v39  ;;  %5186 = vmatpush3.msra.mxu1 %v4152_v5  ;;  %v6632_v52 = vpop.f32.mrf.mxu0  ;;  %v4167_v39 = vld [vmem:[%s7424_s1 + $0x440] sm:$0xff]  ;;  %v2286_v5 = vsel %vm1098_vm1, %v6611_v35, %v2285_v8  ;;  %v6663_v8 = vrot.slane %v6316_v3, 2  ;;  %v2291_v2 = vsel %vm1098_vm1, %v6637_v6, %v2290_v16 }
 0x122   : > { %5265 = vmatprep.subr.mxu0 %v4168_v41  ;;  %5066 = vmatprep.mubr.f32.mxu1 %v6618_v40  ;;  %v6670_v58 = vsel %vm1098_vm1, %v2287_v46, %v6637_v6  ;;  %v6687_v46 = vrot.slane %v6342_v44, 2 }
 0x123   : > { %5266 = vmatpush3.msra.mxu0 %v4168_v41  ;;  %5067 = vmatmul.mubr.f32.gmra.mxu1 %v2281_v36  ;;  %v6646_v1 = vpop.f32.mrf.mxu1  ;;  %v4150_v41 = vld [vmem:[%s7424_s1 + $0x3b8] sm:$0xff] }
 0x124   : > { %7506 = vst [vmem:[#allocation22_spill] sm:$0xff] %v6646_v1  ;;  %5146 = vmatprep.mubr.f32.mxu0 %v6262_v0  ;;  %5187 = vmatprep.subr.mxu1 %v4151_v56  ;;  %v2292_v0 = vrot.slane %v6314_v63, 2  ;;  %7509 = vst [vmem:[#allocation25_spill] sm:$0xff] %v6687_v46 }
 0x125   : > { %5147 = vmatmul.mubr.f32.gmra.mxu0 %v6264_v14  ;;  %5188 = vmatpush3.msra.mxu1 %v4151_v56  ;;  %v6656_v36 = vpop.f32.mrf.mxu0  ;;  %v6658_v29 = vpop.f32.mrf.mxu1  ;;  %v4166_v14 = vld [vmem:[%s7424_s1 + $0x438] sm:$0xff] }
 0x126   : > { %7507 = vst [vmem:[#allocation23_spill] sm:$0xff] %v6658_v29  ;;  %5267 = vmatprep.subr.mxu0 %v4167_v39  ;;  %5069 = vmatprep.mubr.f32.mxu1 %v6644_v27  ;;  %v6694_v20 = vsel %vm1098_vm1, %v2292_v0, %v6663_v8  ;;  %v4148_v0 = vld [vmem:[%s7424_s1 + $0x3a8] sm:$0xff]  ;;  %v2305_v29 = vrot.slane %v6374_v47, 2 }
 0x127   : > { %5268 = vmatpush3.msra.mxu0 %v4167_v39  ;;  %5070 = vmatmul.mubr.f32.gmra.mxu1 %v2286_v5  ;;  %v6672_v56 = vpop.f32.mrf.mxu0  ;;  %v4149_v39 = vld [vmem:[%s7424_s1 + $0x3b0] sm:$0xff] }
 0x128   : > { %5149 = vmatprep.mubr.f32.mxu0 %v6288_v57  ;;  %5189 = vmatprep.subr.mxu1 %v4150_v41  ;;  %v2297_v57 = vrot.slane %v6340_v61, 2 }
 0x129   : > { %5150 = vmatmul.mubr.f32.gmra.mxu0 %v6290_v32  ;;  %5190 = vmatpush3.msra.mxu1 %v4150_v41  ;;  %v6682_v5 = vpop.f32.mrf.mxu1  ;;  %v4165_v32 = vld [vmem:[%s7424_s1 + $0x430] sm:$0xff] }
 0x12a   : > { %7508 = vst [vmem:[#allocation24_spill] sm:$0xff] %v6682_v5  ;;  %5269 = vmatprep.subr.mxu0 %v4166_v14  ;;  %5072 = vmatprep.mubr.f32.mxu1 %v6670_v58  ;;  %v2296_v5 = vsel %vm1098_vm1, %v6663_v8, %v2295_v50 }
 0x12b   : > { %5270 = vmatpush3.msra.mxu0 %v4166_v14  ;;  %5073 = vmatmul.mubr.f32.gmra.mxu1 %v2291_v2  ;;  %v6696_v16 = vpop.f32.mrf.mxu0  ;;  %v6698_v41 = vpop.f32.mrf.mxu1  ;;  %v2300_v2 = vrot.slane %v6348_v18, 2  ;;  %v6720_v18 = vsel %vm1098_vm1, %v2297_v57, %v6687_v46 }
 0x12c   : > { %7510 = vst [vmem:[#allocation26_spill] sm:$0xff] %v6698_v41  ;;  %5152 = vmatprep.mubr.f32.mxu0 %v6314_v63  ;;  %5191 = vmatprep.subr.mxu1 %v4149_v39  ;;  %v2302_v63 = vrot.slane %v6366_v34, 2  ;;  %v6713_v41 = vrot.slane %v6368_v13, 2  ;;  %7512 = vst [vmem:[#allocation28_spill] sm:$0xff] %v6720_v18 }
 0x12d   : > { %5153 = vmatmul.mubr.f32.gmra.mxu0 %v6316_v3  ;;  %5192 = vmatpush3.msra.mxu1 %v4149_v39  ;;  %v6708_v14 = vpop.f32.mrf.mxu0  ;;  %v4164_v3 = vld [vmem:[%s7424_s1 + $0x428] sm:$0xff]  ;;  %v2301_v39 = vsel %vm1098_vm1, %v6687_v46, %v2300_v2  ;;  %v6739_v2 = vrot.slane %v6394_v17, 2  ;;  %v3396_v46 = vrot.slane %v6533_v11, 2 }
 0x12e   : > { %5271 = vmatprep.subr.mxu0 %v4165_v32  ;;  %5075 = vmatprep.mubr.f32.mxu1 %v6694_v20  ;;  %7511 = vst [vmem:[#allocation27_spill] sm:$0xff] %v6713_v41  ;;  %v6746_v47 = vsel %vm1098_vm1, %v2302_v63, %v6713_v41  ;;  %v6763_v63 = vrot.slane %v6420_v42, 2 }
 0x12f   : > { %5272 = vmatpush3.msra.mxu0 %v4165_v32  ;;  %5076 = vmatmul.mubr.f32.gmra.mxu1 %v2296_v5  ;;  %v6722_v50 = vpop.f32.mrf.mxu1  ;;  %v4147_v5 = vld [vmem:[%s7424_s1 + $0x3a0] sm:$0xff]  ;;  %7515 = vst [vmem:[#allocation31_spill] sm:$0xff] %v6739_v2  ;;  %7516 = vst [vmem:[#allocation32_spill] sm:$0xff] %v6746_v47 }
 0x130   : > { %7513 = vst [vmem:[#allocation29_spill] sm:$0xff] %v6722_v50  ;;  %5155 = vmatprep.mubr.f32.mxu0 %v6340_v61  ;;  %5193 = vmatprep.subr.mxu1 %v4148_v0  ;;  %v2307_v61 = vrot.slane %v6392_v25, 2  ;;  %v2310_v50 = vrot.slane %v6400_v12, 2  ;;  %7518 = vst [vmem:[#allocation34_spill] sm:$0xff] %v6763_v63 }
 0x131   : > { %5156 = vmatmul.mubr.f32.gmra.mxu0 %v6342_v44  ;;  %5194 = vmatpush3.msra.mxu1 %v4148_v0  ;;  %v6732_v32 = vpop.f32.mrf.mxu0  ;;  %v6734_v57 = vpop.f32.mrf.mxu1  ;;  %v4163_v44 = vld [vmem:[%s7424_s1 + $0x420] sm:$0xff] }
 0x132   : > { %7514 = vst [vmem:[#allocation30_spill] sm:$0xff] %v6734_v57  ;;  %5273 = vmatprep.subr.mxu0 %v4164_v3  ;;  %5078 = vmatprep.mubr.f32.mxu1 %v6720_v18  ;;  %v2306_v57 = vsel %vm1098_vm1, %v6713_v41, %v2305_v29  ;;  %v6770_v12 = vsel %vm1098_vm1, %v2307_v61, %v6739_v2  ;;  %v4145_v61 = vld [vmem:[%s7424_s1 + $0x390] sm:$0xff]  ;;  %v2634_v41 = vld [vmem:[#allocation2 + $0x168] sm:$0x3] }
 0x133   : > { %5274 = vmatpush3.msra.mxu0 %v4164_v3  ;;  %5079 = vmatmul.mubr.f32.gmra.mxu1 %v2301_v39  ;;  %v6748_v0 = vpop.f32.mrf.mxu0  ;;  %v4146_v3 = vld [vmem:[%s7424_s1 + $0x398] sm:$0xff]  ;;  %7519 = vst [vmem:[#allocation35_spill] sm:$0xff] %v6770_v12 }
 0x134   : > { %5158 = vmatprep.mubr.f32.mxu0 %v6366_v34  ;;  %5195 = vmatprep.subr.mxu1 %v4147_v5  ;;  %v2312_v34 = vrot.slane %v6418_v59, 2 }
 0x135   : > { %5159 = vmatmul.mubr.f32.gmra.mxu0 %v6368_v13  ;;  %5196 = vmatpush3.msra.mxu1 %v4147_v5  ;;  %v6758_v39 = vpop.f32.mrf.mxu1  ;;  %v4162_v13 = vld [vmem:[%s7424_s1 + $0x418] sm:$0xff] }
 0x136   : > { %7517 = vst [vmem:[#allocation33_spill] sm:$0xff] %v6758_v39  ;;  %5275 = vmatprep.subr.mxu0 %v4163_v44  ;;  %5081 = vmatprep.mubr.f32.mxu1 %v6746_v47  ;;  %v2311_v39 = vsel %vm1098_vm1, %v6739_v2, %v2310_v50  ;;  %v2320_v2 = vrot.slane %v6452_v53, 2  ;;  %v4160_v53 = vld [vmem:[%s7424_s1 + $0x408] sm:$0xff] }
 0x137   : > { %5276 = vmatpush3.msra.mxu0 %v4163_v44  ;;  %5082 = vmatmul.mubr.f32.gmra.mxu1 %v2306_v57  ;;  %v6772_v29 = vpop.f32.mrf.mxu0  ;;  %v6774_v5 = vpop.f32.mrf.mxu1  ;;  %v2315_v57 = vrot.slane %v6426_v62, 2  ;;  %v6796_v62 = vsel %vm1098_vm1, %v2312_v34, %v6763_v63 }
 0x138   : > { %7520 = vst [vmem:[#allocation36_spill] sm:$0xff] %v6774_v5  ;;  %5161 = vmatprep.mubr.f32.mxu0 %v6392_v25  ;;  %5197 = vmatprep.subr.mxu1 %v4146_v3  ;;  %v2317_v25 = vrot.slane %v6444_v55, 2  ;;  %v6789_v5 = vrot.slane %v6446_v9, 2  ;;  %7522 = vst [vmem:[#allocation38_spill] sm:$0xff] %v6796_v62 }
 0x139   : > { %5162 = vmatmul.mubr.f32.gmra.mxu0 %v6394_v17  ;;  %5198 = vmatpush3.msra.mxu1 %v4146_v3  ;;  %v6784_v44 = vpop.f32.mrf.mxu0  ;;  %v4161_v17 = vld [vmem:[%s7424_s1 + $0x410] sm:$0xff]  ;;  %v2316_v3 = vsel %vm1098_vm1, %v6763_v63, %v2315_v57  ;;  %v3004_v63 = vrot.slane %v6511_v19, 1 }
 0x13a   : > { %5277 = vmatprep.subr.mxu0 %v4162_v13  ;;  %5084 = vmatprep.mubr.f32.mxu1 %v6770_v12  ;;  %7521 = vst [vmem:[#allocation37_spill] sm:$0xff] %v6789_v5  ;;  %v6821_v57 = vsel %vm1098_vm1, %v2317_v25, %v6789_v5  ;;  %v6833_v12 = vld [vmem:[#allocation2 + $0x100] sm:$0xff] }
 0x13b   : > { %5278 = vmatpush3.msra.mxu0 %v4162_v13  ;;  %5085 = vmatmul.mubr.f32.gmra.mxu1 %v2311_v39  ;;  %v6798_v50 = vpop.f32.mrf.mxu1  ;;  %v4144_v39 = vld [vmem:[%s7424_s1 + $0x388] sm:$0xff]  ;;  %7525 = vst [vmem:[#allocation41_spill] sm:$0xff] %v6821_v57  ;;  %7527 = vst [vmem:[#allocation43_spill] sm:$0xff] %v6833_v12 }
 0x13c   : > { %7523 = vst [vmem:[#allocation39_spill] sm:$0xff] %v6798_v50  ;;  %5164 = vmatprep.mubr.f32.mxu0 %v6418_v59  ;;  %5199 = vmatprep.subr.mxu1 %v4145_v61  ;;  %v2631_v50 = vld [vmem:[#allocation2 + $0x128] sm:$0x3]  ;;  %v2999_v59 = vrot.slane %v6496_v31, 1 }
 0x13d   : > { %5165 = vmatmul.mubr.f32.gmra.mxu0 %v6420_v42  ;;  %5200 = vmatpush3.msra.mxu1 %v4145_v61  ;;  %v6808_v13 = vpop.f32.mrf.mxu0  ;;  %v6810_v34 = vpop.f32.mrf.mxu1  ;;  %v3000_v61 = vrot.slane %v6501_v22, 1 }
 0x13e   : > { %7524 = vst [vmem:[#allocation40_spill] sm:$0xff] %v6810_v34  ;;  %5279 = vmatprep.subr.mxu0 %v4161_v17  ;;  %5087 = vmatprep.mubr.f32.mxu1 %v6796_v62  ;;  %v3385_v34 = vrot.slane %v6496_v31, 2  ;;  %v3005_v62 = vrot.slane %v6517_v54, 1  ;;  %v4143_v31 = vld [vmem:[%s7424_s1 + $0x380] sm:$0xff] }
 0x13f   : > { %5280 = vmatpush3.msra.mxu0 %v4161_v17  ;;  %5088 = vmatmul.mubr.f32.gmra.mxu1 %v2316_v3  ;;  %v6817_v42 = vpop.f32.mrf.mxu0  ;;  %v2321_v17 = vsel %vm1098_vm1, %v6789_v5, %v2320_v2  ;;  %v3002_v3 = vrot.slane %v2631_v50, 1  ;;  %v6840_v2 = vld [vmem:[#allocation2 + $0x178] sm:$0xff]  ;;  %v3388_v5 = vrot.slane %v2631_v50, 2  ;;  %v3001_v1 = vsel %vm518_vm0, %v2999_v59, %v3000_v61  ;;  %v2637_v59 = vld [vmem:[#allocation2 + $0xa0] sm:$0x3] }
 0x140   : > { %5167 = vmatprep.mubr.f32.mxu0 %v6444_v55  ;;  %5201 = vmatprep.subr.mxu1 %v4144_v39  ;;  %v3386_v55 = vrot.slane %v6501_v22, 2  ;;  %7528 = vst [vmem:[#allocation44_spill] sm:$0xff] %v6840_v2  ;;  %v4159_v22 = vld [vmem:[%s7424_s1 + $0x400] sm:$0xff] }
 0x141   : > { %5168 = vmatmul.mubr.f32.gmra.mxu0 %v6446_v9  ;;  %5202 = vmatpush3.msra.mxu1 %v4144_v39  ;;  %v6831_v25 = vpop.f32.mrf.mxu1  ;;  %v3390_v9 = vrot.slane %v6511_v19, 2  ;;  %v3391_v39 = vrot.slane %v6517_v54, 2  ;;  %v3003_v50 = vsel %vm518_vm0, %v3000_v61, %v3002_v3  ;;  %v3007_v19 = vrot.slane %v2634_v41, 1 }
 0x142   : > { %7526 = vst [vmem:[#allocation42_spill] sm:$0xff] %v6831_v25  ;;  %5281 = vmatprep.subr.mxu0 %v4160_v53  ;;  %5090 = vmatprep.mubr.f32.mxu1 %v6821_v57  ;;  %v3009_v54 = vrot.slane %v6527_v15, 1  ;;  %v3006_v57 = vsel %vm518_vm0, %v3004_v63, %v3005_v62  ;;  %v3393_v61 = vrot.slane %v2634_v41, 2  ;;  %v3395_v3 = vrot.slane %v6527_v15, 2 }
 0x143   : > { %5282 = vmatpush3.msra.mxu0 %v4160_v53  ;;  %5091 = vmatmul.mubr.f32.gmra.mxu1 %v2321_v17  ;;  %v6844_v25 = vpop.f32.mrf.mxu0  ;;  %v6846_v47 = vpop.f32.mrf.mxu1  ;;  %v3010_v53 = vrot.slane %v6533_v11, 1  ;;  %v3008_v63 = vsel %vm518_vm0, %v3005_v62, %v3007_v19  ;;  %v3015_v41 = vrot.slane %v6549_v21, 1  ;;  %v3401_v62 = vrot.slane %v6549_v21, 2 }
 0x144   : > { %7529 = vst [vmem:[#allocation45_spill] sm:$0xff] %v6846_v47  ;;  %5170 = vmatprep.mubr.f32.mxu0 %v6833_v12  ;;  %5203 = vmatprep.subr.mxu1 %v4143_v31  ;;  %v3387_v47 = vsel %vm1098_vm1, %v3385_v34, %v3386_v55  ;;  %v3389_v12 = vsel %vm1098_vm1, %v3386_v55, %v3388_v5  ;;  %v3012_v34 = vrot.slane %v2637_v59, 1  ;;  %v2640_v55 = vld [vmem:[#allocation2 + $0x48] sm:$0x3] }
 0x145   : > { %5171 = vmatmul.mubr.f32.gmra.mxu0 %v6840_v2  ;;  %5204 = vmatpush3.msra.mxu1 %v4143_v31  ;;  %v6857_v17 = vpop.f32.mrf.mxu0  ;;  %v3392_v31 = vsel %vm1098_vm1, %v3390_v9, %v3391_v39  ;;  %v3011_v11 = vsel %vm518_vm0, %v3009_v54, %v3010_v53  ;;  %v3017_v54 = vrot.slane %v2640_v55, 1 }
 0x146   : > { %5283 = vmatprep.subr.mxu0 %v4159_v22  ;;  %5205 = vmatprep.mubr.f32.mxu1 %v3001_v1  ;;  %v3014_v1 = vrot.slane %v6543_v33, 1 }
 0x147   : > { %5284 = vmatpush3.msra.mxu0 %v4159_v22  ;;  %v4727_v18 = vpop.f32.mrf.mxu1  ;;  %5206 = vmatmul.mubr.f32.vlgmr.msra.gmra.mxu1 %v3003_v50 }
 0x148   : > { %v945_v2 = vadd.f32 %v4727_v18, %v6582_v51  ;;  %5285 = vmatprep.mubr.f32.mxu0 %v3387_v47  ;;  %5208 = vmatprep.mubr.f32.mxu1 %v3006_v57  ;;  %v3394_v51 = vsel %vm1098_vm1, %v3391_v39, %v3393_v61  ;;  %v3398_v18 = vrot.slane %v2637_v59, 2  ;;  %v3400_v47 = vrot.slane %v6543_v33, 2 }
 0x149   : > { %v4807_v5 = vpop.f32.mrf.mxu0  ;;  %5286 = vmatmul.mubr.f32.vlgmr.msra.gmra.mxu0 %v3389_v12  ;;  %v939_v15 = vpop.f32.mrf.mxu1  ;;  %v3397_v12 = vsel %vm1098_vm1, %v3395_v3, %v3396_v46  ;;  %v3019_v39 = vrot.slane %v6559_v7, 1  ;;  %v3020_v59 = vrot.slane %v6565_v49, 1  ;;  %v3016_v61 = vsel %vm518_vm0, %v3014_v1, %v3015_v41 }
 0x14a   : > { %v6870_v22 = vadd.f32 %v4807_v5, %v945_v2  ;;  %v940_v9 = vadd.f32 %v939_v15, %v6596_v24  ;;  %5288 = vmatprep.mubr.f32.mxu0 %v3392_v31  ;;  %v3013_v24 = vsel %vm518_vm0, %v3010_v53, %v3012_v34  ;;  %v2643_v31 = vld [vmem:[#allocation2 + $0x170] sm:$0x3]  ;;  %v3403_v5 = vrot.slane %v2640_v55, 2 }
 0x14b   : > { %v1294_v57 = vpop.f32.mrf.mxu0  ;;  %v4730_v50 = vpop.f32.mrf.mxu1  ;;  %5209 = vmatmul.mubr.f32.gmra.mxu1 %v3008_v63  ;;  %v3405_v53 = vrot.slane %v6559_v7, 2  ;;  %v3406_v34 = vrot.slane %v6565_v49, 2  ;;  %v3025_v55 = vrot.slane %v6585_v26, 1 }
 0x14c   : > { %v6877_v19 = vadd.f32 %v1294_v57, %v940_v9  ;;  %v955_v2 = vadd.f32 %v4730_v50, %v6620_v30  ;;  %5211 = vmatprep.mubr.f32.mxu1 %v3011_v11  ;;  %v3399_v30 = vsel %vm1098_vm1, %v3396_v46, %v3398_v18  ;;  %v3402_v9 = vsel %vm1098_vm1, %v3400_v47, %v3401_v62  ;;  %v2646_v50 = vld [vmem:[#allocation2 + $0x20] sm:$0x3] }
 0x14d   : > { %v4810_v33 = vpop.f32.mrf.mxu0  ;;  %5289 = vmatmul.mubr.f32.gmra.mxu0 %v3394_v51  ;;  %v949_v21 = vpop.f32.mrf.mxu1  ;;  %v3022_v57 = vrot.slane %v2643_v31, 1  ;;  %v3024_v46 = vrot.slane %v6577_v28, 1  ;;  %v3021_v18 = vsel %vm518_vm0, %v3019_v39, %v3020_v59 }
 0x14e   : > { %v6884_v63 = vadd.f32 %v4810_v33, %v955_v2  ;;  %v950_v3 = vadd.f32 %v949_v21, %v6632_v52  ;;  %5291 = vmatprep.mubr.f32.mxu0 %v3397_v12  ;;  %v3018_v52 = vsel %vm518_vm0, %v3015_v41, %v3017_v54  ;;  %v3408_v2 = vrot.slane %v2643_v31, 2  ;;  %v2649_v31 = vld [vmem:[#allocation2 + $0x8] sm:$0x3] }
 0x14f   : > { %v1304_v15 = vpop.f32.mrf.mxu0  ;;  %v4733_v11 = vpop.f32.mrf.mxu1  ;;  %5212 = vmatmul.mubr.f32.gmra.mxu1 %v3013_v24  ;;  %v3410_v41 = vrot.slane %v6577_v28, 2  ;;  %v3411_v24 = vrot.slane %v6585_v26, 2  ;;  %v3407_v21 = vsel %vm1098_vm1, %v3405_v53, %v3406_v34  ;;  %v3026_v28 = vsel %vm518_vm0, %v3024_v46, %v3025_v55 }
 0x150   : > { %v6891_v51 = vadd.f32 %v1304_v15, %v950_v3  ;;  %v965_v1 = vadd.f32 %v4733_v11, %v6656_v36  ;;  %5214 = vmatprep.mubr.f32.mxu1 %v3016_v61  ;;  %v3404_v36 = vsel %vm1098_vm1, %v3401_v62, %v3403_v5  ;;  %v3027_v3 = vrot.slane %v2646_v50, 1 }
 0x151   : > { %v4813_v7 = vpop.f32.mrf.mxu0  ;;  %5292 = vmatmul.mubr.f32.gmra.mxu0 %v3399_v30  ;;  %v959_v49 = vpop.f32.mrf.mxu1  ;;  %v3409_v53 = vsel %vm1098_vm1, %v3406_v34, %v3408_v2  ;;  %v3413_v15 = vrot.slane %v2646_v50, 2  ;;  %v3418_v50 = vrot.slane %v2649_v31, 2 }
 0x152   : > { %v6898_v12 = vadd.f32 %v4813_v7, %v965_v1  ;;  %v960_v47 = vadd.f32 %v959_v49, %v6672_v56  ;;  %5294 = vmatprep.mubr.f32.mxu0 %v3402_v9  ;;  %v3023_v56 = vsel %vm518_vm0, %v3020_v59, %v3022_v57  ;;  %v3412_v59 = vsel %vm1098_vm1, %v3410_v41, %v3411_v24  ;;  %v2652_v7 = vld [vmem:[#allocation2 + $0x90] sm:$0x3] }
 0x153   : > { %v1314_v54 = vpop.f32.mrf.mxu0  ;;  %v4736_v33 = vpop.f32.mrf.mxu1  ;;  %5215 = vmatmul.mubr.f32.gmra.mxu1 %v3018_v52  ;;  %v3028_v52 = vsel %vm518_vm0, %v3025_v55, %v3027_v3  ;;  %v3032_v57 = vrot.slane %v2649_v31, 1  ;;  %v3037_v41 = vrot.slane %v2652_v7, 1 }
 0x154   : > { %v6905_v61 = vadd.f32 %v1314_v54, %v960_v47  ;;  %v975_v39 = vadd.f32 %v4736_v33, %v6696_v16  ;;  %5217 = vmatprep.mubr.f32.mxu1 %v3021_v18  ;;  %v3414_v18 = vsel %vm1098_vm1, %v3411_v24, %v3413_v15  ;;  %v2655_v33 = vld [vmem:[#allocation2 + $0xa8] sm:$0x3] }
 0x155   : > { %v4816_v30 = vpop.f32.mrf.mxu0  ;;  %5295 = vmatmul.mubr.f32.gmra.mxu0 %v3404_v36  ;;  %v969_v62 = vpop.f32.mrf.mxu1  ;;  %v3033_v2 = vsel %vm518_vm0, %v6256_v48, %v3032_v57 }
 0x156   : > { %v6910_v26 = vadd.f32 %v4816_v30, %v975_v39  ;;  %v970_v5 = vadd.f32 %v969_v62, %v6708_v14  ;;  %5297 = vmatprep.mubr.f32.mxu0 %v3407_v21  ;;  %v3419_v39 = vsel %vm1098_vm1, %v6591_v4, %v3418_v50  ;;  %v3038_v30 = vsel %vm518_vm0, %v6282_v23, %v3037_v41  ;;  %v7532_v50 = vld [vmem:[#allocation11_spill] sm:$0xff] }
 0x157   : > { %v1324_v11 = vpop.f32.mrf.mxu0  ;;  %v4739_v16 = vpop.f32.mrf.mxu1  ;;  %5218 = vmatmul.mubr.f32.gmra.mxu1 %v3023_v56  ;;  %v3042_v62 = vrot.slane %v2655_v33, 1 }
 0x158   : > { %v6915_v9 = vadd.f32 %v1324_v11, %v970_v5  ;;  %v985_v1 = vadd.f32 %v4739_v16, %v6732_v32  ;;  %5220 = vmatprep.mubr.f32.mxu1 %v3026_v28  ;;  %v2658_v28 = vld [vmem:[#allocation2 + $0x98] sm:$0x3]  ;;  %v7530_v11 = vld [vmem:[#allocation9_spill] sm:$0xff] }
 0x159   : > { %v4819_v46 = vpop.f32.mrf.mxu0  ;;  %5298 = vmatmul.mubr.f32.gmra.mxu0 %v3409_v53  ;;  %v979_v14 = vpop.f32.mrf.mxu1  ;;  %v7531_v16 = vld [vmem:[#allocation8_spill] sm:$0xff] }
 0x15a   : > { %v6919_v49 = vadd.f32 %v4819_v46, %v985_v1  ;;  %v980_v34 = vadd.f32 %v979_v14, %v6748_v0  ;;  %5300 = vmatprep.mubr.f32.mxu0 %v3412_v59  ;;  %v3043_v59 = vsel %vm518_vm0, %v7531_v16, %v3042_v62  ;;  %v3047_v1 = vrot.slane %v2658_v28, 1 }
 0x15b   : > { %v1334_v47 = vpop.f32.mrf.mxu0  ;;  %v4742_v36 = vpop.f32.mrf.mxu1  ;;  %5221 = vmatmul.mubr.f32.gmra.mxu1 %v3028_v52  ;;  %v2661_v52 = vld [vmem:[#allocation2 + $0x50] sm:$0x3] }
 0x15c   : > { %v6923_v32 = vadd.f32 %v1334_v47, %v980_v34  ;;  %v995_v55 = vadd.f32 %v4742_v36, %v6772_v29  ;;  %5223 = vmatprep.mubr.f32.mxu1 %v6275_v60  ;;  %v3423_v29 = vrot.slane %v2652_v7, 2  ;;  %v7533_v47 = vld [vmem:[#allocation10_spill] sm:$0xff] }
 0x15d   : > { %v4822_v54 = vpop.f32.mrf.mxu0  ;;  %5301 = vmatmul.mubr.f32.gmra.mxu0 %v3414_v18  ;;  %v989_v0 = vpop.f32.mrf.mxu1  ;;  %v3048_v36 = vsel %vm518_vm0, %v7533_v47, %v3047_v1 }
 0x15e   : > { %v6929_v21 = vadd.f32 %v4822_v54, %v995_v55  ;;  %v990_v24 = vadd.f32 %v989_v0, %v6784_v44  ;;  %5303 = vmatprep.mubr.f32.mxu0 %v6618_v40  ;;  %v3424_v5 = vsel %vm1098_vm1, %v6611_v35, %v3423_v29  ;;  %v3052_v55 = vrot.slane %v2661_v52, 1  ;;  %v7534_v29 = vld [vmem:[#allocation13_spill] sm:$0xff] }
 0x15f   : > { %v1344_v56 = vpop.f32.mrf.mxu0  ;;  %v4745_v60 = vpop.f32.mrf.mxu1  ;;  %5224 = vmatmul.mubr.f32.gmra.mxu1 %v3033_v2  ;;  %v2664_v2 = vld [vmem:[#allocation2 + $0x30] sm:$0x3] }
 0x160   : > { %v6935_v3 = vadd.f32 %v1344_v56, %v990_v24  ;;  %v1005_v48 = vadd.f32 %v4745_v60, %v6808_v13  ;;  %5226 = vmatprep.mubr.f32.mxu1 %v6301_v43  ;;  %v3428_v13 = vrot.slane %v2655_v33, 2  ;;  %v7535_v56 = vld [vmem:[#allocation12_spill] sm:$0xff] }
 0x161   : > { %v4825_v44 = vpop.f32.mrf.mxu0  ;;  %5304 = vmatmul.mubr.f32.gmra.mxu0 %v3419_v39  ;;  %v999_v40 = vpop.f32.mrf.mxu1  ;;  %v3053_v60 = vsel %vm518_vm0, %v7535_v56, %v3052_v55  ;;  %v7548_v56 = vld [vmem:[#allocation35_spill] sm:$0xff] }
 0x162   : > { %v6941_v31 = vadd.f32 %v4825_v44, %v1005_v48  ;;  %v1000_v4 = vadd.f32 %v999_v40, %v6817_v42  ;;  %5306 = vmatprep.mubr.f32.mxu0 %v6644_v27  ;;  %v3429_v46 = vsel %vm1098_vm1, %v6637_v6, %v3428_v13  ;;  %v3057_v48 = vrot.slane %v2664_v2, 1  ;;  %v7536_v44 = vld [vmem:[#allocation28_spill] sm:$0xff]  ;;  %v7537_v40 = vld [vmem:[#allocation25_spill] sm:$0xff] }
 0x163   : > { %v1354_v53 = vpop.f32.mrf.mxu0  ;;  %v4748_v43 = vpop.f32.mrf.mxu1  ;;  %5227 = vmatmul.mubr.f32.gmra.mxu1 %v3038_v30  ;;  %v2667_v30 = vld [vmem:[#allocation2 + $0xc8] sm:$0x3] }
 0x164   : > { %v6947_v15 = vadd.f32 %v1354_v53, %v1000_v4  ;;  %v1015_v23 = vadd.f32 %v4748_v43, %v6844_v25  ;;  %5229 = vmatprep.mubr.f32.mxu1 %v7530_v11  ;;  %v3433_v25 = vrot.slane %v2658_v28, 2  ;;  %v7538_v53 = vld [vmem:[#allocation22_spill] sm:$0xff] }
 0x165   : > { %v4828_v42 = vpop.f32.mrf.mxu0  ;;  %5307 = vmatmul.mubr.f32.gmra.mxu0 %v3424_v5  ;;  %v1009_v27 = vpop.f32.mrf.mxu1  ;;  %v7540_v11 = vld [vmem:[#allocation14_spill] sm:$0xff] }
 0x166   : > { %v6953_v57 = vadd.f32 %v4828_v42, %v1015_v23  ;;  %v1010_v35 = vadd.f32 %v1009_v27, %v6857_v17  ;;  %5309 = vmatprep.mubr.f32.mxu0 %v6670_v58  ;;  %v3434_v54 = vsel %vm1098_vm1, %v6663_v8, %v3433_v25  ;;  %v7539_v23 = vld [vmem:[#allocation15_spill] sm:$0xff]  ;;  %v3058_v16 = vsel %vm518_vm0, %v7540_v11, %v3057_v48 }
 0x167   : > { %v1364_v14 = vpop.f32.mrf.mxu0  ;;  %v4751_v7 = vpop.f32.mrf.mxu1  ;;  %5230 = vmatmul.mubr.f32.gmra.mxu1 %v3043_v59  ;;  %v3062_v59 = vrot.slane %v2667_v30, 1  ;;  %v2670_v42 = vld [vmem:[#allocation2 + $0x150] sm:$0x3] }
 0x168   : > { %v6959_v34 = vadd.f32 %v1364_v14, %v1010_v35  ;;  %v1025_v18 = vadd.f32 %v4751_v7, %v6574_v38  ;;  %5232 = vmatprep.mubr.f32.mxu1 %v7532_v50  ;;  %v3438_v38 = vrot.slane %v2661_v52, 2  ;;  %v7541_v52 = vld [vmem:[#allocation23_spill] sm:$0xff]  ;;  %v3448_v7 = vrot.slane %v2667_v30, 2 }
 0x169   : > { %v4831_v17 = vpop.f32.mrf.mxu0  ;;  %5310 = vmatmul.mubr.f32.gmra.mxu0 %v3429_v46  ;;  %v1019_v58 = vpop.f32.mrf.mxu1  ;;  %v7542_v46 = vld [vmem:[#allocation32_spill] sm:$0xff]  ;;  %v7543_v25 = vld [vmem:[#allocation27_spill] sm:$0xff] }
 0x16a   : > { %v6965_v41 = vadd.f32 %v4831_v17, %v1025_v18  ;;  %v1020_v6 = vadd.f32 %v1019_v58, %v6587_v10  ;;  %5312 = vmatprep.mubr.f32.mxu0 %v6694_v20  ;;  %v3439_v28 = vsel %vm1098_vm1, %v7537_v40, %v3438_v38  ;;  %v7545_v17 = vld [vmem:[#allocation17_spill] sm:$0xff]  ;;  %v7546_v58 = vld [vmem:[#allocation16_spill] sm:$0xff] }
 0x16b   : > { %v1374_v0 = vpop.f32.mrf.mxu0  ;;  %v4754_v33 = vpop.f32.mrf.mxu1  ;;  %5233 = vmatmul.mubr.f32.gmra.mxu1 %v3048_v36  ;;  %v7544_v36 = vld [vmem:[#allocation24_spill] sm:$0xff] }
 0x16c   : > { %v6971_v24 = vadd.f32 %v1374_v0, %v1020_v6  ;;  %v1035_v39 = vadd.f32 %v4754_v33, %v6606_v37  ;;  %5235 = vmatprep.mubr.f32.mxu1 %v7534_v29  ;;  %v3443_v37 = vrot.slane %v2664_v2, 2  ;;  %v3063_v2 = vsel %vm518_vm0, %v7546_v58, %v3062_v59  ;;  %v2673_v0 = vld [vmem:[#allocation2 + $0x10] sm:$0x3] }
 0x16d   : > { %v4834_v10 = vpop.f32.mrf.mxu0  ;;  %5313 = vmatmul.mubr.f32.gmra.mxu0 %v3434_v54  ;;  %v1029_v20 = vpop.f32.mrf.mxu1  ;;  %v3067_v6 = vrot.slane %v2670_v42, 1 }
 0x16e   : > { %v6977_v62 = vadd.f32 %v4834_v10, %v1035_v39  ;;  %v1030_v8 = vadd.f32 %v1029_v20, %v6622_v45  ;;  %5315 = vmatprep.mubr.f32.mxu0 %v7536_v44  ;;  %v3444_v14 = vsel %vm1098_vm1, %v7543_v25, %v3443_v37  ;;  %v7547_v39 = vld [vmem:[#allocation26_spill] sm:$0xff]  ;;  %v3453_v10 = vrot.slane %v2670_v42, 2  ;;  %v7550_v44 = vld [vmem:[#allocation29_spill] sm:$0xff] }
 0x16f   : > { %v1384_v4 = vpop.f32.mrf.mxu0  ;;  %v4757_v5 = vpop.f32.mrf.mxu1  ;;  %5236 = vmatmul.mubr.f32.gmra.mxu1 %v3053_v60  ;;  %v7549_v60 = vld [vmem:[#allocation31_spill] sm:$0xff]  ;;  %v7552_v37 = vld [vmem:[#allocation18_spill] sm:$0xff] }
 0x170   : > { %v6983_v13 = vadd.f32 %v1384_v4, %v1030_v8  ;;  %v1045_v43 = vadd.f32 %v4757_v5, %v7538_v53  ;;  %5238 = vmatprep.mubr.f32.mxu1 %v7539_v23  ;;  %v3449_v48 = vsel %vm1098_vm1, %v7549_v60, %v3448_v7  ;;  %v3068_v4 = vsel %vm518_vm0, %v7552_v37, %v3067_v6  ;;  %v7553_v53 = vld [vmem:[#allocation43_spill] sm:$0xff]  ;;  %v7554_v23 = vld [vmem:[#allocation44_spill] sm:$0xff]  ;;  %v7555_v42 = vld [vmem:[#allocation30_spill] sm:$0xff] }
 0x171   : > { %v4837_v45 = vpop.f32.mrf.mxu0  ;;  %5316 = vmatmul.mubr.f32.gmra.mxu0 %v3439_v28  ;;  %v1039_v1 = vpop.f32.mrf.mxu1  ;;  %v7551_v28 = vld [vmem:[#allocation19_spill] sm:$0xff]  ;;  %v3072_v5 = vrot.slane %v2673_v0, 1  ;;  %v3075_v11 = vrot.slane %v7554_v23, 1  ;;  %v3460_v7 = vrot.slane %v7553_v53, 2  ;;  %v7560_v6 = vld [vmem:[#allocation20_spill] sm:$0xff] }
 0x172   : > { %v6989_v27 = vadd.f32 %v4837_v45, %v1045_v43  ;;  %v1040_v35 = vadd.f32 %v1039_v1, %v7541_v52  ;;  %5318 = vmatprep.mubr.f32.mxu0 %v7542_v46  ;;  %v3074_v43 = vrot.slane %v7553_v53, 1  ;;  %v2676_v45 = vld [vmem:[#allocation2 + $0x148] sm:$0x3]  ;;  %v7561_v60 = vld [vmem:[#allocation36_spill] sm:$0xff] }
 0x173   : > { %v1394_v18 = vpop.f32.mrf.mxu0  ;;  %v4760_v50 = vpop.f32.mrf.mxu1  ;;  %5239 = vmatmul.mubr.f32.gmra.mxu1 %v3058_v16  ;;  %v7557_v46 = vld [vmem:[#allocation34_spill] sm:$0xff] }
 0x174   : > { %v6995_v47 = vadd.f32 %v1394_v18, %v1040_v35  ;;  %v1055_v55 = vadd.f32 %v4760_v50, %v7544_v36  ;;  %5241 = vmatprep.mubr.f32.mxu1 %v7545_v17  ;;  %v7556_v35 = vld [vmem:[#allocation38_spill] sm:$0xff]  ;;  %v3454_v25 = vsel %vm1098_vm1, %v7557_v46, %v3453_v10  ;;  %v3461_v18 = vrot.slane %v7554_v23, 2  ;;  %v7558_v17 = vld [vmem:[#allocation33_spill] sm:$0xff] }
 0x175   : > { %v4840_v54 = vpop.f32.mrf.mxu0  ;;  %5319 = vmatmul.mubr.f32.gmra.mxu0 %v3444_v14  ;;  %v1049_v38 = vpop.f32.mrf.mxu1  ;;  %v3458_v14 = vrot.slane %v2673_v0, 2  ;;  %v7562_v10 = vld [vmem:[#allocation41_spill] sm:$0xff] }
 0x176   : > { %v7001_v33 = vadd.f32 %v4840_v54, %v1055_v55  ;;  %v1050_v29 = vadd.f32 %v1049_v38, %v7547_v39  ;;  %5321 = vmatprep.mubr.f32.mxu0 %v7548_v56  ;;  %v3073_v54 = vsel %vm518_vm0, %v7560_v6, %v3072_v5  ;;  %v3077_v38 = vrot.slane %v2676_v45, 1  ;;  %v7564_v5 = vld [vmem:[#allocation39_spill] sm:$0xff] }
 0x177   : > { %v1404_v20 = vpop.f32.mrf.mxu0  ;;  %v4763_v30 = vpop.f32.mrf.mxu1  ;;  %5242 = vmatmul.mubr.f32.gmra.mxu1 %v3063_v2  ;;  %v7559_v2 = vld [vmem:[#allocation21_spill] sm:$0xff]  ;;  %v3462_v37 = vsel %vm1098_vm1, %v3460_v7, %v3461_v18 }
 0x178   : > { %v7007_v8 = vadd.f32 %v1404_v20, %v1050_v29  ;;  %v1065_v40 = vadd.f32 %v4763_v30, %v7550_v44  ;;  %5244 = vmatprep.mubr.f32.mxu1 %v7551_v28  ;;  %v3076_v29 = vsel %vm518_vm0, %v3074_v43, %v3075_v11  ;;  %v7563_v20 = vld [vmem:[#allocation37_spill] sm:$0xff]  ;;  %v3463_v44 = vrot.slane %v2676_v45, 2 }
 0x179   : > { %v4843_v16 = vpop.f32.mrf.mxu0  ;;  %5322 = vmatmul.mubr.f32.gmra.mxu0 %v3449_v48  ;;  %v1059_v59 = vpop.f32.mrf.mxu1  ;;  %v3459_v30 = vsel %vm1098_vm1, %v7563_v20, %v3458_v14  ;;  %v3078_v43 = vsel %vm518_vm0, %v3075_v11, %v3077_v38  ;;  %v7566_v14 = vld [vmem:[#allocation42_spill] sm:$0xff] }
 0x17a   : > { %v7015_v1 = vadd.f32 %v4843_v16, %v1065_v40  ;;  %v1060_v52 = vadd.f32 %v1059_v59, %v7555_v42  ;;  %5324 = vmatprep.mubr.f32.mxu0 %v7556_v35  ;;  %v7565_v42 = vld [vmem:[#allocation40_spill] sm:$0xff]  ;;  %v3464_v45 = vsel %vm1098_vm1, %v3461_v18, %v3463_v44 }
 0x17b   : > { %v1414_v50 = vpop.f32.mrf.mxu0  ;;  %v4766_v36 = vpop.f32.mrf.mxu1  ;;  %5245 = vmatmul.mubr.f32.gmra.mxu1 %v3068_v4 }
 0x17c   : > { %v7023_v55 = vadd.f32 %v1414_v50, %v1060_v52  ;;  %v1075_v58 = vadd.f32 %v4766_v36, %v7558_v17  ;;  %5247 = vmatprep.mubr.f32.mxu1 %v7559_v2  ;;  %v7567_v17 = vld [vmem:[#allocation45_spill] sm:$0xff] }
 0x17d   : > { %v4846_v39 = vpop.f32.mrf.mxu0  ;;  %5325 = vmatmul.mubr.f32.gmra.mxu0 %v3454_v25  ;;  %v1069_v0 = vpop.f32.mrf.mxu1 }
 0x17e   : > { %v7030_v56 = vadd.f32 %v4846_v39, %v1075_v58  ;;  %v1070_v48 = vadd.f32 %v1069_v0, %v7561_v60  ;;  %5327 = vmatprep.mubr.f32.mxu0 %v7562_v10 }
 0x17f   : > { %v1424_v40 = vpop.f32.mrf.mxu0  ;;  %v4769_v28 = vpop.f32.mrf.mxu1  ;;  %5248 = vmatmul.mubr.f32.gmra.mxu1 %v3073_v54 }
 0x180   : > { %v7037_v4 = vadd.f32 %v1424_v40, %v1070_v48  ;;  %v1085_v53 = vadd.f32 %v4769_v28, %v7564_v5  ;;  %5250 = vmatprep.mubr.f32.mxu1 %v3076_v29 }
 0x181   : > { %v4849_v23 = vpop.f32.mrf.mxu0  ;;  %5328 = vmatmul.mubr.f32.gmra.mxu0 %v3459_v30  ;;  %v1079_v16 = vpop.f32.mrf.mxu1 }
 0x182   : > { %v7041_v59 = vadd.f32 %v4849_v23, %v1085_v53  ;;  %v1080_v52 = vadd.f32 %v1079_v16, %v7565_v42  ;;  %5330 = vmatprep.mubr.f32.mxu0 %v3462_v37 }
 0x183   : > { %v1434_v35 = vpop.f32.mrf.mxu0  ;;  %v4772_v46 = vpop.f32.mrf.mxu1  ;;  %5251 = vmatmul.mubr.f32.gmra.mxu1 %v3078_v43 }
 0x184   : > { %v7045_v25 = vadd.f32 %v1434_v35, %v1080_v52  ;;  %v1095_v7 = vadd.f32 %v4772_v46, %v7566_v14 }
 0x185   : > { %v4852_v50 = vpop.f32.mrf.mxu0  ;;  %5331 = vmatmul.mubr.f32.gmra.mxu0 %v3464_v45  ;;  %v1089_v11 = vpop.f32.mrf.mxu1 }
 0x186   : > { %v7048_v36 = vadd.f32 %v4852_v50, %v1095_v7  ;;  %v1090_v58 = vadd.f32 %v1089_v11, %v7567_v17 }
 0x187   : > { %v1444_v2 = vpop.f32.mrf.mxu0  ;;  %v4887_v6 = vpop.f32.mrf.mxu1 }
 0x188   : > { %v7051_v54 = vadd.f32 %v1444_v2, %v1090_v58  ;;  %v1777_v18 = vadd.f32 %v4887_v6, %v6870_v22 }
 0x189   : > { %v4967_v38 = vpop.f32.mrf.mxu0  ;;  %v1617_v39 = vpop.f32.mrf.mxu1 }
 0x18a   : > { %v7054_v0 = vadd.f32 %v4967_v38, %v1777_v18  ;;  %v1776_v29 = vadd.f32 %v1617_v39, %v6877_v19 }
 0x18b   : > { %v2051_v60 = vpop.f32.mrf.mxu0  ;;  %v4890_v48 = vpop.f32.mrf.mxu1 }
 0x18c   : > { %v7057_v10 = vadd.f32 %v2051_v60, %v1776_v29  ;;  %v1779_v20 = vadd.f32 %v4890_v48, %v6884_v63 }
 0x18d   : > { %v4970_v30 = vpop.f32.mrf.mxu0  ;;  %v1627_v44 = vpop.f32.mrf.mxu1 }
 0x18e   : > { %v7060_v40 = vadd.f32 %v4970_v30, %v1779_v20  ;;  %v1778_v28 = vadd.f32 %v1627_v44, %v6891_v51 }
 0x18f   : > { %v2061_v37 = vpop.f32.mrf.mxu0  ;;  %v4893_v22 = vpop.f32.mrf.mxu1 }
 0x190   : > { %v7063_v5 = vadd.f32 %v2061_v37, %v1778_v28  ;;  %v1781_v53 = vadd.f32 %v4893_v22, %v6898_v12 }
 0x191   : > { %v4973_v43 = vpop.f32.mrf.mxu0  ;;  %v1637_v19 = vpop.f32.mrf.mxu1 }
 0x192   : > { %v7066_v23 = vadd.f32 %v4973_v43, %v1781_v53  ;;  %v1780_v16 = vadd.f32 %v1637_v19, %v6905_v61 }
 0x193   : > { %v2071_v42 = vpop.f32.mrf.mxu0  ;;  %v4896_v63 = vpop.f32.mrf.mxu1 }
 0x194   : > { %v7069_v52 = vadd.f32 %v2071_v42, %v1780_v16  ;;  %v1783_v45 = vadd.f32 %v4896_v63, %v6910_v26 }
 0x195   : > { %v4976_v35 = vpop.f32.mrf.mxu0  ;;  %v1647_v51 = vpop.f32.mrf.mxu1 }
 0x196   : > { %v7072_v46 = vadd.f32 %v4976_v35, %v1783_v45  ;;  %v1782_v14 = vadd.f32 %v1647_v51, %v6915_v9 }
 0x197   : > { %v2081_v7 = vpop.f32.mrf.mxu0  ;;  %v4899_v12 = vpop.f32.mrf.mxu1 }
 0x198   : > { %v7075_v50 = vadd.f32 %v2081_v7, %v1782_v14  ;;  %v1785_v11 = vadd.f32 %v4899_v12, %v6919_v49 }
 0x199   : > { %v4979_v17 = vpop.f32.mrf.mxu0  ;;  %v1657_v61 = vpop.f32.mrf.mxu1 }
 0x19a   : > { %v7078_v58 = vadd.f32 %v4979_v17, %v1785_v11  ;;  %v1784_v2 = vadd.f32 %v1657_v61, %v6923_v32 }
 0x19b   : > { %v2091_v6 = vpop.f32.mrf.mxu0  ;;  %v4902_v26 = vpop.f32.mrf.mxu1 }
 0x19c   : > { %v7081_v18 = vadd.f32 %v2091_v6, %v1784_v2  ;;  %v1787_v38 = vadd.f32 %v4902_v26, %v6929_v21 }
 0x19d   : > { %v4982_v39 = vpop.f32.mrf.mxu0  ;;  %v1667_v9 = vpop.f32.mrf.mxu1 }
 0x19e   : > { %v7084_v29 = vadd.f32 %v4982_v39, %v1787_v38  ;;  %v1786_v60 = vadd.f32 %v1667_v9, %v6935_v3 }
 0x19f   : > { %v2101_v48 = vpop.f32.mrf.mxu0  ;;  %v4905_v49 = vpop.f32.mrf.mxu1 }
 0x1a0   : > { %v7087_v20 = vadd.f32 %v2101_v48, %v1786_v60  ;;  %v1789_v30 = vadd.f32 %v4905_v49, %v6941_v31 }
 0x1a1   : > { %v4985_v44 = vpop.f32.mrf.mxu0  ;;  %v1677_v32 = vpop.f32.mrf.mxu1 }
 0x1a2   : > { %v7090_v28 = vadd.f32 %v4985_v44, %v1789_v30  ;;  %v1788_v37 = vadd.f32 %v1677_v32, %v6947_v15 }
 0x1a3   : > { %v2111_v22 = vpop.f32.mrf.mxu0  ;;  %v4908_v21 = vpop.f32.mrf.mxu1 }
 0x1a4   : > { %v7093_v53 = vadd.f32 %v2111_v22, %v1788_v37  ;;  %v1791_v43 = vadd.f32 %v4908_v21, %v6953_v57 }
 0x1a5   : > { %v4988_v19 = vpop.f32.mrf.mxu0  ;;  %v1687_v3 = vpop.f32.mrf.mxu1 }
 0x1a6   : > { %v7096_v16 = vadd.f32 %v4988_v19, %v1791_v43  ;;  %v1790_v42 = vadd.f32 %v1687_v3, %v6959_v34 }
 0x1a7   : > { %v2121_v63 = vpop.f32.mrf.mxu0  ;;  %v4911_v31 = vpop.f32.mrf.mxu1 }
 0x1a8   : > { %v7099_v45 = vadd.f32 %v2121_v63, %v1790_v42  ;;  %v1793_v35 = vadd.f32 %v4911_v31, %v6965_v41 }
 0x1a9   : > { %v4991_v51 = vpop.f32.mrf.mxu0  ;;  %v1697_v15 = vpop.f32.mrf.mxu1 }
 0x1aa   : > { %v7102_v14 = vadd.f32 %v4991_v51, %v1793_v35  ;;  %v1792_v7 = vadd.f32 %v1697_v15, %v6971_v24 }
 0x1ab   : > { %v2131_v12 = vpop.f32.mrf.mxu0  ;;  %v4914_v57 = vpop.f32.mrf.mxu1 }
 0x1ac   : > { %v7105_v11 = vadd.f32 %v2131_v12, %v1792_v7  ;;  %v1795_v17 = vadd.f32 %v4914_v57, %v6977_v62 }
 0x1ad   : > { %v4994_v61 = vpop.f32.mrf.mxu0  ;;  %v1707_v34 = vpop.f32.mrf.mxu1 }
 0x1ae   : > { %v7108_v2 = vadd.f32 %v4994_v61, %v1795_v17  ;;  %v1794_v6 = vadd.f32 %v1707_v34, %v6983_v13 }
 0x1af   : > { %v2141_v26 = vpop.f32.mrf.mxu0  ;;  %v4917_v41 = vpop.f32.mrf.mxu1 }
 0x1b0   : > { %7568 = vst [vmem:[#allocation9_spill] sm:$0xff] %v7108_v2  ;;  %v7111_v38 = vadd.f32 %v2141_v26, %v1794_v6  ;;  %v1797_v39 = vadd.f32 %v4917_v41, %v6989_v27 }
 0x1b1   : > { %v4997_v9 = vpop.f32.mrf.mxu0  ;;  %v1717_v24 = vpop.f32.mrf.mxu1 }
 0x1b2   : > { %7569 = vst [vmem:[#allocation8_spill] sm:$0xff] %v7111_v38  ;;  %v7114_v60 = vadd.f32 %v4997_v9, %v1797_v39  ;;  %v1796_v48 = vadd.f32 %v1717_v24, %v6995_v47 }
 0x1b3   : > { %v2151_v49 = vpop.f32.mrf.mxu0  ;;  %v4920_v62 = vpop.f32.mrf.mxu1 }
 0x1b4   : > { %7570 = vst [vmem:[#allocation11_spill] sm:$0xff] %v7114_v60  ;;  %v7117_v30 = vadd.f32 %v2151_v49, %v1796_v48  ;;  %v1799_v44 = vadd.f32 %v4920_v62, %v7001_v33 }
 0x1b5   : > { %v5000_v32 = vpop.f32.mrf.mxu0  ;;  %v1727_v13 = vpop.f32.mrf.mxu1 }
 0x1b6   : > { %7571 = vst [vmem:[#allocation10_spill] sm:$0xff] %v7117_v30  ;;  %v7120_v37 = vadd.f32 %v5000_v32, %v1799_v44  ;;  %v1798_v22 = vadd.f32 %v1727_v13, %v7007_v8 }
 0x1b7   : > { %v2161_v21 = vpop.f32.mrf.mxu0  ;;  %v4923_v27 = vpop.f32.mrf.mxu1 }
 0x1b8   : > { %7572 = vst [vmem:[#allocation13_spill] sm:$0xff] %v7120_v37  ;;  %v7123_v43 = vadd.f32 %v2161_v21, %v1798_v22  ;;  %v1801_v19 = vadd.f32 %v4923_v27, %v7015_v1 }
 0x1b9   : > { %v5003_v3 = vpop.f32.mrf.mxu0  ;;  %v1737_v47 = vpop.f32.mrf.mxu1 }
 0x1ba   : > { %7573 = vst [vmem:[#allocation12_spill] sm:$0xff] %v7123_v43  ;;  %v7126_v42 = vadd.f32 %v5003_v3, %v1801_v19  ;;  %v1800_v63 = vadd.f32 %v1737_v47, %v7023_v55 }
 0x1bb   : > { %v2171_v31 = vpop.f32.mrf.mxu0  ;;  %v4926_v33 = vpop.f32.mrf.mxu1 }
 0x1bc   : > { %7574 = vst [vmem:[#allocation28_spill] sm:$0xff] %v7126_v42  ;;  %v7129_v35 = vadd.f32 %v2171_v31, %v1800_v63  ;;  %v1803_v51 = vadd.f32 %v4926_v33, %v7030_v56 }
 0x1bd   : > { %v5006_v15 = vpop.f32.mrf.mxu0  ;;  %v1747_v8 = vpop.f32.mrf.mxu1 }
 0x1be   : > { %7575 = vst [vmem:[#allocation25_spill] sm:$0xff] %v7129_v35  ;;  %v7132_v7 = vadd.f32 %v5006_v15, %v1803_v51  ;;  %v1802_v12 = vadd.f32 %v1747_v8, %v7037_v4 }
 0x1bf   : > { %v2181_v57 = vpop.f32.mrf.mxu0  ;;  %v4929_v1 = vpop.f32.mrf.mxu1 }
 0x1c0   : > { %7576 = vst [vmem:[#allocation22_spill] sm:$0xff] %v7132_v7  ;;  %v7135_v17 = vadd.f32 %v2181_v57, %v1802_v12  ;;  %v1805_v61 = vadd.f32 %v4929_v1, %v7041_v59 }
 0x1c1   : > { %v5009_v34 = vpop.f32.mrf.mxu0  ;;  %v1757_v55 = vpop.f32.mrf.mxu1 }
 0x1c2   : > { %7577 = vst [vmem:[#allocation15_spill] sm:$0xff] %v7135_v17  ;;  %v7138_v6 = vadd.f32 %v5009_v34, %v1805_v61  ;;  %v1804_v26 = vadd.f32 %v1757_v55, %v7045_v25 }
 0x1c3   : > { %v2191_v41 = vpop.f32.mrf.mxu0  ;;  %v4932_v56 = vpop.f32.mrf.mxu1 }
 0x1c4   : > { %7578 = vst [vmem:[#allocation14_spill] sm:$0xff] %v7138_v6  ;;  %v7141_v39 = vadd.f32 %v2191_v41, %v1804_v26  ;;  %v1807_v9 = vadd.f32 %v4932_v56, %v7048_v36 }
 0x1c5   : > { %v5012_v24 = vpop.f32.mrf.mxu0  ;;  %v1767_v4 = vpop.f32.mrf.mxu1 }
 0x1c6   : > { %7579 = vst [vmem:[#allocation23_spill] sm:$0xff] %v7141_v39  ;;  %v7144_v48 = vadd.f32 %v5012_v24, %v1807_v9  ;;  %v1806_v49 = vadd.f32 %v1767_v4, %v7051_v54 }
 0x1c7   : > { %v2201_v62 = vpop.f32.mrf.mxu0  ;;  %v5047_v59 = vpop.f32.mrf.mxu1 }
 0x1c8   : > { %7580 = vst [vmem:[#allocation32_spill] sm:$0xff] %v7144_v48  ;;  %v7147_v44 = vadd.f32 %v2201_v62, %v1806_v49 }
 0x1c9   : > { %v7149_v32 = vpop.f32.mrf.mxu0  ;;  %v2437_v13 = vpop.f32.mrf.mxu1 }
 0x1ca   : > { %7581 = vst [vmem:[#allocation27_spill] sm:$0xff] %v7147_v44 }
 0x1cb   : > { %v7151_v25 = vpop.f32.mrf.mxu0  ;;  %v7153_v22 = vpop.f32.mrf.mxu1 }
 0x1cd   : > { %v7155_v21 = vpop.f32.mrf.mxu0  ;;  %v7157_v36 = vpop.f32.mrf.mxu1 }
 0x1cf   : > { %v7159_v27 = vpop.f32.mrf.mxu0  ;;  %v7161_v19 = vpop.f32.mrf.mxu1 }
 0x1d1   : > { %v7163_v54 = vpop.f32.mrf.mxu0  ;;  %v7165_v3 = vpop.f32.mrf.mxu1 }
 0x1d3   : > { %v7167_v47 = vpop.f32.mrf.mxu0  ;;  %v7169_v63 = vpop.f32.mrf.mxu1 }
 0x1d5   : > { %v7171_v31 = vpop.f32.mrf.mxu0  ;;  %v7173_v33 = vpop.f32.mrf.mxu1 }
 0x1d7   : > { %v7175_v51 = vpop.f32.mrf.mxu0  ;;  %v7177_v15 = vpop.f32.mrf.mxu1 }
 0x1d9   : > { %v7179_v8 = vpop.f32.mrf.mxu0  ;;  %v7181_v12 = vpop.f32.mrf.mxu1 }
 0x1db   : > { %v7183_v57 = vpop.f32.mrf.mxu0  ;;  %v7185_v1 = vpop.f32.mrf.mxu1 }
 0x1dd   : > { %v7187_v61 = vpop.f32.mrf.mxu0  ;;  %v7189_v34 = vpop.f32.mrf.mxu1 }
 0x1df   : > { %v7191_v55 = vpop.f32.mrf.mxu0  ;;  %v7193_v26 = vpop.f32.mrf.mxu1 }
 0x1e1   : > { %v7196_v41 = vpop.f32.mrf.mxu0  ;;  %v7198_v56 = vpop.f32.mrf.mxu1 }
 0x1e3   : > { %v7200_v9 = vpop.f32.mrf.mxu0  ;;  %v7202_v24 = vpop.f32.mrf.mxu1 }
 0x1e5   : > { %v7204_v4 = vpop.f32.mrf.mxu0  ;;  %v7206_v49 = vpop.f32.mrf.mxu1 }
 0x1e7   : > { %v7208_v62 = vpop.f32.mrf.mxu0  ;;  %v7210_v44 = vpop.f32.mrf.mxu1 }
 0x1e9   : > { %v7212_v48 = vpop.f32.mrf.mxu0  ;;  %v7214_v39 = vpop.f32.mrf.mxu1 }
 0x1eb   : > { %v7216_v6 = vpop.f32.mrf.mxu0  ;;  %v7218_v17 = vpop.f32.mrf.mxu1 }
 0x1ec   : > { %7582 = vst [vmem:[#allocation24_spill] sm:$0xff] %v7216_v6  ;;  %7583 = vst [vmem:[#allocation17_spill] sm:$0xff] %v7218_v17 }
 0x1ed   : > { %v7220_v7 = vpop.f32.mrf.mxu0  ;;  %v7222_v35 = vpop.f32.mrf.mxu1 }
 0x1ee   : > { %7584 = vst [vmem:[#allocation16_spill] sm:$0xff] %v7220_v7  ;;  %7585 = vst [vmem:[#allocation26_spill] sm:$0xff] %v7222_v35 }
 0x1ef   : > { %v7224_v42 = vpop.f32.mrf.mxu0  ;;  %v7226_v43 = vpop.f32.mrf.mxu1 }
 0x1f0   : > { %7586 = vst [vmem:[#allocation35_spill] sm:$0xff] %v7224_v42  ;;  %7587 = vst [vmem:[#allocation31_spill] sm:$0xff] %v7226_v43 }
 0x1f1   : > { %v7228_v37 = vpop.f32.mrf.mxu0  ;;  %v7230_v30 = vpop.f32.mrf.mxu1 }
 0x1f2   : > { %7588 = vst [vmem:[#allocation29_spill] sm:$0xff] %v7228_v37  ;;  %7589 = vst [vmem:[#allocation19_spill] sm:$0xff] %v7230_v30 }
 0x1f3   : > { %v7232_v60 = vpop.f32.mrf.mxu0  ;;  %v7234_v38 = vpop.f32.mrf.mxu1 }
 0x1f4   : > { %7590 = vst [vmem:[#allocation18_spill] sm:$0xff] %v7232_v60  ;;  %7591 = vst [vmem:[#allocation43_spill] sm:$0xff] %v7234_v38 }
 0x1f5   : > { %v7236_v2 = vpop.f32.mrf.mxu0  ;;  %v7238_v6 = vpop.f32.mrf.mxu1 }
 0x1f6   : > { %7592 = vst [vmem:[#allocation44_spill] sm:$0xff] %v7236_v2  ;;  %7593 = vst [vmem:[#allocation30_spill] sm:$0xff] %v7238_v6 }
 0x1f7   : > { %v7240_v17 = vpop.f32.mrf.mxu0  ;;  %v7242_v7 = vpop.f32.mrf.mxu1 }
 0x1f8   : > { %7594 = vst [vmem:[#allocation38_spill] sm:$0xff] %v7240_v17  ;;  %7595 = vst [vmem:[#allocation34_spill] sm:$0xff] %v7242_v7 }
 0x1f9   : > { %v7244_v35 = vpop.f32.mrf.mxu0  ;;  %v7246_v42 = vpop.f32.mrf.mxu1 }
 0x1fa   : > { %7596 = vst [vmem:[#allocation33_spill] sm:$0xff] %v7244_v35  ;;  %7597 = vst [vmem:[#allocation21_spill] sm:$0xff] %v7246_v42  ;;  %v2597_v35 = vadd.f32 %v5047_v59, %v7054_v0  ;;  %v2598_v59 = vadd.f32 %v7157_v36, %v7063_v5 }
 0x1fb   : > { %v7248_v43 = vpop.f32.mrf.mxu0  ;;  %v7250_v37 = vpop.f32.mrf.mxu1 }
 0x1fc   : > { %7598 = vst [vmem:[#allocation20_spill] sm:$0xff] %v7248_v43  ;;  %7599 = vst [vmem:[#allocation36_spill] sm:$0xff] %v7250_v37  ;;  %v2596_v43 = vadd.f32 %v2437_v13, %v7057_v10  ;;  %v2601_v10 = vadd.f32 %v7161_v19, %v7066_v23 }
 0x1fd   : > { %v7252_v30 = vpop.f32.mrf.mxu0  ;;  %v7254_v60 = vpop.f32.mrf.mxu1 }
 0x1fe   : > { %7600 = vst [vmem:[#allocation41_spill] sm:$0xff] %v7252_v30  ;;  %v2919_v0 = vadd.f32 %v7151_v25, %v2596_v43  ;;  %v2600_v43 = vadd.f32 %v7165_v3, %v7069_v52  ;;  %v2924_v23 = vadd.f32 %v7163_v54, %v2601_v10  ;;  %v2602_v52 = vadd.f32 %v7173_v33, %v7075_v50 }
 0x1ff   : > { %v7256_v38 = vpop.f32.mrf.mxu0  ;;  %v7258_v2 = vpop.f32.mrf.mxu1  ;;  %v2605_v10 = vadd.f32 %v7177_v15, %v7078_v58  ;;  %v2604_v15 = vadd.f32 %v7181_v12, %v7081_v18 }
 0x200   : > { %7601 = vst [vmem:[#allocation37_spill] sm:$0xff] %v7256_v38  ;;  %7602 = vst [vmem:[#allocation39_spill] sm:$0xff] %v7258_v2  ;;  %v2920_v38 = vadd.f32 %v7149_v32, %v2597_v35  ;;  %v2599_v2 = vadd.f32 %v7153_v22, %v7060_v40  ;;  %v2923_v3 = vadd.f32 %v7167_v47, %v2600_v43 }
 0x201   : > { %v7260_v6 = vpop.f32.mrf.mxu0  ;;  %v7262_v17 = vpop.f32.mrf.mxu1  ;;  %v2925_v47 = vadd.f32 %v7175_v51, %v2602_v52  ;;  %v2928_v58 = vadd.f32 %v7179_v8, %v2605_v10 }
 0x202   : > { %7603 = vst [vmem:[#allocation40_spill] sm:$0xff] %v7260_v6  ;;  %7604 = vst [vmem:[#allocation42_spill] sm:$0xff] %v7262_v17  ;;  %v2922_v35 = vadd.f32 %v7155_v21, %v2599_v2 }
 0x203   : > { %v7265_v7 = vpop.f32.mrf.mxu0  ;;  %v7267_v42 = vpop.f32.mrf.mxu1 }
 0x204   : > { %7605 = vst [vmem:[#allocation45_spill] sm:$0xff] %v7265_v7 }
 0x205   : > { %v7270_v37 = vpop.f32.mrf.mxu0  ;;  %v7272_v30 = vpop.f32.mrf.mxu1 }
 0x206   : > { %7606 = vst [vmem:[#allocation46_spill] sm:$0xff] %v7270_v37  ;;  %7607 = vst [vmem:[#allocation47_spill] sm:$0xff] %v7272_v30 }
 0x207   : > { %v7277_v6 = vpop.f32.mrf.mxu0  ;;  %v5207_v17 = vpop.f32.mrf.mxu1 }
 0x208   : > { %7608 = vst [vmem:[#allocation48_spill] sm:$0xff] %v7277_v6  ;;  %v3354_v7 = vadd.f32 %v5207_v17, %v2920_v38  ;;  %v2921_v6 = vadd.f32 %v7159_v27, %v2598_v59  ;;  %v2603_v27 = vadd.f32 %v7169_v63, %v7072_v46 }
 0x209   : > { %v5287_v13 = vpop.f32.mrf.mxu0  ;;  %v3194_v37 = vpop.f32.mrf.mxu1 }
 0x20a   : > { %v3740_v32 = vadd.f32 %v5287_v13, %v3354_v7  ;;  %v3353_v40 = vadd.f32 %v3194_v37, %v2919_v0  ;;  %v2926_v50 = vadd.f32 %v7171_v31, %v2603_v27 }
 0x20b   : > { %v3580_v22 = vpop.f32.mrf.mxu0  ;;  %v5210_v30 = vpop.f32.mrf.mxu1 }
 0x20c   : > { %3772 = vst [vmem:[%s5489_s30 + $0x8] sm:$0xff] %v3740_v32  ;;  %v3739_v5 = vadd.f32 %v3580_v22, %v3353_v40  ;;  %v3356_v38 = vadd.f32 %v5210_v30, %v2922_v35  ;;  %v3845_v17 = vmul.f32 %v3740_v32, %v3740_v32 }
 0x20d   : > { %v5290_v25 = vpop.f32.mrf.mxu0  ;;  %v3204_v36 = vpop.f32.mrf.mxu1 }
 0x20e   : > { %3771 = vst [vmem:[%s5489_s30] sm:$0xff] %v3739_v5  ;;  %v3804_v2 = vadd.f32 %v3740_v32, %v3739_v5  ;;  %v3844_v37 = vmul.f32 %v3739_v5, %v3739_v5  ;;  %v3742_v7 = vadd.f32 %v5290_v25, %v3356_v38  ;;  %v3355_v21 = vadd.f32 %v3204_v36, %v2921_v6 }
 0x20f   : > { %v3590_v19 = vpop.f32.mrf.mxu0  ;;  %v5213_v30 = vpop.f32.mrf.mxu1 }
 0x210   : > { %v3876_v54 = vadd.f32 %v3845_v17, %v3844_v37  ;;  %3774 = vst [vmem:[%s5489_s30 + $0x18] sm:$0xff] %v3742_v7  ;;  %v3741_v0 = vadd.f32 %v3590_v19, %v3355_v21  ;;  %v3358_v59 = vadd.f32 %v5213_v30, %v2924_v23  ;;  %v3847_v22 = vmul.f32 %v3742_v7, %v3742_v7 }
 0x211   : > { %v5293_v13 = vpop.f32.mrf.mxu0  ;;  %v3214_v6 = vpop.f32.mrf.mxu1  ;;  %v2607_v23 = vadd.f32 %v7185_v1, %v7084_v29  ;;  %v2927_v19 = vadd.f32 %v7183_v57, %v2604_v15 }
 0x212   : > { %3773 = vst [vmem:[%s5489_s30 + $0x10] sm:$0xff] %v3741_v0  ;;  %v3805_v35 = vadd.f32 %v3804_v2, %v3741_v0  ;;  %v3846_v46 = vmul.f32 %v3741_v0, %v3741_v0  ;;  %v3744_v63 = vadd.f32 %v5293_v13, %v3358_v59  ;;  %v3357_v32 = vadd.f32 %v3214_v6, %v2923_v3 }
 0x213   : > { %v3600_v33 = vpop.f32.mrf.mxu0  ;;  %v5216_v40 = vpop.f32.mrf.mxu1  ;;  %v2930_v30 = vadd.f32 %v7187_v61, %v2607_v23  ;;  %v2609_v3 = vadd.f32 %v7193_v26, %v7090_v28  ;;  %v2608_v6 = vadd.f32 %v7198_v56, %v7093_v53 }
 0x214   : > { %v3877_v43 = vadd.f32 %v3876_v54, %v3846_v46  ;;  %3776 = vst [vmem:[%s5489_s30 + $0x28] sm:$0xff] %v3744_v63  ;;  %v3743_v5 = vadd.f32 %v3600_v33, %v3357_v32  ;;  %v3806_v38 = vadd.f32 %v3805_v35, %v3742_v7  ;;  %v3360_v17 = vadd.f32 %v5216_v40, %v2926_v50 }
 0x215   : > { %v5296_v25 = vpop.f32.mrf.mxu0  ;;  %v3224_v31 = vpop.f32.mrf.mxu1  ;;  %v2606_v7 = vadd.f32 %v7189_v34, %v7087_v20  ;;  %v3849_v8 = vmul.f32 %v3744_v63, %v3744_v63  ;;  %v2932_v32 = vadd.f32 %v7196_v41, %v2609_v3  ;;  %v2610_v41 = vadd.f32 %v7206_v49, %v7099_v45 }
 0x216   : > { %3775 = vst [vmem:[%s5489_s30 + $0x20] sm:$0xff] %v3743_v5  ;;  %v3807_v51 = vadd.f32 %v3806_v38, %v3743_v5  ;;  %v3848_v36 = vmul.f32 %v3743_v5, %v3743_v5  ;;  %v3878_v2 = vadd.f32 %v3877_v43, %v3847_v22  ;;  %v3359_v37 = vadd.f32 %v3224_v31, %v2925_v47 }
 0x217   : > { %v3746_v21 = vadd.f32 %v5296_v25, %v3360_v17  ;;  %v3610_v27 = vpop.f32.mrf.mxu0  ;;  %v5219_v18 = vpop.f32.mrf.mxu1  ;;  %v2929_v13 = vadd.f32 %v7191_v55, %v2606_v7  ;;  %v2611_v55 = vadd.f32 %v7202_v24, %v7096_v16  ;;  %v2613_v16 = vadd.f32 %v7210_v44, %v7102_v14 }
 0x218   : > { %v3879_v12 = vadd.f32 %v3878_v2, %v3848_v36  ;;  %v3745_v52 = vadd.f32 %v3610_v27, %v3359_v37  ;;  %v3808_v29 = vadd.f32 %v3807_v51, %v3744_v63  ;;  %v3362_v1 = vadd.f32 %v5219_v18, %v2928_v58 }
 0x219   : > { %3778 = vst [vmem:[%s5489_s30 + $0x38] sm:$0xff] %v3746_v21  ;;  %v5299_v54 = vpop.f32.mrf.mxu0  ;;  %v3234_v0 = vpop.f32.mrf.mxu1  ;;  %v3851_v46 = vmul.f32 %v3746_v21, %v3746_v21  ;;  %v2931_v58 = vadd.f32 %v7200_v9, %v2608_v6  ;;  %v2934_v36 = vadd.f32 %v7204_v4, %v2611_v55  ;;  %v2612_v14 = vadd.f32 %v7214_v39, %v7105_v11 }
 0x21a   : > { %3777 = vst [vmem:[%s5489_s30 + $0x30] sm:$0xff] %v3745_v52  ;;  %v3809_v20 = vadd.f32 %v3808_v29, %v3745_v52  ;;  %v3850_v34 = vmul.f32 %v3745_v52, %v3745_v52  ;;  %v3880_v59 = vadd.f32 %v3879_v12, %v3849_v8  ;;  %v3748_v10 = vadd.f32 %v5299_v54, %v3362_v1 }
 0x21b   : > { %v3361_v57 = vadd.f32 %v3234_v0, %v2927_v19  ;;  %v3620_v61 = vpop.f32.mrf.mxu0  ;;  %v5222_v35 = vpop.f32.mrf.mxu1  ;;  %v2936_v18 = vadd.f32 %v7212_v48, %v2613_v16  ;;  %v7609_v19 = vld [vmem:[#allocation9_spill] sm:$0xff] }
 0x21c   : > { %v3881_v28 = vadd.f32 %v3880_v59, %v3850_v34  ;;  %3780 = vst [vmem:[%s5489_s30 + $0x48] sm:$0xff] %v3748_v10  ;;  %v3810_v26 = vadd.f32 %v3809_v20, %v3746_v21  ;;  %v3364_v63 = vadd.f32 %v5222_v35, %v2930_v30  ;;  %v3853_v24 = vmul.f32 %v3748_v10, %v3748_v10  ;;  %v7610_v30 = vld [vmem:[#allocation17_spill] sm:$0xff]  ;;  %v7611_v59 = vld [vmem:[#allocation24_spill] sm:$0xff]  ;;  %v7614_v35 = vld [vmem:[#allocation11_spill] sm:$0xff] }
 0x21d   : > { %v3747_v50 = vadd.f32 %v3620_v61, %v3361_v57  ;;  %v5302_v47 = vpop.f32.mrf.mxu0  ;;  %v3244_v33 = vpop.f32.mrf.mxu1  ;;  %v2933_v21 = vadd.f32 %v7208_v62, %v2610_v41  ;;  %v2615_v3 = vadd.f32 %v7610_v30, %v7609_v19  ;;  %v2935_v48 = vadd.f32 %v7611_v59, %v2612_v14 }
 0x21e   : > { %v3882_v40 = vadd.f32 %v3881_v28, %v3851_v46  ;;  %v3750_v53 = vadd.f32 %v5302_v47, %v3364_v63  ;;  %v3363_v56 = vadd.f32 %v3244_v33, %v2929_v13  ;;  %v7613_v13 = vld [vmem:[#allocation26_spill] sm:$0xff]  ;;  %v7615_v46 = vld [vmem:[#allocation31_spill] sm:$0xff]  ;;  %v7616_v33 = vld [vmem:[#allocation16_spill] sm:$0xff] }
 0x21f   : > { %3779 = vst [vmem:[%s5489_s30 + $0x40] sm:$0xff] %v3747_v50  ;;  %v3811_v22 = vadd.f32 %v3810_v26, %v3747_v50  ;;  %v3852_v43 = vmul.f32 %v3747_v50, %v3747_v50  ;;  %v3630_v5 = vpop.f32.mrf.mxu0  ;;  %v5225_v38 = vpop.f32.mrf.mxu1  ;;  %v2617_v28 = vadd.f32 %v7615_v46, %v7614_v35  ;;  %v2938_v55 = vadd.f32 %v7616_v33, %v2615_v3 }
 0x220   : > { %3782 = vst [vmem:[%s5489_s30 + $0x58] sm:$0xff] %v3750_v53  ;;  %v3749_v15 = vadd.f32 %v3630_v5, %v3363_v56  ;;  %v3366_v23 = vadd.f32 %v5225_v38, %v2932_v32  ;;  %v3855_v4 = vmul.f32 %v3750_v53, %v3750_v53 }
 0x221   : > { %v3883_v17 = vadd.f32 %v3882_v40, %v3852_v43  ;;  %v3812_v25 = vadd.f32 %v3811_v22, %v3748_v10  ;;  %v5305_v31 = vpop.f32.mrf.mxu0  ;;  %v3254_v51 = vpop.f32.mrf.mxu1  ;;  %v7612_v10 = vld [vmem:[#allocation8_spill] sm:$0xff] }
 0x222   : > { %3781 = vst [vmem:[%s5489_s30 + $0x50] sm:$0xff] %v3749_v15  ;;  %v3854_v2 = vmul.f32 %v3749_v15, %v3749_v15  ;;  %v3752_v9 = vadd.f32 %v5305_v31, %v3366_v23  ;;  %v3365_v37 = vadd.f32 %v3254_v51, %v2931_v58  ;;  %v2614_v6 = vadd.f32 %v7613_v13, %v7612_v10  ;;  %v7617_v58 = vld [vmem:[#allocation35_spill] sm:$0xff] }
 0x223   : > { %v3813_v7 = vadd.f32 %v3812_v25, %v3749_v15  ;;  %v3884_v45 = vadd.f32 %v3883_v17, %v3853_v24  ;;  %v3640_v49 = vpop.f32.mrf.mxu0  ;;  %v5228_v8 = vpop.f32.mrf.mxu1  ;;  %v7618_v15 = vld [vmem:[#allocation10_spill] sm:$0xff]  ;;  %v7619_v23 = vld [vmem:[#allocation19_spill] sm:$0xff]  ;;  %v7620_v25 = vld [vmem:[#allocation29_spill] sm:$0xff] }
 0x224   : > { %3784 = vst [vmem:[%s5489_s30 + $0x68] sm:$0xff] %v3752_v9  ;;  %v3751_v44 = vadd.f32 %v3640_v49, %v3365_v37  ;;  %v3368_v27 = vadd.f32 %v5228_v8, %v2934_v36  ;;  %v3857_v26 = vmul.f32 %v3752_v9, %v3752_v9  ;;  %v2937_v41 = vadd.f32 %v7617_v58, %v2614_v6  ;;  %v7633_v58 = vld [vmem:[#allocation22_spill] sm:$0xff] }
 0x225   : > { %v3885_v12 = vadd.f32 %v3884_v45, %v3854_v2  ;;  %v3814_v52 = vadd.f32 %v3813_v7, %v3750_v53  ;;  %v5308_v29 = vpop.f32.mrf.mxu0  ;;  %v3264_v1 = vpop.f32.mrf.mxu1  ;;  %v2616_v16 = vadd.f32 %v7619_v23, %v7618_v15  ;;  %v2940_v31 = vadd.f32 %v7620_v25, %v2617_v28  ;;  %v7621_v7 = vld [vmem:[#allocation13_spill] sm:$0xff]  ;;  %v7622_v45 = vld [vmem:[#allocation43_spill] sm:$0xff] }
 0x226   : > { %3783 = vst [vmem:[%s5489_s30 + $0x60] sm:$0xff] %v3751_v44  ;;  %v3856_v54 = vmul.f32 %v3751_v44, %v3751_v44  ;;  %v3754_v62 = vadd.f32 %v5308_v29, %v3368_v27  ;;  %v3367_v0 = vadd.f32 %v3264_v1, %v2933_v21  ;;  %v2619_v49 = vadd.f32 %v7622_v45, %v7621_v7  ;;  %v7624_v29 = vld [vmem:[#allocation12_spill] sm:$0xff]  ;;  %v7625_v1 = vld [vmem:[#allocation30_spill] sm:$0xff] }
 0x227   : > { %v3815_v20 = vadd.f32 %v3814_v52, %v3751_v44  ;;  %v3886_v11 = vadd.f32 %v3885_v12, %v3855_v4  ;;  %v3650_v39 = vpop.f32.mrf.mxu0  ;;  %v5231_v34 = vpop.f32.mrf.mxu1  ;;  %v7623_v12 = vld [vmem:[#allocation18_spill] sm:$0xff]  ;;  %v2618_v19 = vadd.f32 %v7625_v1, %v7624_v29 }
 0x228   : > { %3786 = vst [vmem:[%s5489_s30 + $0x78] sm:$0xff] %v3754_v62  ;;  %v3753_v57 = vadd.f32 %v3650_v39, %v3367_v0  ;;  %v3370_v61 = vadd.f32 %v5231_v34, %v2936_v18  ;;  %v3859_v51 = vmul.f32 %v3754_v62, %v3754_v62  ;;  %v2939_v52 = vadd.f32 %v7623_v12, %v2616_v16  ;;  %v7639_v12 = vld [vmem:[#allocation41_spill] sm:$0xff] }
 0x229   : > { %v3887_v63 = vadd.f32 %v3886_v11, %v3856_v54  ;;  %v3816_v32 = vadd.f32 %v3815_v20, %v3752_v9  ;;  %v5311_v50 = vpop.f32.mrf.mxu0  ;;  %v3274_v47 = vpop.f32.mrf.mxu1  ;;  %v7626_v54 = vld [vmem:[#allocation28_spill] sm:$0xff] }
 0x22a   : > { %3785 = vst [vmem:[%s5489_s30 + $0x70] sm:$0xff] %v3753_v57  ;;  %v3858_v40 = vmul.f32 %v3753_v57, %v3753_v57  ;;  %v3756_v53 = vadd.f32 %v5311_v50, %v3370_v61  ;;  %v3369_v56 = vadd.f32 %v3274_v47, %v2935_v48  ;;  %v7628_v48 = vld [vmem:[#allocation44_spill] sm:$0xff]  ;;  %v7631_v50 = vld [vmem:[#allocation21_spill] sm:$0xff] }
 0x22b   : > { %v3817_v22 = vadd.f32 %v3816_v32, %v3753_v57  ;;  %v3888_v43 = vadd.f32 %v3887_v63, %v3857_v26  ;;  %v3660_v5 = vpop.f32.mrf.mxu0  ;;  %v5234_v38 = vpop.f32.mrf.mxu1  ;;  %v2942_v10 = vadd.f32 %v7628_v48, %v2619_v49  ;;  %v7629_v26 = vld [vmem:[#allocation38_spill] sm:$0xff]  ;;  %v7630_v32 = vld [vmem:[#allocation25_spill] sm:$0xff]  ;;  %v7643_v48 = vld [vmem:[#allocation40_spill] sm:$0xff] }
 0x22c   : > { %3788 = vst [vmem:[%s5489_s30 + $0x88] sm:$0xff] %v3756_v53  ;;  %v3755_v24 = vadd.f32 %v3660_v5, %v3369_v56  ;;  %v3372_v17 = vadd.f32 %v5234_v38, %v2938_v55  ;;  %v3861_v20 = vmul.f32 %v3756_v53, %v3756_v53  ;;  %v2941_v63 = vadd.f32 %v7629_v26, %v2618_v19  ;;  %v7637_v49 = vld [vmem:[#allocation14_spill] sm:$0xff] }
 0x22d   : > { %v3889_v36 = vadd.f32 %v3888_v43, %v3858_v40  ;;  %v3818_v2 = vadd.f32 %v3817_v22, %v3754_v62  ;;  %v5314_v9 = vpop.f32.mrf.mxu0  ;;  %v3284_v37 = vpop.f32.mrf.mxu1  ;;  %v7627_v62 = vld [vmem:[#allocation34_spill] sm:$0xff]  ;;  %v2620_v47 = vadd.f32 %v7631_v50, %v7630_v32  ;;  %v7632_v40 = vld [vmem:[#allocation33_spill] sm:$0xff] }
 0x22e   : > { %3787 = vst [vmem:[%s5489_s30 + $0x80] sm:$0xff] %v3755_v24  ;;  %v3860_v8 = vmul.f32 %v3755_v24, %v3755_v24  ;;  %v3758_v21 = vadd.f32 %v5314_v9, %v3372_v17  ;;  %v3371_v14 = vadd.f32 %v3284_v37, %v2937_v41  ;;  %v2621_v0 = vadd.f32 %v7627_v62, %v7626_v54  ;;  %v7634_v41 = vld [vmem:[#allocation36_spill] sm:$0xff]  ;;  %v7636_v9 = vld [vmem:[#allocation15_spill] sm:$0xff]  ;;  %v7640_v62 = vld [vmem:[#allocation37_spill] sm:$0xff] }
 0x22f   : > { %v3819_v44 = vadd.f32 %v3818_v2, %v3755_v24  ;;  %v3890_v27 = vadd.f32 %v3889_v36, %v3859_v51  ;;  %v3670_v18 = vpop.f32.mrf.mxu0  ;;  %v5237_v4 = vpop.f32.mrf.mxu1  ;;  %v2623_v15 = vadd.f32 %v7634_v41, %v7633_v58  ;;  %v7635_v36 = vld [vmem:[#allocation20_spill] sm:$0xff]  ;;  %v2622_v37 = vadd.f32 %v7254_v60, %v7636_v9 }
 0x230   : > { %3790 = vst [vmem:[%s5489_s30 + $0x98] sm:$0xff] %v3758_v21  ;;  %v3757_v30 = vadd.f32 %v3670_v18, %v3371_v14  ;;  %v3374_v3 = vadd.f32 %v5237_v4, %v2940_v31  ;;  %v3863_v56 = vmul.f32 %v3758_v21, %v3758_v21  ;;  %v2943_v2 = vadd.f32 %v7635_v36, %v2620_v47 }
 0x231   : > { %v3891_v11 = vadd.f32 %v3890_v27, %v3860_v8  ;;  %v3820_v39 = vadd.f32 %v3819_v44, %v3756_v53  ;;  %v5317_v34 = vpop.f32.mrf.mxu0  ;;  %v3294_v59 = vpop.f32.mrf.mxu1  ;;  %v2944_v53 = vadd.f32 %v7632_v40, %v2621_v0  ;;  %v7638_v8 = vld [vmem:[#allocation39_spill] sm:$0xff]  ;;  %v2945_v0 = vadd.f32 %v7640_v62, %v2622_v37  ;;  %v7645_v40 = vld [vmem:[#allocation45_spill] sm:$0xff]  ;;  %v7649_v37 = vld [vmem:[#allocation48_spill] sm:$0xff] }
 0x232   : > { %3789 = vst [vmem:[%s5489_s30 + $0x90] sm:$0xff] %v3757_v30  ;;  %v3862_v13 = vmul.f32 %v3757_v30, %v3757_v30  ;;  %v3760_v6 = vadd.f32 %v5317_v34, %v3374_v3  ;;  %v3373_v57 = vadd.f32 %v3294_v59, %v2939_v52  ;;  %v2946_v52 = vadd.f32 %v7639_v12, %v2623_v15 }
 0x233   : > { %v3821_v61 = vadd.f32 %v3820_v39, %v3757_v30  ;;  %v3892_v35 = vadd.f32 %v3891_v11, %v3861_v20  ;;  %v3680_v46 = vpop.f32.mrf.mxu0  ;;  %v5240_v28 = vpop.f32.mrf.mxu1  ;;  %v7641_v20 = vld [vmem:[#allocation23_spill] sm:$0xff]  ;;  %v7642_v11 = vld [vmem:[#allocation42_spill] sm:$0xff] }
 0x234   : > { %3792 = vst [vmem:[%s5489_s30 + $0xa8] sm:$0xff] %v3760_v6  ;;  %v3759_v33 = vadd.f32 %v3680_v46, %v3373_v57  ;;  %v3376_v55 = vadd.f32 %v5240_v28, %v2942_v10  ;;  %v3865_v14 = vmul.f32 %v3760_v6, %v3760_v6  ;;  %v2624_v39 = vadd.f32 %v7642_v11, %v7641_v20  ;;  %v7644_v46 = vld [vmem:[#allocation32_spill] sm:$0xff] }
 0x235   : > { %v3893_v22 = vadd.f32 %v3892_v35, %v3862_v13  ;;  %v3822_v43 = vadd.f32 %v3821_v61, %v3758_v21  ;;  %v5320_v5 = vpop.f32.mrf.mxu0  ;;  %v3304_v38 = vpop.f32.mrf.mxu1  ;;  %v2625_v21 = vadd.f32 %v7638_v8, %v7637_v49  ;;  %v2627_v28 = vadd.f32 %v7267_v42, %v7644_v46 }
 0x236   : > { %3791 = vst [vmem:[%s5489_s30 + $0xa0] sm:$0xff] %v3759_v33  ;;  %v3864_v23 = vmul.f32 %v3759_v33, %v3759_v33  ;;  %v3762_v16 = vadd.f32 %v5320_v5, %v3376_v55  ;;  %v3375_v24 = vadd.f32 %v3304_v38, %v2941_v63 }
 0x237   : > { %v3823_v17 = vadd.f32 %v3822_v43, %v3759_v33  ;;  %v3894_v25 = vadd.f32 %v3893_v22, %v3863_v56  ;;  %v3690_v31 = vpop.f32.mrf.mxu0  ;;  %v5243_v51 = vpop.f32.mrf.mxu1  ;;  %v2948_v10 = vadd.f32 %v7643_v48, %v2625_v21  ;;  %v7646_v56 = vld [vmem:[#allocation27_spill] sm:$0xff] }
 0x238   : > { %3794 = vst [vmem:[%s5489_s30 + $0xb8] sm:$0xff] %v3762_v16  ;;  %v3761_v7 = vadd.f32 %v3690_v31, %v3375_v24  ;;  %v3378_v45 = vadd.f32 %v5243_v51, %v2944_v53  ;;  %v3867_v13 = vmul.f32 %v3762_v16, %v3762_v16  ;;  %v2947_v53 = vadd.f32 %v7645_v40, %v2624_v39  ;;  %v7647_v22 = vld [vmem:[#allocation47_spill] sm:$0xff] }
 0x239   : > { %v3895_v44 = vadd.f32 %v3894_v25, %v3864_v23  ;;  %v3824_v27 = vadd.f32 %v3823_v17, %v3760_v6  ;;  %v5323_v18 = vpop.f32.mrf.mxu0  ;;  %v3314_v4 = vpop.f32.mrf.mxu1  ;;  %v2626_v43 = vadd.f32 %v7647_v22, %v7646_v56 }
 0x23a   : > { %3793 = vst [vmem:[%s5489_s30 + $0xb0] sm:$0xff] %v3761_v7  ;;  %v3866_v29 = vmul.f32 %v3761_v7, %v3761_v7  ;;  %v3764_v1 = vadd.f32 %v5323_v18, %v3378_v45  ;;  %v3377_v19 = vadd.f32 %v3314_v4, %v2943_v2 }
 0x23b   : > { %v3825_v30 = vadd.f32 %v3824_v27, %v3761_v7  ;;  %v3896_v60 = vadd.f32 %v3895_v44, %v3865_v14  ;;  %v3700_v3 = vpop.f32.mrf.mxu0  ;;  %v5246_v54 = vpop.f32.mrf.mxu1  ;;  %v2949_v7 = vadd.f32 %v7649_v37, %v2626_v43 }
 0x23c   : > { %3796 = vst [vmem:[%s5489_s30 + $0xc8] sm:$0xff] %v3764_v1  ;;  %v3763_v34 = vadd.f32 %v3700_v3, %v3377_v19  ;;  %v3380_v59 = vadd.f32 %v5246_v54, %v2946_v52  ;;  %v3869_v58 = vmul.f32 %v3764_v1, %v3764_v1 }
 0x23d   : > { %v3897_v6 = vadd.f32 %v3896_v60, %v3866_v29  ;;  %v3826_v57 = vadd.f32 %v3825_v30, %v3762_v16  ;;  %v5326_v61 = vpop.f32.mrf.mxu0  ;;  %v3324_v35 = vpop.f32.mrf.mxu1  ;;  %v7648_v16 = vld [vmem:[#allocation46_spill] sm:$0xff] }
 0x23e   : > { %3795 = vst [vmem:[%s5489_s30 + $0xc0] sm:$0xff] %v3763_v34  ;;  %v3868_v26 = vmul.f32 %v3763_v34, %v3763_v34  ;;  %v3766_v63 = vadd.f32 %v5326_v61, %v3380_v59  ;;  %v3379_v32 = vadd.f32 %v3324_v35, %v2945_v0  ;;  %v2950_v24 = vadd.f32 %v7648_v16, %v2627_v28  ;;  %v3803_v28 = vld [vmem:[#allocation4] sm:$0x1] }
 0x23f   : > { %v3827_v50 = vadd.f32 %v3826_v57, %v3763_v34  ;;  %v3898_v47 = vadd.f32 %v3897_v6, %v3867_v13  ;;  %v3710_v33 = vpop.f32.mrf.mxu0  ;;  %v5249_v55 = vpop.f32.mrf.mxu1 }
 0x240   : > { %3798 = vst [vmem:[%s5489_s30 + $0xd8] sm:$0xff] %v3766_v63  ;;  %v3765_v5 = vadd.f32 %v3710_v33, %v3379_v32  ;;  %v3382_v38 = vadd.f32 %v5249_v55, %v2948_v10  ;;  %v3871_v8 = vmul.f32 %v3766_v63, %v3766_v63  ;;  %v3843_v32 = vld [vmem:[#allocation5] sm:$0x1] }
 0x241   : > { %v3899_v42 = vadd.f32 %v3898_v47, %v3868_v26  ;;  %v3828_v41 = vadd.f32 %v3827_v50, %v3764_v1  ;;  %v5329_v15 = vpop.f32.mrf.mxu0  ;;  %v3334_v23 = vpop.f32.mrf.mxu1 }
 0x242   : > { %3797 = vst [vmem:[%s5489_s30 + $0xd0] sm:$0xff] %v3765_v5  ;;  %v3870_v17 = vmul.f32 %v3765_v5, %v3765_v5  ;;  %v3768_v25 = vadd.f32 %v5329_v15, %v3382_v38  ;;  %v3381_v31 = vadd.f32 %v3334_v23, %v2947_v53  ;;  %v3932_v15 = vld [vmem:[%s7426_s3] sm:$0x1] (%p3915_p6) }
 0x243   : > { %v3829_v51 = vadd.f32 %v3828_v41, %v3765_v5  ;;  %v3900_v36 = vadd.f32 %v3899_v42, %v3869_v58  ;;  %v3720_v2 = vpop.f32.mrf.mxu0  ;;  %v5252_v9 = vpop.f32.mrf.mxu1  ;;  %v3929_v58 = vld [vmem:[%s7425_s2] sm:$0x1] (%p3915_p6) }
 0x244   : > { %3800 = vst [vmem:[%s5489_s30 + $0xe8] sm:$0xff] %v3768_v25  ;;  %v3767_v45 = vadd.f32 %v3720_v2, %v3381_v31  ;;  %v3384_v49 = vadd.f32 %v5252_v9, %v2950_v24  ;;  %v3873_v30 = vmul.f32 %v3768_v25, %v3768_v25 }
 0x245   : > { %v3901_v21 = vadd.f32 %v3900_v36, %v3870_v17  ;;  %v3830_v14 = vadd.f32 %v3829_v51, %v3766_v63  ;;  %v5332_v44 = vpop.f32.mrf.mxu0  ;;  %v3344_v27 = vpop.f32.mrf.mxu1 }
 0x246   : > { %3799 = vst [vmem:[%s5489_s30 + $0xe0] sm:$0xff] %v3767_v45  ;;  %v3872_v18 = vmul.f32 %v3767_v45, %v3767_v45  ;;  %v3770_v4 = vadd.f32 %v5332_v44, %v3384_v49  ;;  %v3383_v12 = vadd.f32 %v3344_v27, %v2949_v7 }
 0x247   : > { %v3831_v52 = vadd.f32 %v3830_v14, %v3767_v45  ;;  %v3902_v29 = vadd.f32 %v3901_v21, %v3871_v8  ;;  %v3730_v1 = vpop.f32.mrf.mxu0 }
 0x248   : > { %3802 = vst [vmem:[%s5489_s30 + $0xf8] sm:$0xff] %v3770_v4  ;;  %v3769_v19 = vadd.f32 %v3730_v1, %v3383_v12  ;;  %v3875_v20 = vmul.f32 %v3770_v4, %v3770_v4 }
 0x249   : > { %v3903_v60 = vadd.f32 %v3902_v29, %v3872_v18  ;;  %v3832_v3 = vadd.f32 %v3831_v52, %v3768_v25 }
 0x24a   : > { %3801 = vst [vmem:[%s5489_s30 + $0xf0] sm:$0xff] %v3769_v19  ;;  %v3874_v54 = vmul.f32 %v3769_v19, %v3769_v19 }
 0x24b   : > { %v3833_v62 = vadd.f32 %v3832_v3, %v3769_v19  ;;  %v3904_v0 = vadd.f32 %v3903_v60, %v3873_v30 }
 0x24d   : > { %v3834_v11 = vadd.f32 %v3833_v62, %v3770_v4  ;;  %v3905_v39 = vadd.f32 %v3904_v0, %v3874_v54 }
 0x24f   : > { %v3835_v34 = vrot.slane %v3834_v11, 4  ;;  %v3906_v59 = vadd.f32 %v3905_v39, %v3875_v20 }
 0x251   : > { %v3836_v48 = vadd.f32 %v3835_v34, %v3834_v11  ;;  %v3907_v10 = vrot.slane %v3906_v59, 4 }
 0x253   : > { %v3837_v13 = vrot.slane %v3836_v48, 2  ;;  %v3908_v6 = vadd.f32 %v3907_v10, %v3906_v59 }
 0x255   : > { %v3838_v57 = vadd.f32 %v3837_v13, %v3836_v48  ;;  %v3909_v61 = vrot.slane %v3908_v6, 2 }
 0x257   : > { %v3839_v35 = vrot.slane %v3838_v57, 1  ;;  %v3910_v46 = vadd.f32 %v3909_v61, %v3908_v6 }
 0x259   : > { %v3840_v26 = vadd.f32 %v3839_v35, %v3838_v57  ;;  %v3911_v63 = vrot.slane %v3910_v46, 1 }
 0x25b   : > { %v3841_v50 = vadd.f32 %v3840_v26, %v3803_v28  ;;  %v3912_v47 = vadd.f32 %v3911_v63, %v3910_v46  ;;  %3919 = sbr.rel (!%p3915_p6) target bundleno = 644 (0x284), region = 77 }
 0x25d   : > { %3842 = vst [vmem:[#allocation4] sm:$0x1] %v3841_v50  ;;  %v3913_v33 = vadd.f32 %v3912_v47, %v3843_v32 }
 0x25f   : > { %3914 = vst [vmem:[#allocation5] sm:$0x1] %v3913_v33 }
 0x264   : > { %v3920_v55 = vld [vmem:[#allocation4] sm:$0x1] }
 0x265   : > { %v3921_v53 = vmul.f32 0.001953125, %v3920_v55 }
 0x266   : > { %v3922_v40 = vld [vmem:[#allocation5] sm:$0x1] }
 0x267   : > { %v3923_v56 = vmul.f32 0.001953125, %v3922_v40  ;;  %v3924_v22 = vmul.f32 %v3921_v53, %v3921_v53 }
 0x269   : > { %v3925_v43 = vsub.f32 %v3923_v56, %v3924_v22 }
 0x26b   : > { %v3926_v5 = vmax.f32 %v3925_v43, 0.0 }
 0x26d   : > { %v3927_v38 = vadd.f32 1e-05, %v3926_v5 }
 0x26f   : > { %5391 = vrsqrt.f32 %v3927_v38 }
 0x27c   : > { %v5392_v42 = vpop.eup %5391 }
 0x27d   : > { %v3930_v41 = vmul.f32 %v5392_v42, %v3929_v58 }
 0x27f   : > { %3931 = vst [vmem:[%s7428_s5] sm:$0x1] %v3930_v41  ;;  %v3933_v23 = vmul.f32 %v3930_v41, %v3921_v53 }
 0x281   : > { %v3934_v16 = vsub.f32 %v3932_v15, %v3933_v23 }
 0x283   : > { %3935 = vst [vmem:[%s7428_s5 + $0x1] sm:$0x1] %v3934_v16 }
 0x284 PF: > { %s16_s20 = sadd.s32 1, %s5417_s20   ;;  %s7650_s18 = smov %s5413_s19 }
 0x285   : > { %p13_p7 = scmp.ge.s32.totalorder %s16_s20, 4   ;;  %s7651_s19 = smov %s7653_s21 }
 0x287   :  { %15 = sbr.rel (!%p13_p7) target bundleno = 2 (0x2), region = 137 }
 0x28c   :  { %3967 = vsyncmov [#allocation3] }
 0x28f   :  { %s3968_s24 = vpop.sfrf %3967 }
 0x290   :  { %p4178_p8 = scmp.ne.s32.totalorder %s3968_s24, 0 }
 0x292   :  { %3972 = shalt.err (%p4178_p8)  }

</bundles_post_ra>
